<compile_context>
chip_gen: v5e
topology: v5e:2x2
jax: 0.10.0
libtpu: 0.0.40
codegen_flags: <defaults>
</compile_context>

<pallas_src>
import functools

import jax
import jax.numpy as jnp
from jax.experimental import pallas as pl
from jax.experimental.pallas import tpu as pltpu

BETA = 0.95
THRESHOLD = 1.0
NUM_INPUT = 4
NUM_HIDDEN = 5
NUM_OUTPUT = 3
NUM_STEPS = 25


def _tree_sum(terms):
    """Balanced-tree sum: dependent-add depth ceil(log2(n)) instead of n-1."""
    terms = list(terms)
    while len(terms) > 1:
        nxt = [terms[i] + terms[i + 1] for i in range(0, len(terms) - 1, 2)]
        if len(terms) % 2:
            nxt.append(terms[-1])
        terms = nxt
    return terms[0]


def _snn_kernel(x_ref, w1_ref, w2_ref, mem_out_ref, *, num_steps, batch):
    x = x_ref[...]      # (T*B, NUM_INPUT)
    w1 = w1_ref[...]    # (NUM_INPUT, NUM_HIDDEN)
    w2 = w2_ref[...]    # (NUM_HIDDEN, NUM_OUTPUT)

    # fc1 has no dependence on membrane state -> one pass for all timesteps,
    # done on the VPU (4 broadcast-multiply terms, tree-summed).
    cur1_all = _tree_sum(
        x[:, i:i + 1] * w1[i:i + 1, :] for i in range(NUM_INPUT))   # (T*B, H)

    # Loop-invariant fc2 operands, hoisted out of the recurrence.
    w2_rows = [jnp.broadcast_to(w2[h:h + 1, :], (batch, NUM_OUTPUT))
               for h in range(NUM_HIDDEN)]
    zeros_bo = jnp.zeros((batch, NUM_OUTPUT), jnp.float32)

    # Membrane state lives in registers across the fully unrolled recurrence.
    m1 = jnp.zeros((batch, NUM_HIDDEN), jnp.float32)
    m2 = jnp.zeros((batch, NUM_OUTPUT), jnp.float32)

    for t in range(num_steps):
        cur1 = cur1_all[t * batch:(t + 1) * batch, :]               # (B, H)

        # LIF layer 1: subtract-reset from the previous membrane, as one select.
        m1 = BETA * m1 + cur1 - jnp.where(m1 > THRESHOLD, THRESHOLD, 0.0)

        # fc2 on the VPU: spk1 is {0,1}, so cur2 = sum_h [m1[:,h] > thr] * w2[h,:].
        # Per hidden unit: f32 lane-broadcast + compare + select (no mask-vreg
        # slicing/broadcast); the 5 terms are independent and tree-summed.
        terms = [
            jnp.where(
                jnp.broadcast_to(m1[:, h:h + 1], (batch, NUM_OUTPUT)) > THRESHOLD,
                w2_rows[h], zeros_bo)
            for h in range(NUM_HIDDEN)
        ]
        cur2 = _tree_sum(terms)                                     # (B, O)

        # LIF layer 2.
        m2 = BETA * m2 + cur2 - jnp.where(m2 > THRESHOLD, THRESHOLD, 0.0)

        # Only mem2 is stored; spk2 is recomputed (bit-identically) in the
        # wrapper from mem2.  Static-offset store into the resident VMEM block;
        # HBM writeback happens once when the kernel finishes.
        mem_out_ref[t * batch:(t + 1) * batch, :] = m2


def snn_forward(x, w1, w2):
    """x: (T, B, NUM_INPUT) f32. w1: (NUM_INPUT, NUM_HIDDEN). w2: (NUM_HIDDEN, NUM_OUTPUT).
    Returns (spk2_rec, mem2_rec), each (T, B, NUM_OUTPUT) f32."""
    T, B, _ = x.shape
    x2d = x.reshape(T * B, NUM_INPUT)

    kernel = functools.partial(_snn_kernel, num_steps=T, batch=B)
    mem2d = pl.pallas_call(
        kernel,
        out_shape=jax.ShapeDtypeStruct((T * B, NUM_OUTPUT), jnp.float32),
        in_specs=[
            pl.BlockSpec(memory_space=pltpu.MemorySpace.VMEM),  # x (whole array)
            pl.BlockSpec(memory_space=pltpu.MemorySpace.VMEM),  # w1
            pl.BlockSpec(memory_space=pltpu.MemorySpace.VMEM),  # w2
        ],
        out_specs=pl.BlockSpec(memory_space=pltpu.MemorySpace.VMEM),
    )(x2d, w1, w2)

    mem2_rec = mem2d.reshape(T, B, NUM_OUTPUT)
    # spk2 = fire(mem2) is a pure elementwise function of the stored membrane;
    # computed in XLA outside the kernel (exact reproduction of snn.Leaky).
    spk2_rec = (mem2_rec > THRESHOLD).astype(jnp.float32)
    return spk2_rec, mem2_rec


def init_params(key):
    """Deterministic init mimicking nn.Linear default: U(-1/sqrt(fan_in), 1/sqrt(fan_in))."""
    k1, k2 = jax.random.split(key)
    b1 = 1.0 / jnp.sqrt(NUM_INPUT)
    b2 = 1.0 / jnp.sqrt(NUM_HIDDEN)
    # Stored already transposed relative to torch's (out, in) weight layout.
    w1 = jax.random.uniform(k1, (NUM_INPUT, NUM_HIDDEN), jnp.float32, -b1, b1)
    w2 = jax.random.uniform(k2, (NUM_HIDDEN, NUM_OUTPUT), jnp.float32, -b2, b2)
    return w1, w2


if __name__ == "__main__":
    key = jax.random.PRNGKey(0)
    kx, kp = jax.random.split(key)
    B = 2
    x = jax.random.normal(kx, (NUM_STEPS, B, NUM_INPUT), jnp.float32)
    w1, w2 = init_params(kp)

    spk2_rec, mem2_rec = jax.jit(snn_forward)(x, w1, w2)
    jax.block_until_ready((spk2_rec, mem2_rec))

    assert spk2_rec.shape == (NUM_STEPS, B, NUM_OUTPUT)
    assert mem2_rec.shape == (NUM_STEPS, B, NUM_OUTPUT)

    # Pure-JAX reference of the recurrence.
    def ref(x, w1, w2):
        def step(carry, xt):
            m1, m2 = carry
            cur1 = xt @ w1
            r1 = (m1 > THRESHOLD).astype(jnp.float32)
            m1 = BETA * m1 + cur1 - r1 * THRESHOLD
            s1 = (m1 > THRESHOLD).astype(jnp.float32)
            cur2 = s1 @ w2
            r2 = (m2 > THRESHOLD).astype(jnp.float32)
            m2 = BETA * m2 + cur2 - r2 * THRESHOLD
            s2 = (m2 > THRESHOLD).astype(jnp.float32)
            return (m1, m2), (s2, m2)

        init = (jnp.zeros((x.shape[1], NUM_HIDDEN)), jnp.zeros((x.shape[1], NUM_OUTPUT)))
        _, (s, m) = jax.lax.scan(step, init, x)
        return s, m

    s_ref, m_ref = ref(x, w1, w2)
    assert jnp.allclose(mem2_rec, m_ref, atol=1e-5)
    assert jnp.allclose(spk2_rec, s_ref, atol=1e-5)

    print("KERNEL_OK")
</pallas_src>

<mosaic_0001>
module attributes {stable_mosaic.version = 11 : i64} {
  func.func @_snn_kernel(%arg0: memref<50x4xf32, #tpu.memory_space<vmem>>, %arg1: memref<4x5xf32, #tpu.memory_space<vmem>>, %arg2: memref<5x3xf32, #tpu.memory_space<vmem>>, %arg3: memref<50x3xf32, #tpu.memory_space<vmem>>) attributes {dimension_semantics = [], scalar_prefetch = 0 : i64, scratch_operands = 0 : i64, tpu.core_type = #tpu.core_type<tc>} {
    %c0 = arith.constant 0 : index
    %c0_0 = arith.constant 0 : index
    %0 = vector.load %arg0[%c0, %c0_0] : memref<50x4xf32, #tpu.memory_space<vmem>>, vector<50x4xf32>
    %c0_1 = arith.constant 0 : index
    %c0_2 = arith.constant 0 : index
    %1 = vector.load %arg1[%c0_1, %c0_2] : memref<4x5xf32, #tpu.memory_space<vmem>>, vector<4x5xf32>
    %c0_3 = arith.constant 0 : index
    %c0_4 = arith.constant 0 : index
    %2 = vector.load %arg2[%c0_3, %c0_4] : memref<5x3xf32, #tpu.memory_space<vmem>>, vector<5x3xf32>
    %3 = vector.extract_strided_slice %0 {offsets = [0, 0], sizes = [50, 1], strides = [1, 1]} : vector<50x4xf32> to vector<50x1xf32>
    %4 = vector.extract_strided_slice %1 {offsets = [0, 0], sizes = [1, 5], strides = [1, 1]} : vector<4x5xf32> to vector<1x5xf32>
    %5 = vector.broadcast %3 : vector<50x1xf32> to vector<50x5xf32>
    %6 = vector.broadcast %4 : vector<1x5xf32> to vector<50x5xf32>
    %7 = arith.mulf %5, %6 : vector<50x5xf32>
    %8 = vector.extract_strided_slice %0 {offsets = [0, 1], sizes = [50, 1], strides = [1, 1]} : vector<50x4xf32> to vector<50x1xf32>
    %9 = vector.extract_strided_slice %1 {offsets = [1, 0], sizes = [1, 5], strides = [1, 1]} : vector<4x5xf32> to vector<1x5xf32>
    %10 = vector.broadcast %8 : vector<50x1xf32> to vector<50x5xf32>
    %11 = vector.broadcast %9 : vector<1x5xf32> to vector<50x5xf32>
    %12 = arith.mulf %10, %11 : vector<50x5xf32>
    %13 = vector.extract_strided_slice %0 {offsets = [0, 2], sizes = [50, 1], strides = [1, 1]} : vector<50x4xf32> to vector<50x1xf32>
    %14 = vector.extract_strided_slice %1 {offsets = [2, 0], sizes = [1, 5], strides = [1, 1]} : vector<4x5xf32> to vector<1x5xf32>
    %15 = vector.broadcast %13 : vector<50x1xf32> to vector<50x5xf32>
    %16 = vector.broadcast %14 : vector<1x5xf32> to vector<50x5xf32>
    %17 = arith.mulf %15, %16 : vector<50x5xf32>
    %18 = vector.extract_strided_slice %0 {offsets = [0, 3], sizes = [50, 1], strides = [1, 1]} : vector<50x4xf32> to vector<50x1xf32>
    %19 = vector.extract_strided_slice %1 {offsets = [3, 0], sizes = [1, 5], strides = [1, 1]} : vector<4x5xf32> to vector<1x5xf32>
    %20 = vector.broadcast %18 : vector<50x1xf32> to vector<50x5xf32>
    %21 = vector.broadcast %19 : vector<1x5xf32> to vector<50x5xf32>
    %22 = arith.mulf %20, %21 : vector<50x5xf32>
    %23 = arith.addf %7, %12 : vector<50x5xf32>
    %24 = arith.addf %17, %22 : vector<50x5xf32>
    %25 = arith.addf %23, %24 : vector<50x5xf32>
    %26 = vector.extract_strided_slice %2 {offsets = [0, 0], sizes = [1, 3], strides = [1, 1]} : vector<5x3xf32> to vector<1x3xf32>
    %27 = vector.shape_cast %26 : vector<1x3xf32> to vector<1x3xf32>
    %28 = vector.broadcast %27 : vector<1x3xf32> to vector<2x3xf32>
    %29 = vector.extract_strided_slice %2 {offsets = [1, 0], sizes = [1, 3], strides = [1, 1]} : vector<5x3xf32> to vector<1x3xf32>
    %30 = vector.shape_cast %29 : vector<1x3xf32> to vector<1x3xf32>
    %31 = vector.broadcast %30 : vector<1x3xf32> to vector<2x3xf32>
    %32 = vector.extract_strided_slice %2 {offsets = [2, 0], sizes = [1, 3], strides = [1, 1]} : vector<5x3xf32> to vector<1x3xf32>
    %33 = vector.shape_cast %32 : vector<1x3xf32> to vector<1x3xf32>
    %34 = vector.broadcast %33 : vector<1x3xf32> to vector<2x3xf32>
    %35 = vector.extract_strided_slice %2 {offsets = [3, 0], sizes = [1, 3], strides = [1, 1]} : vector<5x3xf32> to vector<1x3xf32>
    %36 = vector.shape_cast %35 : vector<1x3xf32> to vector<1x3xf32>
    %37 = vector.broadcast %36 : vector<1x3xf32> to vector<2x3xf32>
    %38 = vector.extract_strided_slice %2 {offsets = [4, 0], sizes = [1, 3], strides = [1, 1]} : vector<5x3xf32> to vector<1x3xf32>
    %39 = vector.shape_cast %38 : vector<1x3xf32> to vector<1x3xf32>
    %40 = vector.broadcast %39 : vector<1x3xf32> to vector<2x3xf32>
    %cst = arith.constant 0.000000e+00 : f32
    %41 = vector.broadcast %cst : f32 to vector<2x3xf32>
    %cst_5 = arith.constant 0.000000e+00 : f32
    %42 = vector.broadcast %cst_5 : f32 to vector<2x5xf32>
    %cst_6 = arith.constant 0.000000e+00 : f32
    %43 = vector.broadcast %cst_6 : f32 to vector<2x3xf32>
    %44 = vector.extract_strided_slice %25 {offsets = [0, 0], sizes = [2, 5], strides = [1, 1]} : vector<50x5xf32> to vector<2x5xf32>
    %cst_7 = arith.constant 0.949999988 : f32
    %45 = vector.broadcast %cst_7 : f32 to vector<2x5xf32>
    %46 = arith.mulf %45, %42 : vector<2x5xf32>
    %47 = arith.addf %46, %44 : vector<2x5xf32>
    %cst_8 = arith.constant 1.000000e+00 : f32
    %48 = vector.broadcast %cst_8 : f32 to vector<2x5xf32>
    %49 = arith.cmpf ogt, %42, %48 : vector<2x5xf32>
    %cst_9 = arith.constant 1.000000e+00 : f32
    %cst_10 = arith.constant 0.000000e+00 : f32
    %50 = vector.broadcast %cst_9 : f32 to vector<2x5xf32>
    %51 = vector.broadcast %cst_10 : f32 to vector<2x5xf32>
    %52 = arith.select %49, %50, %51 : vector<2x5xi1>, vector<2x5xf32>
    %53 = arith.subf %47, %52 : vector<2x5xf32>
    %54 = vector.extract_strided_slice %53 {offsets = [0, 0], sizes = [2, 1], strides = [1, 1]} : vector<2x5xf32> to vector<2x1xf32>
    %55 = vector.shape_cast %54 : vector<2x1xf32> to vector<2x1xf32>
    %56 = vector.broadcast %55 : vector<2x1xf32> to vector<2x3xf32>
    %cst_11 = arith.constant 1.000000e+00 : f32
    %57 = vector.broadcast %cst_11 : f32 to vector<2x3xf32>
    %58 = arith.cmpf ogt, %56, %57 : vector<2x3xf32>
    %59 = arith.select %58, %28, %41 : vector<2x3xi1>, vector<2x3xf32>
    %60 = vector.extract_strided_slice %53 {offsets = [0, 1], sizes = [2, 1], strides = [1, 1]} : vector<2x5xf32> to vector<2x1xf32>
    %61 = vector.shape_cast %60 : vector<2x1xf32> to vector<2x1xf32>
    %62 = vector.broadcast %61 : vector<2x1xf32> to vector<2x3xf32>
    %cst_12 = arith.constant 1.000000e+00 : f32
    %63 = vector.broadcast %cst_12 : f32 to vector<2x3xf32>
    %64 = arith.cmpf ogt, %62, %63 : vector<2x3xf32>
    %65 = arith.select %64, %31, %41 : vector<2x3xi1>, vector<2x3xf32>
    %66 = vector.extract_strided_slice %53 {offsets = [0, 2], sizes = [2, 1], strides = [1, 1]} : vector<2x5xf32> to vector<2x1xf32>
    %67 = vector.shape_cast %66 : vector<2x1xf32> to vector<2x1xf32>
    %68 = vector.broadcast %67 : vector<2x1xf32> to vector<2x3xf32>
    %cst_13 = arith.constant 1.000000e+00 : f32
    %69 = vector.broadcast %cst_13 : f32 to vector<2x3xf32>
    %70 = arith.cmpf ogt, %68, %69 : vector<2x3xf32>
    %71 = arith.select %70, %34, %41 : vector<2x3xi1>, vector<2x3xf32>
    %72 = vector.extract_strided_slice %53 {offsets = [0, 3], sizes = [2, 1], strides = [1, 1]} : vector<2x5xf32> to vector<2x1xf32>
    %73 = vector.shape_cast %72 : vector<2x1xf32> to vector<2x1xf32>
    %74 = vector.broadcast %73 : vector<2x1xf32> to vector<2x3xf32>
    %cst_14 = arith.constant 1.000000e+00 : f32
    %75 = vector.broadcast %cst_14 : f32 to vector<2x3xf32>
    %76 = arith.cmpf ogt, %74, %75 : vector<2x3xf32>
    %77 = arith.select %76, %37, %41 : vector<2x3xi1>, vector<2x3xf32>
    %78 = vector.extract_strided_slice %53 {offsets = [0, 4], sizes = [2, 1], strides = [1, 1]} : vector<2x5xf32> to vector<2x1xf32>
    %79 = vector.shape_cast %78 : vector<2x1xf32> to vector<2x1xf32>
    %80 = vector.broadcast %79 : vector<2x1xf32> to vector<2x3xf32>
    %cst_15 = arith.constant 1.000000e+00 : f32
    %81 = vector.broadcast %cst_15 : f32 to vector<2x3xf32>
    %82 = arith.cmpf ogt, %80, %81 : vector<2x3xf32>
    %83 = arith.select %82, %40, %41 : vector<2x3xi1>, vector<2x3xf32>
    %84 = arith.addf %59, %65 : vector<2x3xf32>
    %85 = arith.addf %71, %77 : vector<2x3xf32>
    %86 = arith.addf %84, %85 : vector<2x3xf32>
    %87 = arith.addf %86, %83 : vector<2x3xf32>
    %cst_16 = arith.constant 0.949999988 : f32
    %88 = vector.broadcast %cst_16 : f32 to vector<2x3xf32>
    %89 = arith.mulf %88, %43 : vector<2x3xf32>
    %90 = arith.addf %89, %87 : vector<2x3xf32>
    %cst_17 = arith.constant 1.000000e+00 : f32
    %91 = vector.broadcast %cst_17 : f32 to vector<2x3xf32>
    %92 = arith.cmpf ogt, %43, %91 : vector<2x3xf32>
    %cst_18 = arith.constant 1.000000e+00 : f32
    %cst_19 = arith.constant 0.000000e+00 : f32
    %93 = vector.broadcast %cst_18 : f32 to vector<2x3xf32>
    %94 = vector.broadcast %cst_19 : f32 to vector<2x3xf32>
    %95 = arith.select %92, %93, %94 : vector<2x3xi1>, vector<2x3xf32>
    %96 = arith.subf %90, %95 : vector<2x3xf32>
    %c0_20 = arith.constant 0 : index
    %c0_21 = arith.constant 0 : index
    %97 = vector.load %arg3[%c0_20, %c0_21] : memref<50x3xf32, #tpu.memory_space<vmem>>, vector<2x3xf32>
    tpu.vector_store %arg3[%c0_20, %c0_21], %96 {strides = array<i32>} : memref<50x3xf32, #tpu.memory_space<vmem>>, vector<2x3xf32>,
    %98 = vector.extract_strided_slice %25 {offsets = [2, 0], sizes = [2, 5], strides = [1, 1]} : vector<50x5xf32> to vector<2x5xf32>
    %cst_22 = arith.constant 0.949999988 : f32
    %99 = vector.broadcast %cst_22 : f32 to vector<2x5xf32>
    %100 = arith.mulf %99, %53 : vector<2x5xf32>
    %101 = arith.addf %100, %98 : vector<2x5xf32>
    %cst_23 = arith.constant 1.000000e+00 : f32
    %102 = vector.broadcast %cst_23 : f32 to vector<2x5xf32>
    %103 = arith.cmpf ogt, %53, %102 : vector<2x5xf32>
    %cst_24 = arith.constant 1.000000e+00 : f32
    %cst_25 = arith.constant 0.000000e+00 : f32
    %104 = vector.broadcast %cst_24 : f32 to vector<2x5xf32>
    %105 = vector.broadcast %cst_25 : f32 to vector<2x5xf32>
    %106 = arith.select %103, %104, %105 : vector<2x5xi1>, vector<2x5xf32>
    %107 = arith.subf %101, %106 : vector<2x5xf32>
    %108 = vector.extract_strided_slice %107 {offsets = [0, 0], sizes = [2, 1], strides = [1, 1]} : vector<2x5xf32> to vector<2x1xf32>
    %109 = vector.shape_cast %108 : vector<2x1xf32> to vector<2x1xf32>
    %110 = vector.broadcast %109 : vector<2x1xf32> to vector<2x3xf32>
    %cst_26 = arith.constant 1.000000e+00 : f32
    %111 = vector.broadcast %cst_26 : f32 to vector<2x3xf32>
    %112 = arith.cmpf ogt, %110, %111 : vector<2x3xf32>
    %113 = arith.select %112, %28, %41 : vector<2x3xi1>, vector<2x3xf32>
    %114 = vector.extract_strided_slice %107 {offsets = [0, 1], sizes = [2, 1], strides = [1, 1]} : vector<2x5xf32> to vector<2x1xf32>
    %115 = vector.shape_cast %114 : vector<2x1xf32> to vector<2x1xf32>
    %116 = vector.broadcast %115 : vector<2x1xf32> to vector<2x3xf32>
    %cst_27 = arith.constant 1.000000e+00 : f32
    %117 = vector.broadcast %cst_27 : f32 to vector<2x3xf32>
    %118 = arith.cmpf ogt, %116, %117 : vector<2x3xf32>
    %119 = arith.select %118, %31, %41 : vector<2x3xi1>, vector<2x3xf32>
    %120 = vector.extract_strided_slice %107 {offsets = [0, 2], sizes = [2, 1], strides = [1, 1]} : vector<2x5xf32> to vector<2x1xf32>
    %121 = vector.shape_cast %120 : vector<2x1xf32> to vector<2x1xf32>
    %122 = vector.broadcast %121 : vector<2x1xf32> to vector<2x3xf32>
    %cst_28 = arith.constant 1.000000e+00 : f32
    %123 = vector.broadcast %cst_28 : f32 to vector<2x3xf32>
    %124 = arith.cmpf ogt, %122, %123 : vector<2x3xf32>
    %125 = arith.select %124, %34, %41 : vector<2x3xi1>, vector<2x3xf32>
    %126 = vector.extract_strided_slice %107 {offsets = [0, 3], sizes = [2, 1], strides = [1, 1]} : vector<2x5xf32> to vector<2x1xf32>
    %127 = vector.shape_cast %126 : vector<2x1xf32> to vector<2x1xf32>
    %128 = vector.broadcast %127 : vector<2x1xf32> to vector<2x3xf32>
    %cst_29 = arith.constant 1.000000e+00 : f32
    %129 = vector.broadcast %cst_29 : f32 to vector<2x3xf32>
    %130 = arith.cmpf ogt, %128, %129 : vector<2x3xf32>
    %131 = arith.select %130, %37, %41 : vector<2x3xi1>, vector<2x3xf32>
    %132 = vector.extract_strided_slice %107 {offsets = [0, 4], sizes = [2, 1], strides = [1, 1]} : vector<2x5xf32> to vector<2x1xf32>
    %133 = vector.shape_cast %132 : vector<2x1xf32> to vector<2x1xf32>
    %134 = vector.broadcast %133 : vector<2x1xf32> to vector<2x3xf32>
    %cst_30 = arith.constant 1.000000e+00 : f32
    %135 = vector.broadcast %cst_30 : f32 to vector<2x3xf32>
    %136 = arith.cmpf ogt, %134, %135 : vector<2x3xf32>
    %137 = arith.select %136, %40, %41 : vector<2x3xi1>, vector<2x3xf32>
    %138 = arith.addf %113, %119 : vector<2x3xf32>
    %139 = arith.addf %125, %131 : vector<2x3xf32>
    %140 = arith.addf %138, %139 : vector<2x3xf32>
    %141 = arith.addf %140, %137 : vector<2x3xf32>
    %cst_31 = arith.constant 0.949999988 : f32
    %142 = vector.broadcast %cst_31 : f32 to vector<2x3xf32>
    %143 = arith.mulf %142, %96 : vector<2x3xf32>
    %144 = arith.addf %143, %141 : vector<2x3xf32>
    %cst_32 = arith.constant 1.000000e+00 : f32
    %145 = vector.broadcast %cst_32 : f32 to vector<2x3xf32>
    %146 = arith.cmpf ogt, %96, %145 : vector<2x3xf32>
    %cst_33 = arith.constant 1.000000e+00 : f32
    %cst_34 = arith.constant 0.000000e+00 : f32
    %147 = vector.broadcast %cst_33 : f32 to vector<2x3xf32>
    %148 = vector.broadcast %cst_34 : f32 to vector<2x3xf32>
    %149 = arith.select %146, %147, %148 : vector<2x3xi1>, vector<2x3xf32>
    %150 = arith.subf %144, %149 : vector<2x3xf32>
    %c2 = arith.constant 2 : index
    %c0_35 = arith.constant 0 : index
    %151 = vector.load %arg3[%c2, %c0_35] : memref<50x3xf32, #tpu.memory_space<vmem>>, vector<2x3xf32>
    tpu.vector_store %arg3[%c2, %c0_35], %150 {strides = array<i32>} : memref<50x3xf32, #tpu.memory_space<vmem>>, vector<2x3xf32>,
    %152 = vector.extract_strided_slice %25 {offsets = [4, 0], sizes = [2, 5], strides = [1, 1]} : vector<50x5xf32> to vector<2x5xf32>
    %cst_36 = arith.constant 0.949999988 : f32
    %153 = vector.broadcast %cst_36 : f32 to vector<2x5xf32>
    %154 = arith.mulf %153, %107 : vector<2x5xf32>
    %155 = arith.addf %154, %152 : vector<2x5xf32>
    %cst_37 = arith.constant 1.000000e+00 : f32
    %156 = vector.broadcast %cst_37 : f32 to vector<2x5xf32>
    %157 = arith.cmpf ogt, %107, %156 : vector<2x5xf32>
    %cst_38 = arith.constant 1.000000e+00 : f32
    %cst_39 = arith.constant 0.000000e+00 : f32
    %158 = vector.broadcast %cst_38 : f32 to vector<2x5xf32>
    %159 = vector.broadcast %cst_39 : f32 to vector<2x5xf32>
    %160 = arith.select %157, %158, %159 : vector<2x5xi1>, vector<2x5xf32>
    %161 = arith.subf %155, %160 : vector<2x5xf32>
    %162 = vector.extract_strided_slice %161 {offsets = [0, 0], sizes = [2, 1], strides = [1, 1]} : vector<2x5xf32> to vector<2x1xf32>
    %163 = vector.shape_cast %162 : vector<2x1xf32> to vector<2x1xf32>
    %164 = vector.broadcast %163 : vector<2x1xf32> to vector<2x3xf32>
    %cst_40 = arith.constant 1.000000e+00 : f32
    %165 = vector.broadcast %cst_40 : f32 to vector<2x3xf32>
    %166 = arith.cmpf ogt, %164, %165 : vector<2x3xf32>
    %167 = arith.select %166, %28, %41 : vector<2x3xi1>, vector<2x3xf32>
    %168 = vector.extract_strided_slice %161 {offsets = [0, 1], sizes = [2, 1], strides = [1, 1]} : vector<2x5xf32> to vector<2x1xf32>
    %169 = vector.shape_cast %168 : vector<2x1xf32> to vector<2x1xf32>
    %170 = vector.broadcast %169 : vector<2x1xf32> to vector<2x3xf32>
    %cst_41 = arith.constant 1.000000e+00 : f32
    %171 = vector.broadcast %cst_41 : f32 to vector<2x3xf32>
    %172 = arith.cmpf ogt, %170, %171 : vector<2x3xf32>
    %173 = arith.select %172, %31, %41 : vector<2x3xi1>, vector<2x3xf32>
    %174 = vector.extract_strided_slice %161 {offsets = [0, 2], sizes = [2, 1], strides = [1, 1]} : vector<2x5xf32> to vector<2x1xf32>
    %175 = vector.shape_cast %174 : vector<2x1xf32> to vector<2x1xf32>
    %176 = vector.broadcast %175 : vector<2x1xf32> to vector<2x3xf32>
    %cst_42 = arith.constant 1.000000e+00 : f32
    %177 = vector.broadcast %cst_42 : f32 to vector<2x3xf32>
    %178 = arith.cmpf ogt, %176, %177 : vector<2x3xf32>
    %179 = arith.select %178, %34, %41 : vector<2x3xi1>, vector<2x3xf32>
    %180 = vector.extract_strided_slice %161 {offsets = [0, 3], sizes = [2, 1], strides = [1, 1]} : vector<2x5xf32> to vector<2x1xf32>
    %181 = vector.shape_cast %180 : vector<2x1xf32> to vector<2x1xf32>
    %182 = vector.broadcast %181 : vector<2x1xf32> to vector<2x3xf32>
    %cst_43 = arith.constant 1.000000e+00 : f32
    %183 = vector.broadcast %cst_43 : f32 to vector<2x3xf32>
    %184 = arith.cmpf ogt, %182, %183 : vector<2x3xf32>
    %185 = arith.select %184, %37, %41 : vector<2x3xi1>, vector<2x3xf32>
    %186 = vector.extract_strided_slice %161 {offsets = [0, 4], sizes = [2, 1], strides = [1, 1]} : vector<2x5xf32> to vector<2x1xf32>
    %187 = vector.shape_cast %186 : vector<2x1xf32> to vector<2x1xf32>
    %188 = vector.broadcast %187 : vector<2x1xf32> to vector<2x3xf32>
    %cst_44 = arith.constant 1.000000e+00 : f32
    %189 = vector.broadcast %cst_44 : f32 to vector<2x3xf32>
    %190 = arith.cmpf ogt, %188, %189 : vector<2x3xf32>
    %191 = arith.select %190, %40, %41 : vector<2x3xi1>, vector<2x3xf32>
    %192 = arith.addf %167, %173 : vector<2x3xf32>
    %193 = arith.addf %179, %185 : vector<2x3xf32>
    %194 = arith.addf %192, %193 : vector<2x3xf32>
    %195 = arith.addf %194, %191 : vector<2x3xf32>
    %cst_45 = arith.constant 0.949999988 : f32
    %196 = vector.broadcast %cst_45 : f32 to vector<2x3xf32>
    %197 = arith.mulf %196, %150 : vector<2x3xf32>
    %198 = arith.addf %197, %195 : vector<2x3xf32>
    %cst_46 = arith.constant 1.000000e+00 : f32
    %199 = vector.broadcast %cst_46 : f32 to vector<2x3xf32>
    %200 = arith.cmpf ogt, %150, %199 : vector<2x3xf32>
    %cst_47 = arith.constant 1.000000e+00 : f32
    %cst_48 = arith.constant 0.000000e+00 : f32
    %201 = vector.broadcast %cst_47 : f32 to vector<2x3xf32>
    %202 = vector.broadcast %cst_48 : f32 to vector<2x3xf32>
    %203 = arith.select %200, %201, %202 : vector<2x3xi1>, vector<2x3xf32>
    %204 = arith.subf %198, %203 : vector<2x3xf32>
    %c4 = arith.constant 4 : index
    %c0_49 = arith.constant 0 : index
    %205 = vector.load %arg3[%c4, %c0_49] : memref<50x3xf32, #tpu.memory_space<vmem>>, vector<2x3xf32>
    tpu.vector_store %arg3[%c4, %c0_49], %204 {strides = array<i32>} : memref<50x3xf32, #tpu.memory_space<vmem>>, vector<2x3xf32>,
    %206 = vector.extract_strided_slice %25 {offsets = [6, 0], sizes = [2, 5], strides = [1, 1]} : vector<50x5xf32> to vector<2x5xf32>
    %cst_50 = arith.constant 0.949999988 : f32
    %207 = vector.broadcast %cst_50 : f32 to vector<2x5xf32>
    %208 = arith.mulf %207, %161 : vector<2x5xf32>
    %209 = arith.addf %208, %206 : vector<2x5xf32>
    %cst_51 = arith.constant 1.000000e+00 : f32
    %210 = vector.broadcast %cst_51 : f32 to vector<2x5xf32>
    %211 = arith.cmpf ogt, %161, %210 : vector<2x5xf32>
    %cst_52 = arith.constant 1.000000e+00 : f32
    %cst_53 = arith.constant 0.000000e+00 : f32
    %212 = vector.broadcast %cst_52 : f32 to vector<2x5xf32>
    %213 = vector.broadcast %cst_53 : f32 to vector<2x5xf32>
    %214 = arith.select %211, %212, %213 : vector<2x5xi1>, vector<2x5xf32>
    %215 = arith.subf %209, %214 : vector<2x5xf32>
    %216 = vector.extract_strided_slice %215 {offsets = [0, 0], sizes = [2, 1], strides = [1, 1]} : vector<2x5xf32> to vector<2x1xf32>
    %217 = vector.shape_cast %216 : vector<2x1xf32> to vector<2x1xf32>
    %218 = vector.broadcast %217 : vector<2x1xf32> to vector<2x3xf32>
    %cst_54 = arith.constant 1.000000e+00 : f32
    %219 = vector.broadcast %cst_54 : f32 to vector<2x3xf32>
    %220 = arith.cmpf ogt, %218, %219 : vector<2x3xf32>
    %221 = arith.select %220, %28, %41 : vector<2x3xi1>, vector<2x3xf32>
    %222 = vector.extract_strided_slice %215 {offsets = [0, 1], sizes = [2, 1], strides = [1, 1]} : vector<2x5xf32> to vector<2x1xf32>
    %223 = vector.shape_cast %222 : vector<2x1xf32> to vector<2x1xf32>
    %224 = vector.broadcast %223 : vector<2x1xf32> to vector<2x3xf32>
    %cst_55 = arith.constant 1.000000e+00 : f32
    %225 = vector.broadcast %cst_55 : f32 to vector<2x3xf32>
    %226 = arith.cmpf ogt, %224, %225 : vector<2x3xf32>
    %227 = arith.select %226, %31, %41 : vector<2x3xi1>, vector<2x3xf32>
    %228 = vector.extract_strided_slice %215 {offsets = [0, 2], sizes = [2, 1], strides = [1, 1]} : vector<2x5xf32> to vector<2x1xf32>
    %229 = vector.shape_cast %228 : vector<2x1xf32> to vector<2x1xf32>
    %230 = vector.broadcast %229 : vector<2x1xf32> to vector<2x3xf32>
    %cst_56 = arith.constant 1.000000e+00 : f32
    %231 = vector.broadcast %cst_56 : f32 to vector<2x3xf32>
    %232 = arith.cmpf ogt, %230, %231 : vector<2x3xf32>
    %233 = arith.select %232, %34, %41 : vector<2x3xi1>, vector<2x3xf32>
    %234 = vector.extract_strided_slice %215 {offsets = [0, 3], sizes = [2, 1], strides = [1, 1]} : vector<2x5xf32> to vector<2x1xf32>
    %235 = vector.shape_cast %234 : vector<2x1xf32> to vector<2x1xf32>
    %236 = vector.broadcast %235 : vector<2x1xf32> to vector<2x3xf32>
    %cst_57 = arith.constant 1.000000e+00 : f32
    %237 = vector.broadcast %cst_57 : f32 to vector<2x3xf32>
    %238 = arith.cmpf ogt, %236, %237 : vector<2x3xf32>
    %239 = arith.select %238, %37, %41 : vector<2x3xi1>, vector<2x3xf32>
    %240 = vector.extract_strided_slice %215 {offsets = [0, 4], sizes = [2, 1], strides = [1, 1]} : vector<2x5xf32> to vector<2x1xf32>
    %241 = vector.shape_cast %240 : vector<2x1xf32> to vector<2x1xf32>
    %242 = vector.broadcast %241 : vector<2x1xf32> to vector<2x3xf32>
    %cst_58 = arith.constant 1.000000e+00 : f32
    %243 = vector.broadcast %cst_58 : f32 to vector<2x3xf32>
    %244 = arith.cmpf ogt, %242, %243 : vector<2x3xf32>
    %245 = arith.select %244, %40, %41 : vector<2x3xi1>, vector<2x3xf32>
    %246 = arith.addf %221, %227 : vector<2x3xf32>
    %247 = arith.addf %233, %239 : vector<2x3xf32>
    %248 = arith.addf %246, %247 : vector<2x3xf32>
    %249 = arith.addf %248, %245 : vector<2x3xf32>
    %cst_59 = arith.constant 0.949999988 : f32
    %250 = vector.broadcast %cst_59 : f32 to vector<2x3xf32>
    %251 = arith.mulf %250, %204 : vector<2x3xf32>
    %252 = arith.addf %251, %249 : vector<2x3xf32>
    %cst_60 = arith.constant 1.000000e+00 : f32
    %253 = vector.broadcast %cst_60 : f32 to vector<2x3xf32>
    %254 = arith.cmpf ogt, %204, %253 : vector<2x3xf32>
    %cst_61 = arith.constant 1.000000e+00 : f32
    %cst_62 = arith.constant 0.000000e+00 : f32
    %255 = vector.broadcast %cst_61 : f32 to vector<2x3xf32>
    %256 = vector.broadcast %cst_62 : f32 to vector<2x3xf32>
    %257 = arith.select %254, %255, %256 : vector<2x3xi1>, vector<2x3xf32>
    %258 = arith.subf %252, %257 : vector<2x3xf32>
    %c6 = arith.constant 6 : index
    %c0_63 = arith.constant 0 : index
    %259 = vector.load %arg3[%c6, %c0_63] : memref<50x3xf32, #tpu.memory_space<vmem>>, vector<2x3xf32>
    tpu.vector_store %arg3[%c6, %c0_63], %258 {strides = array<i32>} : memref<50x3xf32, #tpu.memory_space<vmem>>, vector<2x3xf32>,
    %260 = vector.extract_strided_slice %25 {offsets = [8, 0], sizes = [2, 5], strides = [1, 1]} : vector<50x5xf32> to vector<2x5xf32>
    %cst_64 = arith.constant 0.949999988 : f32
    %261 = vector.broadcast %cst_64 : f32 to vector<2x5xf32>
    %262 = arith.mulf %261, %215 : vector<2x5xf32>
    %263 = arith.addf %262, %260 : vector<2x5xf32>
    %cst_65 = arith.constant 1.000000e+00 : f32
    %264 = vector.broadcast %cst_65 : f32 to vector<2x5xf32>
    %265 = arith.cmpf ogt, %215, %264 : vector<2x5xf32>
    %cst_66 = arith.constant 1.000000e+00 : f32
    %cst_67 = arith.constant 0.000000e+00 : f32
    %266 = vector.broadcast %cst_66 : f32 to vector<2x5xf32>
    %267 = vector.broadcast %cst_67 : f32 to vector<2x5xf32>
    %268 = arith.select %265, %266, %267 : vector<2x5xi1>, vector<2x5xf32>
    %269 = arith.subf %263, %268 : vector<2x5xf32>
    %270 = vector.extract_strided_slice %269 {offsets = [0, 0], sizes = [2, 1], strides = [1, 1]} : vector<2x5xf32> to vector<2x1xf32>
    %271 = vector.shape_cast %270 : vector<2x1xf32> to vector<2x1xf32>
    %272 = vector.broadcast %271 : vector<2x1xf32> to vector<2x3xf32>
    %cst_68 = arith.constant 1.000000e+00 : f32
    %273 = vector.broadcast %cst_68 : f32 to vector<2x3xf32>
    %274 = arith.cmpf ogt, %272, %273 : vector<2x3xf32>
    %275 = arith.select %274, %28, %41 : vector<2x3xi1>, vector<2x3xf32>
    %276 = vector.extract_strided_slice %269 {offsets = [0, 1], sizes = [2, 1], strides = [1, 1]} : vector<2x5xf32> to vector<2x1xf32>
    %277 = vector.shape_cast %276 : vector<2x1xf32> to vector<2x1xf32>
    %278 = vector.broadcast %277 : vector<2x1xf32> to vector<2x3xf32>
    %cst_69 = arith.constant 1.000000e+00 : f32
    %279 = vector.broadcast %cst_69 : f32 to vector<2x3xf32>
    %280 = arith.cmpf ogt, %278, %279 : vector<2x3xf32>
    %281 = arith.select %280, %31, %41 : vector<2x3xi1>, vector<2x3xf32>
    %282 = vector.extract_strided_slice %269 {offsets = [0, 2], sizes = [2, 1], strides = [1, 1]} : vector<2x5xf32> to vector<2x1xf32>
    %283 = vector.shape_cast %282 : vector<2x1xf32> to vector<2x1xf32>
    %284 = vector.broadcast %283 : vector<2x1xf32> to vector<2x3xf32>
    %cst_70 = arith.constant 1.000000e+00 : f32
    %285 = vector.broadcast %cst_70 : f32 to vector<2x3xf32>
    %286 = arith.cmpf ogt, %284, %285 : vector<2x3xf32>
    %287 = arith.select %286, %34, %41 : vector<2x3xi1>, vector<2x3xf32>
    %288 = vector.extract_strided_slice %269 {offsets = [0, 3], sizes = [2, 1], strides = [1, 1]} : vector<2x5xf32> to vector<2x1xf32>
    %289 = vector.shape_cast %288 : vector<2x1xf32> to vector<2x1xf32>
    %290 = vector.broadcast %289 : vector<2x1xf32> to vector<2x3xf32>
    %cst_71 = arith.constant 1.000000e+00 : f32
    %291 = vector.broadcast %cst_71 : f32 to vector<2x3xf32>
    %292 = arith.cmpf ogt, %290, %291 : vector<2x3xf32>
    %293 = arith.select %292, %37, %41 : vector<2x3xi1>, vector<2x3xf32>
    %294 = vector.extract_strided_slice %269 {offsets = [0, 4], sizes = [2, 1], strides = [1, 1]} : vector<2x5xf32> to vector<2x1xf32>
    %295 = vector.shape_cast %294 : vector<2x1xf32> to vector<2x1xf32>
    %296 = vector.broadcast %295 : vector<2x1xf32> to vector<2x3xf32>
    %cst_72 = arith.constant 1.000000e+00 : f32
    %297 = vector.broadcast %cst_72 : f32 to vector<2x3xf32>
    %298 = arith.cmpf ogt, %296, %297 : vector<2x3xf32>
    %299 = arith.select %298, %40, %41 : vector<2x3xi1>, vector<2x3xf32>
    %300 = arith.addf %275, %281 : vector<2x3xf32>
    %301 = arith.addf %287, %293 : vector<2x3xf32>
    %302 = arith.addf %300, %301 : vector<2x3xf32>
    %303 = arith.addf %302, %299 : vector<2x3xf32>
    %cst_73 = arith.constant 0.949999988 : f32
    %304 = vector.broadcast %cst_73 : f32 to vector<2x3xf32>
    %305 = arith.mulf %304, %258 : vector<2x3xf32>
    %306 = arith.addf %305, %303 : vector<2x3xf32>
    %cst_74 = arith.constant 1.000000e+00 : f32
    %307 = vector.broadcast %cst_74 : f32 to vector<2x3xf32>
    %308 = arith.cmpf ogt, %258, %307 : vector<2x3xf32>
    %cst_75 = arith.constant 1.000000e+00 : f32
    %cst_76 = arith.constant 0.000000e+00 : f32
    %309 = vector.broadcast %cst_75 : f32 to vector<2x3xf32>
    %310 = vector.broadcast %cst_76 : f32 to vector<2x3xf32>
    %311 = arith.select %308, %309, %310 : vector<2x3xi1>, vector<2x3xf32>
    %312 = arith.subf %306, %311 : vector<2x3xf32>
    %c8 = arith.constant 8 : index
    %c0_77 = arith.constant 0 : index
    %313 = vector.load %arg3[%c8, %c0_77] : memref<50x3xf32, #tpu.memory_space<vmem>>, vector<2x3xf32>
    tpu.vector_store %arg3[%c8, %c0_77], %312 {strides = array<i32>} : memref<50x3xf32, #tpu.memory_space<vmem>>, vector<2x3xf32>,
    %314 = vector.extract_strided_slice %25 {offsets = [10, 0], sizes = [2, 5], strides = [1, 1]} : vector<50x5xf32> to vector<2x5xf32>
    %cst_78 = arith.constant 0.949999988 : f32
    %315 = vector.broadcast %cst_78 : f32 to vector<2x5xf32>
    %316 = arith.mulf %315, %269 : vector<2x5xf32>
    %317 = arith.addf %316, %314 : vector<2x5xf32>
    %cst_79 = arith.constant 1.000000e+00 : f32
    %318 = vector.broadcast %cst_79 : f32 to vector<2x5xf32>
    %319 = arith.cmpf ogt, %269, %318 : vector<2x5xf32>
    %cst_80 = arith.constant 1.000000e+00 : f32
    %cst_81 = arith.constant 0.000000e+00 : f32
    %320 = vector.broadcast %cst_80 : f32 to vector<2x5xf32>
    %321 = vector.broadcast %cst_81 : f32 to vector<2x5xf32>
    %322 = arith.select %319, %320, %321 : vector<2x5xi1>, vector<2x5xf32>
    %323 = arith.subf %317, %322 : vector<2x5xf32>
    %324 = vector.extract_strided_slice %323 {offsets = [0, 0], sizes = [2, 1], strides = [1, 1]} : vector<2x5xf32> to vector<2x1xf32>
    %325 = vector.shape_cast %324 : vector<2x1xf32> to vector<2x1xf32>
    %326 = vector.broadcast %325 : vector<2x1xf32> to vector<2x3xf32>
    %cst_82 = arith.constant 1.000000e+00 : f32
    %327 = vector.broadcast %cst_82 : f32 to vector<2x3xf32>
    %328 = arith.cmpf ogt, %326, %327 : vector<2x3xf32>
    %329 = arith.select %328, %28, %41 : vector<2x3xi1>, vector<2x3xf32>
    %330 = vector.extract_strided_slice %323 {offsets = [0, 1], sizes = [2, 1], strides = [1, 1]} : vector<2x5xf32> to vector<2x1xf32>
    %331 = vector.shape_cast %330 : vector<2x1xf32> to vector<2x1xf32>
    %332 = vector.broadcast %331 : vector<2x1xf32> to vector<2x3xf32>
    %cst_83 = arith.constant 1.000000e+00 : f32
    %333 = vector.broadcast %cst_83 : f32 to vector<2x3xf32>
    %334 = arith.cmpf ogt, %332, %333 : vector<2x3xf32>
    %335 = arith.select %334, %31, %41 : vector<2x3xi1>, vector<2x3xf32>
    %336 = vector.extract_strided_slice %323 {offsets = [0, 2], sizes = [2, 1], strides = [1, 1]} : vector<2x5xf32> to vector<2x1xf32>
    %337 = vector.shape_cast %336 : vector<2x1xf32> to vector<2x1xf32>
    %338 = vector.broadcast %337 : vector<2x1xf32> to vector<2x3xf32>
    %cst_84 = arith.constant 1.000000e+00 : f32
    %339 = vector.broadcast %cst_84 : f32 to vector<2x3xf32>
    %340 = arith.cmpf ogt, %338, %339 : vector<2x3xf32>
    %341 = arith.select %340, %34, %41 : vector<2x3xi1>, vector<2x3xf32>
    %342 = vector.extract_strided_slice %323 {offsets = [0, 3], sizes = [2, 1], strides = [1, 1]} : vector<2x5xf32> to vector<2x1xf32>
    %343 = vector.shape_cast %342 : vector<2x1xf32> to vector<2x1xf32>
    %344 = vector.broadcast %343 : vector<2x1xf32> to vector<2x3xf32>
    %cst_85 = arith.constant 1.000000e+00 : f32
    %345 = vector.broadcast %cst_85 : f32 to vector<2x3xf32>
    %346 = arith.cmpf ogt, %344, %345 : vector<2x3xf32>
    %347 = arith.select %346, %37, %41 : vector<2x3xi1>, vector<2x3xf32>
    %348 = vector.extract_strided_slice %323 {offsets = [0, 4], sizes = [2, 1], strides = [1, 1]} : vector<2x5xf32> to vector<2x1xf32>
    %349 = vector.shape_cast %348 : vector<2x1xf32> to vector<2x1xf32>
    %350 = vector.broadcast %349 : vector<2x1xf32> to vector<2x3xf32>
    %cst_86 = arith.constant 1.000000e+00 : f32
    %351 = vector.broadcast %cst_86 : f32 to vector<2x3xf32>
    %352 = arith.cmpf ogt, %350, %351 : vector<2x3xf32>
    %353 = arith.select %352, %40, %41 : vector<2x3xi1>, vector<2x3xf32>
    %354 = arith.addf %329, %335 : vector<2x3xf32>
    %355 = arith.addf %341, %347 : vector<2x3xf32>
    %356 = arith.addf %354, %355 : vector<2x3xf32>
    %357 = arith.addf %356, %353 : vector<2x3xf32>
    %cst_87 = arith.constant 0.949999988 : f32
    %358 = vector.broadcast %cst_87 : f32 to vector<2x3xf32>
    %359 = arith.mulf %358, %312 : vector<2x3xf32>
    %360 = arith.addf %359, %357 : vector<2x3xf32>
    %cst_88 = arith.constant 1.000000e+00 : f32
    %361 = vector.broadcast %cst_88 : f32 to vector<2x3xf32>
    %362 = arith.cmpf ogt, %312, %361 : vector<2x3xf32>
    %cst_89 = arith.constant 1.000000e+00 : f32
    %cst_90 = arith.constant 0.000000e+00 : f32
    %363 = vector.broadcast %cst_89 : f32 to vector<2x3xf32>
    %364 = vector.broadcast %cst_90 : f32 to vector<2x3xf32>
    %365 = arith.select %362, %363, %364 : vector<2x3xi1>, vector<2x3xf32>
    %366 = arith.subf %360, %365 : vector<2x3xf32>
    %c10 = arith.constant 10 : index
    %c0_91 = arith.constant 0 : index
    %367 = vector.load %arg3[%c10, %c0_91] : memref<50x3xf32, #tpu.memory_space<vmem>>, vector<2x3xf32>
    tpu.vector_store %arg3[%c10, %c0_91], %366 {strides = array<i32>} : memref<50x3xf32, #tpu.memory_space<vmem>>, vector<2x3xf32>,
    %368 = vector.extract_strided_slice %25 {offsets = [12, 0], sizes = [2, 5], strides = [1, 1]} : vector<50x5xf32> to vector<2x5xf32>
    %cst_92 = arith.constant 0.949999988 : f32
    %369 = vector.broadcast %cst_92 : f32 to vector<2x5xf32>
    %370 = arith.mulf %369, %323 : vector<2x5xf32>
    %371 = arith.addf %370, %368 : vector<2x5xf32>
    %cst_93 = arith.constant 1.000000e+00 : f32
    %372 = vector.broadcast %cst_93 : f32 to vector<2x5xf32>
    %373 = arith.cmpf ogt, %323, %372 : vector<2x5xf32>
    %cst_94 = arith.constant 1.000000e+00 : f32
    %cst_95 = arith.constant 0.000000e+00 : f32
    %374 = vector.broadcast %cst_94 : f32 to vector<2x5xf32>
    %375 = vector.broadcast %cst_95 : f32 to vector<2x5xf32>
    %376 = arith.select %373, %374, %375 : vector<2x5xi1>, vector<2x5xf32>
    %377 = arith.subf %371, %376 : vector<2x5xf32>
    %378 = vector.extract_strided_slice %377 {offsets = [0, 0], sizes = [2, 1], strides = [1, 1]} : vector<2x5xf32> to vector<2x1xf32>
    %379 = vector.shape_cast %378 : vector<2x1xf32> to vector<2x1xf32>
    %380 = vector.broadcast %379 : vector<2x1xf32> to vector<2x3xf32>
    %cst_96 = arith.constant 1.000000e+00 : f32
    %381 = vector.broadcast %cst_96 : f32 to vector<2x3xf32>
    %382 = arith.cmpf ogt, %380, %381 : vector<2x3xf32>
    %383 = arith.select %382, %28, %41 : vector<2x3xi1>, vector<2x3xf32>
    %384 = vector.extract_strided_slice %377 {offsets = [0, 1], sizes = [2, 1], strides = [1, 1]} : vector<2x5xf32> to vector<2x1xf32>
    %385 = vector.shape_cast %384 : vector<2x1xf32> to vector<2x1xf32>
    %386 = vector.broadcast %385 : vector<2x1xf32> to vector<2x3xf32>
    %cst_97 = arith.constant 1.000000e+00 : f32
    %387 = vector.broadcast %cst_97 : f32 to vector<2x3xf32>
    %388 = arith.cmpf ogt, %386, %387 : vector<2x3xf32>
    %389 = arith.select %388, %31, %41 : vector<2x3xi1>, vector<2x3xf32>
    %390 = vector.extract_strided_slice %377 {offsets = [0, 2], sizes = [2, 1], strides = [1, 1]} : vector<2x5xf32> to vector<2x1xf32>
    %391 = vector.shape_cast %390 : vector<2x1xf32> to vector<2x1xf32>
    %392 = vector.broadcast %391 : vector<2x1xf32> to vector<2x3xf32>
    %cst_98 = arith.constant 1.000000e+00 : f32
    %393 = vector.broadcast %cst_98 : f32 to vector<2x3xf32>
    %394 = arith.cmpf ogt, %392, %393 : vector<2x3xf32>
    %395 = arith.select %394, %34, %41 : vector<2x3xi1>, vector<2x3xf32>
    %396 = vector.extract_strided_slice %377 {offsets = [0, 3], sizes = [2, 1], strides = [1, 1]} : vector<2x5xf32> to vector<2x1xf32>
    %397 = vector.shape_cast %396 : vector<2x1xf32> to vector<2x1xf32>
    %398 = vector.broadcast %397 : vector<2x1xf32> to vector<2x3xf32>
    %cst_99 = arith.constant 1.000000e+00 : f32
    %399 = vector.broadcast %cst_99 : f32 to vector<2x3xf32>
    %400 = arith.cmpf ogt, %398, %399 : vector<2x3xf32>
    %401 = arith.select %400, %37, %41 : vector<2x3xi1>, vector<2x3xf32>
    %402 = vector.extract_strided_slice %377 {offsets = [0, 4], sizes = [2, 1], strides = [1, 1]} : vector<2x5xf32> to vector<2x1xf32>
    %403 = vector.shape_cast %402 : vector<2x1xf32> to vector<2x1xf32>
    %404 = vector.broadcast %403 : vector<2x1xf32> to vector<2x3xf32>
    %cst_100 = arith.constant 1.000000e+00 : f32
    %405 = vector.broadcast %cst_100 : f32 to vector<2x3xf32>
    %406 = arith.cmpf ogt, %404, %405 : vector<2x3xf32>
    %407 = arith.select %406, %40, %41 : vector<2x3xi1>, vector<2x3xf32>
    %408 = arith.addf %383, %389 : vector<2x3xf32>
    %409 = arith.addf %395, %401 : vector<2x3xf32>
    %410 = arith.addf %408, %409 : vector<2x3xf32>
    %411 = arith.addf %410, %407 : vector<2x3xf32>
    %cst_101 = arith.constant 0.949999988 : f32
    %412 = vector.broadcast %cst_101 : f32 to vector<2x3xf32>
    %413 = arith.mulf %412, %366 : vector<2x3xf32>
    %414 = arith.addf %413, %411 : vector<2x3xf32>
    %cst_102 = arith.constant 1.000000e+00 : f32
    %415 = vector.broadcast %cst_102 : f32 to vector<2x3xf32>
    %416 = arith.cmpf ogt, %366, %415 : vector<2x3xf32>
    %cst_103 = arith.constant 1.000000e+00 : f32
    %cst_104 = arith.constant 0.000000e+00 : f32
    %417 = vector.broadcast %cst_103 : f32 to vector<2x3xf32>
    %418 = vector.broadcast %cst_104 : f32 to vector<2x3xf32>
    %419 = arith.select %416, %417, %418 : vector<2x3xi1>, vector<2x3xf32>
    %420 = arith.subf %414, %419 : vector<2x3xf32>
    %c12 = arith.constant 12 : index
    %c0_105 = arith.constant 0 : index
    %421 = vector.load %arg3[%c12, %c0_105] : memref<50x3xf32, #tpu.memory_space<vmem>>, vector<2x3xf32>
    tpu.vector_store %arg3[%c12, %c0_105], %420 {strides = array<i32>} : memref<50x3xf32, #tpu.memory_space<vmem>>, vector<2x3xf32>,
    %422 = vector.extract_strided_slice %25 {offsets = [14, 0], sizes = [2, 5], strides = [1, 1]} : vector<50x5xf32> to vector<2x5xf32>
    %cst_106 = arith.constant 0.949999988 : f32
    %423 = vector.broadcast %cst_106 : f32 to vector<2x5xf32>
    %424 = arith.mulf %423, %377 : vector<2x5xf32>
    %425 = arith.addf %424, %422 : vector<2x5xf32>
    %cst_107 = arith.constant 1.000000e+00 : f32
    %426 = vector.broadcast %cst_107 : f32 to vector<2x5xf32>
    %427 = arith.cmpf ogt, %377, %426 : vector<2x5xf32>
    %cst_108 = arith.constant 1.000000e+00 : f32
    %cst_109 = arith.constant 0.000000e+00 : f32
    %428 = vector.broadcast %cst_108 : f32 to vector<2x5xf32>
    %429 = vector.broadcast %cst_109 : f32 to vector<2x5xf32>
    %430 = arith.select %427, %428, %429 : vector<2x5xi1>, vector<2x5xf32>
    %431 = arith.subf %425, %430 : vector<2x5xf32>
    %432 = vector.extract_strided_slice %431 {offsets = [0, 0], sizes = [2, 1], strides = [1, 1]} : vector<2x5xf32> to vector<2x1xf32>
    %433 = vector.shape_cast %432 : vector<2x1xf32> to vector<2x1xf32>
    %434 = vector.broadcast %433 : vector<2x1xf32> to vector<2x3xf32>
    %cst_110 = arith.constant 1.000000e+00 : f32
    %435 = vector.broadcast %cst_110 : f32 to vector<2x3xf32>
    %436 = arith.cmpf ogt, %434, %435 : vector<2x3xf32>
    %437 = arith.select %436, %28, %41 : vector<2x3xi1>, vector<2x3xf32>
    %438 = vector.extract_strided_slice %431 {offsets = [0, 1], sizes = [2, 1], strides = [1, 1]} : vector<2x5xf32> to vector<2x1xf32>
    %439 = vector.shape_cast %438 : vector<2x1xf32> to vector<2x1xf32>
    %440 = vector.broadcast %439 : vector<2x1xf32> to vector<2x3xf32>
    %cst_111 = arith.constant 1.000000e+00 : f32
    %441 = vector.broadcast %cst_111 : f32 to vector<2x3xf32>
    %442 = arith.cmpf ogt, %440, %441 : vector<2x3xf32>
    %443 = arith.select %442, %31, %41 : vector<2x3xi1>, vector<2x3xf32>
    %444 = vector.extract_strided_slice %431 {offsets = [0, 2], sizes = [2, 1], strides = [1, 1]} : vector<2x5xf32> to vector<2x1xf32>
    %445 = vector.shape_cast %444 : vector<2x1xf32> to vector<2x1xf32>
    %446 = vector.broadcast %445 : vector<2x1xf32> to vector<2x3xf32>
    %cst_112 = arith.constant 1.000000e+00 : f32
    %447 = vector.broadcast %cst_112 : f32 to vector<2x3xf32>
    %448 = arith.cmpf ogt, %446, %447 : vector<2x3xf32>
    %449 = arith.select %448, %34, %41 : vector<2x3xi1>, vector<2x3xf32>
    %450 = vector.extract_strided_slice %431 {offsets = [0, 3], sizes = [2, 1], strides = [1, 1]} : vector<2x5xf32> to vector<2x1xf32>
    %451 = vector.shape_cast %450 : vector<2x1xf32> to vector<2x1xf32>
    %452 = vector.broadcast %451 : vector<2x1xf32> to vector<2x3xf32>
    %cst_113 = arith.constant 1.000000e+00 : f32
    %453 = vector.broadcast %cst_113 : f32 to vector<2x3xf32>
    %454 = arith.cmpf ogt, %452, %453 : vector<2x3xf32>
    %455 = arith.select %454, %37, %41 : vector<2x3xi1>, vector<2x3xf32>
    %456 = vector.extract_strided_slice %431 {offsets = [0, 4], sizes = [2, 1], strides = [1, 1]} : vector<2x5xf32> to vector<2x1xf32>
    %457 = vector.shape_cast %456 : vector<2x1xf32> to vector<2x1xf32>
    %458 = vector.broadcast %457 : vector<2x1xf32> to vector<2x3xf32>
    %cst_114 = arith.constant 1.000000e+00 : f32
    %459 = vector.broadcast %cst_114 : f32 to vector<2x3xf32>
    %460 = arith.cmpf ogt, %458, %459 : vector<2x3xf32>
    %461 = arith.select %460, %40, %41 : vector<2x3xi1>, vector<2x3xf32>
    %462 = arith.addf %437, %443 : vector<2x3xf32>
    %463 = arith.addf %449, %455 : vector<2x3xf32>
    %464 = arith.addf %462, %463 : vector<2x3xf32>
    %465 = arith.addf %464, %461 : vector<2x3xf32>
    %cst_115 = arith.constant 0.949999988 : f32
    %466 = vector.broadcast %cst_115 : f32 to vector<2x3xf32>
    %467 = arith.mulf %466, %420 : vector<2x3xf32>
    %468 = arith.addf %467, %465 : vector<2x3xf32>
    %cst_116 = arith.constant 1.000000e+00 : f32
    %469 = vector.broadcast %cst_116 : f32 to vector<2x3xf32>
    %470 = arith.cmpf ogt, %420, %469 : vector<2x3xf32>
    %cst_117 = arith.constant 1.000000e+00 : f32
    %cst_118 = arith.constant 0.000000e+00 : f32
    %471 = vector.broadcast %cst_117 : f32 to vector<2x3xf32>
    %472 = vector.broadcast %cst_118 : f32 to vector<2x3xf32>
    %473 = arith.select %470, %471, %472 : vector<2x3xi1>, vector<2x3xf32>
    %474 = arith.subf %468, %473 : vector<2x3xf32>
    %c14 = arith.constant 14 : index
    %c0_119 = arith.constant 0 : index
    %475 = vector.load %arg3[%c14, %c0_119] : memref<50x3xf32, #tpu.memory_space<vmem>>, vector<2x3xf32>
    tpu.vector_store %arg3[%c14, %c0_119], %474 {strides = array<i32>} : memref<50x3xf32, #tpu.memory_space<vmem>>, vector<2x3xf32>,
    %476 = vector.extract_strided_slice %25 {offsets = [16, 0], sizes = [2, 5], strides = [1, 1]} : vector<50x5xf32> to vector<2x5xf32>
    %cst_120 = arith.constant 0.949999988 : f32
    %477 = vector.broadcast %cst_120 : f32 to vector<2x5xf32>
    %478 = arith.mulf %477, %431 : vector<2x5xf32>
    %479 = arith.addf %478, %476 : vector<2x5xf32>
    %cst_121 = arith.constant 1.000000e+00 : f32
    %480 = vector.broadcast %cst_121 : f32 to vector<2x5xf32>
    %481 = arith.cmpf ogt, %431, %480 : vector<2x5xf32>
    %cst_122 = arith.constant 1.000000e+00 : f32
    %cst_123 = arith.constant 0.000000e+00 : f32
    %482 = vector.broadcast %cst_122 : f32 to vector<2x5xf32>
    %483 = vector.broadcast %cst_123 : f32 to vector<2x5xf32>
    %484 = arith.select %481, %482, %483 : vector<2x5xi1>, vector<2x5xf32>
    %485 = arith.subf %479, %484 : vector<2x5xf32>
    %486 = vector.extract_strided_slice %485 {offsets = [0, 0], sizes = [2, 1], strides = [1, 1]} : vector<2x5xf32> to vector<2x1xf32>
    %487 = vector.shape_cast %486 : vector<2x1xf32> to vector<2x1xf32>
    %488 = vector.broadcast %487 : vector<2x1xf32> to vector<2x3xf32>
    %cst_124 = arith.constant 1.000000e+00 : f32
    %489 = vector.broadcast %cst_124 : f32 to vector<2x3xf32>
    %490 = arith.cmpf ogt, %488, %489 : vector<2x3xf32>
    %491 = arith.select %490, %28, %41 : vector<2x3xi1>, vector<2x3xf32>
    %492 = vector.extract_strided_slice %485 {offsets = [0, 1], sizes = [2, 1], strides = [1, 1]} : vector<2x5xf32> to vector<2x1xf32>
    %493 = vector.shape_cast %492 : vector<2x1xf32> to vector<2x1xf32>
    %494 = vector.broadcast %493 : vector<2x1xf32> to vector<2x3xf32>
    %cst_125 = arith.constant 1.000000e+00 : f32
    %495 = vector.broadcast %cst_125 : f32 to vector<2x3xf32>
    %496 = arith.cmpf ogt, %494, %495 : vector<2x3xf32>
    %497 = arith.select %496, %31, %41 : vector<2x3xi1>, vector<2x3xf32>
    %498 = vector.extract_strided_slice %485 {offsets = [0, 2], sizes = [2, 1], strides = [1, 1]} : vector<2x5xf32> to vector<2x1xf32>
    %499 = vector.shape_cast %498 : vector<2x1xf32> to vector<2x1xf32>
    %500 = vector.broadcast %499 : vector<2x1xf32> to vector<2x3xf32>
    %cst_126 = arith.constant 1.000000e+00 : f32
    %501 = vector.broadcast %cst_126 : f32 to vector<2x3xf32>
    %502 = arith.cmpf ogt, %500, %501 : vector<2x3xf32>
    %503 = arith.select %502, %34, %41 : vector<2x3xi1>, vector<2x3xf32>
    %504 = vector.extract_strided_slice %485 {offsets = [0, 3], sizes = [2, 1], strides = [1, 1]} : vector<2x5xf32> to vector<2x1xf32>
    %505 = vector.shape_cast %504 : vector<2x1xf32> to vector<2x1xf32>
    %506 = vector.broadcast %505 : vector<2x1xf32> to vector<2x3xf32>
    %cst_127 = arith.constant 1.000000e+00 : f32
    %507 = vector.broadcast %cst_127 : f32 to vector<2x3xf32>
    %508 = arith.cmpf ogt, %506, %507 : vector<2x3xf32>
    %509 = arith.select %508, %37, %41 : vector<2x3xi1>, vector<2x3xf32>
    %510 = vector.extract_strided_slice %485 {offsets = [0, 4], sizes = [2, 1], strides = [1, 1]} : vector<2x5xf32> to vector<2x1xf32>
    %511 = vector.shape_cast %510 : vector<2x1xf32> to vector<2x1xf32>
    %512 = vector.broadcast %511 : vector<2x1xf32> to vector<2x3xf32>
    %cst_128 = arith.constant 1.000000e+00 : f32
    %513 = vector.broadcast %cst_128 : f32 to vector<2x3xf32>
    %514 = arith.cmpf ogt, %512, %513 : vector<2x3xf32>
    %515 = arith.select %514, %40, %41 : vector<2x3xi1>, vector<2x3xf32>
    %516 = arith.addf %491, %497 : vector<2x3xf32>
    %517 = arith.addf %503, %509 : vector<2x3xf32>
    %518 = arith.addf %516, %517 : vector<2x3xf32>
    %519 = arith.addf %518, %515 : vector<2x3xf32>
    %cst_129 = arith.constant 0.949999988 : f32
    %520 = vector.broadcast %cst_129 : f32 to vector<2x3xf32>
    %521 = arith.mulf %520, %474 : vector<2x3xf32>
    %522 = arith.addf %521, %519 : vector<2x3xf32>
    %cst_130 = arith.constant 1.000000e+00 : f32
    %523 = vector.broadcast %cst_130 : f32 to vector<2x3xf32>
    %524 = arith.cmpf ogt, %474, %523 : vector<2x3xf32>
    %cst_131 = arith.constant 1.000000e+00 : f32
    %cst_132 = arith.constant 0.000000e+00 : f32
    %525 = vector.broadcast %cst_131 : f32 to vector<2x3xf32>
    %526 = vector.broadcast %cst_132 : f32 to vector<2x3xf32>
    %527 = arith.select %524, %525, %526 : vector<2x3xi1>, vector<2x3xf32>
    %528 = arith.subf %522, %527 : vector<2x3xf32>
    %c16 = arith.constant 16 : index
    %c0_133 = arith.constant 0 : index
    %529 = vector.load %arg3[%c16, %c0_133] : memref<50x3xf32, #tpu.memory_space<vmem>>, vector<2x3xf32>
    tpu.vector_store %arg3[%c16, %c0_133], %528 {strides = array<i32>} : memref<50x3xf32, #tpu.memory_space<vmem>>, vector<2x3xf32>,
    %530 = vector.extract_strided_slice %25 {offsets = [18, 0], sizes = [2, 5], strides = [1, 1]} : vector<50x5xf32> to vector<2x5xf32>
    %cst_134 = arith.constant 0.949999988 : f32
    %531 = vector.broadcast %cst_134 : f32 to vector<2x5xf32>
    %532 = arith.mulf %531, %485 : vector<2x5xf32>
    %533 = arith.addf %532, %530 : vector<2x5xf32>
    %cst_135 = arith.constant 1.000000e+00 : f32
    %534 = vector.broadcast %cst_135 : f32 to vector<2x5xf32>
    %535 = arith.cmpf ogt, %485, %534 : vector<2x5xf32>
    %cst_136 = arith.constant 1.000000e+00 : f32
    %cst_137 = arith.constant 0.000000e+00 : f32
    %536 = vector.broadcast %cst_136 : f32 to vector<2x5xf32>
    %537 = vector.broadcast %cst_137 : f32 to vector<2x5xf32>
    %538 = arith.select %535, %536, %537 : vector<2x5xi1>, vector<2x5xf32>
    %539 = arith.subf %533, %538 : vector<2x5xf32>
    %540 = vector.extract_strided_slice %539 {offsets = [0, 0], sizes = [2, 1], strides = [1, 1]} : vector<2x5xf32> to vector<2x1xf32>
    %541 = vector.shape_cast %540 : vector<2x1xf32> to vector<2x1xf32>
    %542 = vector.broadcast %541 : vector<2x1xf32> to vector<2x3xf32>
    %cst_138 = arith.constant 1.000000e+00 : f32
    %543 = vector.broadcast %cst_138 : f32 to vector<2x3xf32>
    %544 = arith.cmpf ogt, %542, %543 : vector<2x3xf32>
    %545 = arith.select %544, %28, %41 : vector<2x3xi1>, vector<2x3xf32>
    %546 = vector.extract_strided_slice %539 {offsets = [0, 1], sizes = [2, 1], strides = [1, 1]} : vector<2x5xf32> to vector<2x1xf32>
    %547 = vector.shape_cast %546 : vector<2x1xf32> to vector<2x1xf32>
    %548 = vector.broadcast %547 : vector<2x1xf32> to vector<2x3xf32>
    %cst_139 = arith.constant 1.000000e+00 : f32
    %549 = vector.broadcast %cst_139 : f32 to vector<2x3xf32>
    %550 = arith.cmpf ogt, %548, %549 : vector<2x3xf32>
    %551 = arith.select %550, %31, %41 : vector<2x3xi1>, vector<2x3xf32>
    %552 = vector.extract_strided_slice %539 {offsets = [0, 2], sizes = [2, 1], strides = [1, 1]} : vector<2x5xf32> to vector<2x1xf32>
    %553 = vector.shape_cast %552 : vector<2x1xf32> to vector<2x1xf32>
    %554 = vector.broadcast %553 : vector<2x1xf32> to vector<2x3xf32>
    %cst_140 = arith.constant 1.000000e+00 : f32
    %555 = vector.broadcast %cst_140 : f32 to vector<2x3xf32>
    %556 = arith.cmpf ogt, %554, %555 : vector<2x3xf32>
    %557 = arith.select %556, %34, %41 : vector<2x3xi1>, vector<2x3xf32>
    %558 = vector.extract_strided_slice %539 {offsets = [0, 3], sizes = [2, 1], strides = [1, 1]} : vector<2x5xf32> to vector<2x1xf32>
    %559 = vector.shape_cast %558 : vector<2x1xf32> to vector<2x1xf32>
    %560 = vector.broadcast %559 : vector<2x1xf32> to vector<2x3xf32>
    %cst_141 = arith.constant 1.000000e+00 : f32
    %561 = vector.broadcast %cst_141 : f32 to vector<2x3xf32>
    %562 = arith.cmpf ogt, %560, %561 : vector<2x3xf32>
    %563 = arith.select %562, %37, %41 : vector<2x3xi1>, vector<2x3xf32>
    %564 = vector.extract_strided_slice %539 {offsets = [0, 4], sizes = [2, 1], strides = [1, 1]} : vector<2x5xf32> to vector<2x1xf32>
    %565 = vector.shape_cast %564 : vector<2x1xf32> to vector<2x1xf32>
    %566 = vector.broadcast %565 : vector<2x1xf32> to vector<2x3xf32>
    %cst_142 = arith.constant 1.000000e+00 : f32
    %567 = vector.broadcast %cst_142 : f32 to vector<2x3xf32>
    %568 = arith.cmpf ogt, %566, %567 : vector<2x3xf32>
    %569 = arith.select %568, %40, %41 : vector<2x3xi1>, vector<2x3xf32>
    %570 = arith.addf %545, %551 : vector<2x3xf32>
    %571 = arith.addf %557, %563 : vector<2x3xf32>
    %572 = arith.addf %570, %571 : vector<2x3xf32>
    %573 = arith.addf %572, %569 : vector<2x3xf32>
    %cst_143 = arith.constant 0.949999988 : f32
    %574 = vector.broadcast %cst_143 : f32 to vector<2x3xf32>
    %575 = arith.mulf %574, %528 : vector<2x3xf32>
    %576 = arith.addf %575, %573 : vector<2x3xf32>
    %cst_144 = arith.constant 1.000000e+00 : f32
    %577 = vector.broadcast %cst_144 : f32 to vector<2x3xf32>
    %578 = arith.cmpf ogt, %528, %577 : vector<2x3xf32>
    %cst_145 = arith.constant 1.000000e+00 : f32
    %cst_146 = arith.constant 0.000000e+00 : f32
    %579 = vector.broadcast %cst_145 : f32 to vector<2x3xf32>
    %580 = vector.broadcast %cst_146 : f32 to vector<2x3xf32>
    %581 = arith.select %578, %579, %580 : vector<2x3xi1>, vector<2x3xf32>
    %582 = arith.subf %576, %581 : vector<2x3xf32>
    %c18 = arith.constant 18 : index
    %c0_147 = arith.constant 0 : index
    %583 = vector.load %arg3[%c18, %c0_147] : memref<50x3xf32, #tpu.memory_space<vmem>>, vector<2x3xf32>
    tpu.vector_store %arg3[%c18, %c0_147], %582 {strides = array<i32>} : memref<50x3xf32, #tpu.memory_space<vmem>>, vector<2x3xf32>,
    %584 = vector.extract_strided_slice %25 {offsets = [20, 0], sizes = [2, 5], strides = [1, 1]} : vector<50x5xf32> to vector<2x5xf32>
    %cst_148 = arith.constant 0.949999988 : f32
    %585 = vector.broadcast %cst_148 : f32 to vector<2x5xf32>
    %586 = arith.mulf %585, %539 : vector<2x5xf32>
    %587 = arith.addf %586, %584 : vector<2x5xf32>
    %cst_149 = arith.constant 1.000000e+00 : f32
    %588 = vector.broadcast %cst_149 : f32 to vector<2x5xf32>
    %589 = arith.cmpf ogt, %539, %588 : vector<2x5xf32>
    %cst_150 = arith.constant 1.000000e+00 : f32
    %cst_151 = arith.constant 0.000000e+00 : f32
    %590 = vector.broadcast %cst_150 : f32 to vector<2x5xf32>
    %591 = vector.broadcast %cst_151 : f32 to vector<2x5xf32>
    %592 = arith.select %589, %590, %591 : vector<2x5xi1>, vector<2x5xf32>
    %593 = arith.subf %587, %592 : vector<2x5xf32>
    %594 = vector.extract_strided_slice %593 {offsets = [0, 0], sizes = [2, 1], strides = [1, 1]} : vector<2x5xf32> to vector<2x1xf32>
    %595 = vector.shape_cast %594 : vector<2x1xf32> to vector<2x1xf32>
    %596 = vector.broadcast %595 : vector<2x1xf32> to vector<2x3xf32>
    %cst_152 = arith.constant 1.000000e+00 : f32
    %597 = vector.broadcast %cst_152 : f32 to vector<2x3xf32>
    %598 = arith.cmpf ogt, %596, %597 : vector<2x3xf32>
    %599 = arith.select %598, %28, %41 : vector<2x3xi1>, vector<2x3xf32>
    %600 = vector.extract_strided_slice %593 {offsets = [0, 1], sizes = [2, 1], strides = [1, 1]} : vector<2x5xf32> to vector<2x1xf32>
    %601 = vector.shape_cast %600 : vector<2x1xf32> to vector<2x1xf32>
    %602 = vector.broadcast %601 : vector<2x1xf32> to vector<2x3xf32>
    %cst_153 = arith.constant 1.000000e+00 : f32
    %603 = vector.broadcast %cst_153 : f32 to vector<2x3xf32>
    %604 = arith.cmpf ogt, %602, %603 : vector<2x3xf32>
    %605 = arith.select %604, %31, %41 : vector<2x3xi1>, vector<2x3xf32>
    %606 = vector.extract_strided_slice %593 {offsets = [0, 2], sizes = [2, 1], strides = [1, 1]} : vector<2x5xf32> to vector<2x1xf32>
    %607 = vector.shape_cast %606 : vector<2x1xf32> to vector<2x1xf32>
    %608 = vector.broadcast %607 : vector<2x1xf32> to vector<2x3xf32>
    %cst_154 = arith.constant 1.000000e+00 : f32
    %609 = vector.broadcast %cst_154 : f32 to vector<2x3xf32>
    %610 = arith.cmpf ogt, %608, %609 : vector<2x3xf32>
    %611 = arith.select %610, %34, %41 : vector<2x3xi1>, vector<2x3xf32>
    %612 = vector.extract_strided_slice %593 {offsets = [0, 3], sizes = [2, 1], strides = [1, 1]} : vector<2x5xf32> to vector<2x1xf32>
    %613 = vector.shape_cast %612 : vector<2x1xf32> to vector<2x1xf32>
    %614 = vector.broadcast %613 : vector<2x1xf32> to vector<2x3xf32>
    %cst_155 = arith.constant 1.000000e+00 : f32
    %615 = vector.broadcast %cst_155 : f32 to vector<2x3xf32>
    %616 = arith.cmpf ogt, %614, %615 : vector<2x3xf32>
    %617 = arith.select %616, %37, %41 : vector<2x3xi1>, vector<2x3xf32>
    %618 = vector.extract_strided_slice %593 {offsets = [0, 4], sizes = [2, 1], strides = [1, 1]} : vector<2x5xf32> to vector<2x1xf32>
    %619 = vector.shape_cast %618 : vector<2x1xf32> to vector<2x1xf32>
    %620 = vector.broadcast %619 : vector<2x1xf32> to vector<2x3xf32>
    %cst_156 = arith.constant 1.000000e+00 : f32
    %621 = vector.broadcast %cst_156 : f32 to vector<2x3xf32>
    %622 = arith.cmpf ogt, %620, %621 : vector<2x3xf32>
    %623 = arith.select %622, %40, %41 : vector<2x3xi1>, vector<2x3xf32>
    %624 = arith.addf %599, %605 : vector<2x3xf32>
    %625 = arith.addf %611, %617 : vector<2x3xf32>
    %626 = arith.addf %624, %625 : vector<2x3xf32>
    %627 = arith.addf %626, %623 : vector<2x3xf32>
    %cst_157 = arith.constant 0.949999988 : f32
    %628 = vector.broadcast %cst_157 : f32 to vector<2x3xf32>
    %629 = arith.mulf %628, %582 : vector<2x3xf32>
    %630 = arith.addf %629, %627 : vector<2x3xf32>
    %cst_158 = arith.constant 1.000000e+00 : f32
    %631 = vector.broadcast %cst_158 : f32 to vector<2x3xf32>
    %632 = arith.cmpf ogt, %582, %631 : vector<2x3xf32>
    %cst_159 = arith.constant 1.000000e+00 : f32
    %cst_160 = arith.constant 0.000000e+00 : f32
    %633 = vector.broadcast %cst_159 : f32 to vector<2x3xf32>
    %634 = vector.broadcast %cst_160 : f32 to vector<2x3xf32>
    %635 = arith.select %632, %633, %634 : vector<2x3xi1>, vector<2x3xf32>
    %636 = arith.subf %630, %635 : vector<2x3xf32>
    %c20 = arith.constant 20 : index
    %c0_161 = arith.constant 0 : index
    %637 = vector.load %arg3[%c20, %c0_161] : memref<50x3xf32, #tpu.memory_space<vmem>>, vector<2x3xf32>
    tpu.vector_store %arg3[%c20, %c0_161], %636 {strides = array<i32>} : memref<50x3xf32, #tpu.memory_space<vmem>>, vector<2x3xf32>,
    %638 = vector.extract_strided_slice %25 {offsets = [22, 0], sizes = [2, 5], strides = [1, 1]} : vector<50x5xf32> to vector<2x5xf32>
    %cst_162 = arith.constant 0.949999988 : f32
    %639 = vector.broadcast %cst_162 : f32 to vector<2x5xf32>
    %640 = arith.mulf %639, %593 : vector<2x5xf32>
    %641 = arith.addf %640, %638 : vector<2x5xf32>
    %cst_163 = arith.constant 1.000000e+00 : f32
    %642 = vector.broadcast %cst_163 : f32 to vector<2x5xf32>
    %643 = arith.cmpf ogt, %593, %642 : vector<2x5xf32>
    %cst_164 = arith.constant 1.000000e+00 : f32
    %cst_165 = arith.constant 0.000000e+00 : f32
    %644 = vector.broadcast %cst_164 : f32 to vector<2x5xf32>
    %645 = vector.broadcast %cst_165 : f32 to vector<2x5xf32>
    %646 = arith.select %643, %644, %645 : vector<2x5xi1>, vector<2x5xf32>
    %647 = arith.subf %641, %646 : vector<2x5xf32>
    %648 = vector.extract_strided_slice %647 {offsets = [0, 0], sizes = [2, 1], strides = [1, 1]} : vector<2x5xf32> to vector<2x1xf32>
    %649 = vector.shape_cast %648 : vector<2x1xf32> to vector<2x1xf32>
    %650 = vector.broadcast %649 : vector<2x1xf32> to vector<2x3xf32>
    %cst_166 = arith.constant 1.000000e+00 : f32
    %651 = vector.broadcast %cst_166 : f32 to vector<2x3xf32>
    %652 = arith.cmpf ogt, %650, %651 : vector<2x3xf32>
    %653 = arith.select %652, %28, %41 : vector<2x3xi1>, vector<2x3xf32>
    %654 = vector.extract_strided_slice %647 {offsets = [0, 1], sizes = [2, 1], strides = [1, 1]} : vector<2x5xf32> to vector<2x1xf32>
    %655 = vector.shape_cast %654 : vector<2x1xf32> to vector<2x1xf32>
    %656 = vector.broadcast %655 : vector<2x1xf32> to vector<2x3xf32>
    %cst_167 = arith.constant 1.000000e+00 : f32
    %657 = vector.broadcast %cst_167 : f32 to vector<2x3xf32>
    %658 = arith.cmpf ogt, %656, %657 : vector<2x3xf32>
    %659 = arith.select %658, %31, %41 : vector<2x3xi1>, vector<2x3xf32>
    %660 = vector.extract_strided_slice %647 {offsets = [0, 2], sizes = [2, 1], strides = [1, 1]} : vector<2x5xf32> to vector<2x1xf32>
    %661 = vector.shape_cast %660 : vector<2x1xf32> to vector<2x1xf32>
    %662 = vector.broadcast %661 : vector<2x1xf32> to vector<2x3xf32>
    %cst_168 = arith.constant 1.000000e+00 : f32
    %663 = vector.broadcast %cst_168 : f32 to vector<2x3xf32>
    %664 = arith.cmpf ogt, %662, %663 : vector<2x3xf32>
    %665 = arith.select %664, %34, %41 : vector<2x3xi1>, vector<2x3xf32>
    %666 = vector.extract_strided_slice %647 {offsets = [0, 3], sizes = [2, 1], strides = [1, 1]} : vector<2x5xf32> to vector<2x1xf32>
    %667 = vector.shape_cast %666 : vector<2x1xf32> to vector<2x1xf32>
    %668 = vector.broadcast %667 : vector<2x1xf32> to vector<2x3xf32>
    %cst_169 = arith.constant 1.000000e+00 : f32
    %669 = vector.broadcast %cst_169 : f32 to vector<2x3xf32>
    %670 = arith.cmpf ogt, %668, %669 : vector<2x3xf32>
    %671 = arith.select %670, %37, %41 : vector<2x3xi1>, vector<2x3xf32>
    %672 = vector.extract_strided_slice %647 {offsets = [0, 4], sizes = [2, 1], strides = [1, 1]} : vector<2x5xf32> to vector<2x1xf32>
    %673 = vector.shape_cast %672 : vector<2x1xf32> to vector<2x1xf32>
    %674 = vector.broadcast %673 : vector<2x1xf32> to vector<2x3xf32>
    %cst_170 = arith.constant 1.000000e+00 : f32
    %675 = vector.broadcast %cst_170 : f32 to vector<2x3xf32>
    %676 = arith.cmpf ogt, %674, %675 : vector<2x3xf32>
    %677 = arith.select %676, %40, %41 : vector<2x3xi1>, vector<2x3xf32>
    %678 = arith.addf %653, %659 : vector<2x3xf32>
    %679 = arith.addf %665, %671 : vector<2x3xf32>
    %680 = arith.addf %678, %679 : vector<2x3xf32>
    %681 = arith.addf %680, %677 : vector<2x3xf32>
    %cst_171 = arith.constant 0.949999988 : f32
    %682 = vector.broadcast %cst_171 : f32 to vector<2x3xf32>
    %683 = arith.mulf %682, %636 : vector<2x3xf32>
    %684 = arith.addf %683, %681 : vector<2x3xf32>
    %cst_172 = arith.constant 1.000000e+00 : f32
    %685 = vector.broadcast %cst_172 : f32 to vector<2x3xf32>
    %686 = arith.cmpf ogt, %636, %685 : vector<2x3xf32>
    %cst_173 = arith.constant 1.000000e+00 : f32
    %cst_174 = arith.constant 0.000000e+00 : f32
    %687 = vector.broadcast %cst_173 : f32 to vector<2x3xf32>
    %688 = vector.broadcast %cst_174 : f32 to vector<2x3xf32>
    %689 = arith.select %686, %687, %688 : vector<2x3xi1>, vector<2x3xf32>
    %690 = arith.subf %684, %689 : vector<2x3xf32>
    %c22 = arith.constant 22 : index
    %c0_175 = arith.constant 0 : index
    %691 = vector.load %arg3[%c22, %c0_175] : memref<50x3xf32, #tpu.memory_space<vmem>>, vector<2x3xf32>
    tpu.vector_store %arg3[%c22, %c0_175], %690 {strides = array<i32>} : memref<50x3xf32, #tpu.memory_space<vmem>>, vector<2x3xf32>,
    %692 = vector.extract_strided_slice %25 {offsets = [24, 0], sizes = [2, 5], strides = [1, 1]} : vector<50x5xf32> to vector<2x5xf32>
    %cst_176 = arith.constant 0.949999988 : f32
    %693 = vector.broadcast %cst_176 : f32 to vector<2x5xf32>
    %694 = arith.mulf %693, %647 : vector<2x5xf32>
    %695 = arith.addf %694, %692 : vector<2x5xf32>
    %cst_177 = arith.constant 1.000000e+00 : f32
    %696 = vector.broadcast %cst_177 : f32 to vector<2x5xf32>
    %697 = arith.cmpf ogt, %647, %696 : vector<2x5xf32>
    %cst_178 = arith.constant 1.000000e+00 : f32
    %cst_179 = arith.constant 0.000000e+00 : f32
    %698 = vector.broadcast %cst_178 : f32 to vector<2x5xf32>
    %699 = vector.broadcast %cst_179 : f32 to vector<2x5xf32>
    %700 = arith.select %697, %698, %699 : vector<2x5xi1>, vector<2x5xf32>
    %701 = arith.subf %695, %700 : vector<2x5xf32>
    %702 = vector.extract_strided_slice %701 {offsets = [0, 0], sizes = [2, 1], strides = [1, 1]} : vector<2x5xf32> to vector<2x1xf32>
    %703 = vector.shape_cast %702 : vector<2x1xf32> to vector<2x1xf32>
    %704 = vector.broadcast %703 : vector<2x1xf32> to vector<2x3xf32>
    %cst_180 = arith.constant 1.000000e+00 : f32
    %705 = vector.broadcast %cst_180 : f32 to vector<2x3xf32>
    %706 = arith.cmpf ogt, %704, %705 : vector<2x3xf32>
    %707 = arith.select %706, %28, %41 : vector<2x3xi1>, vector<2x3xf32>
    %708 = vector.extract_strided_slice %701 {offsets = [0, 1], sizes = [2, 1], strides = [1, 1]} : vector<2x5xf32> to vector<2x1xf32>
    %709 = vector.shape_cast %708 : vector<2x1xf32> to vector<2x1xf32>
    %710 = vector.broadcast %709 : vector<2x1xf32> to vector<2x3xf32>
    %cst_181 = arith.constant 1.000000e+00 : f32
    %711 = vector.broadcast %cst_181 : f32 to vector<2x3xf32>
    %712 = arith.cmpf ogt, %710, %711 : vector<2x3xf32>
    %713 = arith.select %712, %31, %41 : vector<2x3xi1>, vector<2x3xf32>
    %714 = vector.extract_strided_slice %701 {offsets = [0, 2], sizes = [2, 1], strides = [1, 1]} : vector<2x5xf32> to vector<2x1xf32>
    %715 = vector.shape_cast %714 : vector<2x1xf32> to vector<2x1xf32>
    %716 = vector.broadcast %715 : vector<2x1xf32> to vector<2x3xf32>
    %cst_182 = arith.constant 1.000000e+00 : f32
    %717 = vector.broadcast %cst_182 : f32 to vector<2x3xf32>
    %718 = arith.cmpf ogt, %716, %717 : vector<2x3xf32>
    %719 = arith.select %718, %34, %41 : vector<2x3xi1>, vector<2x3xf32>
    %720 = vector.extract_strided_slice %701 {offsets = [0, 3], sizes = [2, 1], strides = [1, 1]} : vector<2x5xf32> to vector<2x1xf32>
    %721 = vector.shape_cast %720 : vector<2x1xf32> to vector<2x1xf32>
    %722 = vector.broadcast %721 : vector<2x1xf32> to vector<2x3xf32>
    %cst_183 = arith.constant 1.000000e+00 : f32
    %723 = vector.broadcast %cst_183 : f32 to vector<2x3xf32>
    %724 = arith.cmpf ogt, %722, %723 : vector<2x3xf32>
    %725 = arith.select %724, %37, %41 : vector<2x3xi1>, vector<2x3xf32>
    %726 = vector.extract_strided_slice %701 {offsets = [0, 4], sizes = [2, 1], strides = [1, 1]} : vector<2x5xf32> to vector<2x1xf32>
    %727 = vector.shape_cast %726 : vector<2x1xf32> to vector<2x1xf32>
    %728 = vector.broadcast %727 : vector<2x1xf32> to vector<2x3xf32>
    %cst_184 = arith.constant 1.000000e+00 : f32
    %729 = vector.broadcast %cst_184 : f32 to vector<2x3xf32>
    %730 = arith.cmpf ogt, %728, %729 : vector<2x3xf32>
    %731 = arith.select %730, %40, %41 : vector<2x3xi1>, vector<2x3xf32>
    %732 = arith.addf %707, %713 : vector<2x3xf32>
    %733 = arith.addf %719, %725 : vector<2x3xf32>
    %734 = arith.addf %732, %733 : vector<2x3xf32>
    %735 = arith.addf %734, %731 : vector<2x3xf32>
    %cst_185 = arith.constant 0.949999988 : f32
    %736 = vector.broadcast %cst_185 : f32 to vector<2x3xf32>
    %737 = arith.mulf %736, %690 : vector<2x3xf32>
    %738 = arith.addf %737, %735 : vector<2x3xf32>
    %cst_186 = arith.constant 1.000000e+00 : f32
    %739 = vector.broadcast %cst_186 : f32 to vector<2x3xf32>
    %740 = arith.cmpf ogt, %690, %739 : vector<2x3xf32>
    %cst_187 = arith.constant 1.000000e+00 : f32
    %cst_188 = arith.constant 0.000000e+00 : f32
    %741 = vector.broadcast %cst_187 : f32 to vector<2x3xf32>
    %742 = vector.broadcast %cst_188 : f32 to vector<2x3xf32>
    %743 = arith.select %740, %741, %742 : vector<2x3xi1>, vector<2x3xf32>
    %744 = arith.subf %738, %743 : vector<2x3xf32>
    %c24 = arith.constant 24 : index
    %c0_189 = arith.constant 0 : index
    %745 = vector.load %arg3[%c24, %c0_189] : memref<50x3xf32, #tpu.memory_space<vmem>>, vector<2x3xf32>
    tpu.vector_store %arg3[%c24, %c0_189], %744 {strides = array<i32>} : memref<50x3xf32, #tpu.memory_space<vmem>>, vector<2x3xf32>,
    %746 = vector.extract_strided_slice %25 {offsets = [26, 0], sizes = [2, 5], strides = [1, 1]} : vector<50x5xf32> to vector<2x5xf32>
    %cst_190 = arith.constant 0.949999988 : f32
    %747 = vector.broadcast %cst_190 : f32 to vector<2x5xf32>
    %748 = arith.mulf %747, %701 : vector<2x5xf32>
    %749 = arith.addf %748, %746 : vector<2x5xf32>
    %cst_191 = arith.constant 1.000000e+00 : f32
    %750 = vector.broadcast %cst_191 : f32 to vector<2x5xf32>
    %751 = arith.cmpf ogt, %701, %750 : vector<2x5xf32>
    %cst_192 = arith.constant 1.000000e+00 : f32
    %cst_193 = arith.constant 0.000000e+00 : f32
    %752 = vector.broadcast %cst_192 : f32 to vector<2x5xf32>
    %753 = vector.broadcast %cst_193 : f32 to vector<2x5xf32>
    %754 = arith.select %751, %752, %753 : vector<2x5xi1>, vector<2x5xf32>
    %755 = arith.subf %749, %754 : vector<2x5xf32>
    %756 = vector.extract_strided_slice %755 {offsets = [0, 0], sizes = [2, 1], strides = [1, 1]} : vector<2x5xf32> to vector<2x1xf32>
    %757 = vector.shape_cast %756 : vector<2x1xf32> to vector<2x1xf32>
    %758 = vector.broadcast %757 : vector<2x1xf32> to vector<2x3xf32>
    %cst_194 = arith.constant 1.000000e+00 : f32
    %759 = vector.broadcast %cst_194 : f32 to vector<2x3xf32>
    %760 = arith.cmpf ogt, %758, %759 : vector<2x3xf32>
    %761 = arith.select %760, %28, %41 : vector<2x3xi1>, vector<2x3xf32>
    %762 = vector.extract_strided_slice %755 {offsets = [0, 1], sizes = [2, 1], strides = [1, 1]} : vector<2x5xf32> to vector<2x1xf32>
    %763 = vector.shape_cast %762 : vector<2x1xf32> to vector<2x1xf32>
    %764 = vector.broadcast %763 : vector<2x1xf32> to vector<2x3xf32>
    %cst_195 = arith.constant 1.000000e+00 : f32
    %765 = vector.broadcast %cst_195 : f32 to vector<2x3xf32>
    %766 = arith.cmpf ogt, %764, %765 : vector<2x3xf32>
    %767 = arith.select %766, %31, %41 : vector<2x3xi1>, vector<2x3xf32>
    %768 = vector.extract_strided_slice %755 {offsets = [0, 2], sizes = [2, 1], strides = [1, 1]} : vector<2x5xf32> to vector<2x1xf32>
    %769 = vector.shape_cast %768 : vector<2x1xf32> to vector<2x1xf32>
    %770 = vector.broadcast %769 : vector<2x1xf32> to vector<2x3xf32>
    %cst_196 = arith.constant 1.000000e+00 : f32
    %771 = vector.broadcast %cst_196 : f32 to vector<2x3xf32>
    %772 = arith.cmpf ogt, %770, %771 : vector<2x3xf32>
    %773 = arith.select %772, %34, %41 : vector<2x3xi1>, vector<2x3xf32>
    %774 = vector.extract_strided_slice %755 {offsets = [0, 3], sizes = [2, 1], strides = [1, 1]} : vector<2x5xf32> to vector<2x1xf32>
    %775 = vector.shape_cast %774 : vector<2x1xf32> to vector<2x1xf32>
    %776 = vector.broadcast %775 : vector<2x1xf32> to vector<2x3xf32>
    %cst_197 = arith.constant 1.000000e+00 : f32
    %777 = vector.broadcast %cst_197 : f32 to vector<2x3xf32>
    %778 = arith.cmpf ogt, %776, %777 : vector<2x3xf32>
    %779 = arith.select %778, %37, %41 : vector<2x3xi1>, vector<2x3xf32>
    %780 = vector.extract_strided_slice %755 {offsets = [0, 4], sizes = [2, 1], strides = [1, 1]} : vector<2x5xf32> to vector<2x1xf32>
    %781 = vector.shape_cast %780 : vector<2x1xf32> to vector<2x1xf32>
    %782 = vector.broadcast %781 : vector<2x1xf32> to vector<2x3xf32>
    %cst_198 = arith.constant 1.000000e+00 : f32
    %783 = vector.broadcast %cst_198 : f32 to vector<2x3xf32>
    %784 = arith.cmpf ogt, %782, %783 : vector<2x3xf32>
    %785 = arith.select %784, %40, %41 : vector<2x3xi1>, vector<2x3xf32>
    %786 = arith.addf %761, %767 : vector<2x3xf32>
    %787 = arith.addf %773, %779 : vector<2x3xf32>
    %788 = arith.addf %786, %787 : vector<2x3xf32>
    %789 = arith.addf %788, %785 : vector<2x3xf32>
    %cst_199 = arith.constant 0.949999988 : f32
    %790 = vector.broadcast %cst_199 : f32 to vector<2x3xf32>
    %791 = arith.mulf %790, %744 : vector<2x3xf32>
    %792 = arith.addf %791, %789 : vector<2x3xf32>
    %cst_200 = arith.constant 1.000000e+00 : f32
    %793 = vector.broadcast %cst_200 : f32 to vector<2x3xf32>
    %794 = arith.cmpf ogt, %744, %793 : vector<2x3xf32>
    %cst_201 = arith.constant 1.000000e+00 : f32
    %cst_202 = arith.constant 0.000000e+00 : f32
    %795 = vector.broadcast %cst_201 : f32 to vector<2x3xf32>
    %796 = vector.broadcast %cst_202 : f32 to vector<2x3xf32>
    %797 = arith.select %794, %795, %796 : vector<2x3xi1>, vector<2x3xf32>
    %798 = arith.subf %792, %797 : vector<2x3xf32>
    %c26 = arith.constant 26 : index
    %c0_203 = arith.constant 0 : index
    %799 = vector.load %arg3[%c26, %c0_203] : memref<50x3xf32, #tpu.memory_space<vmem>>, vector<2x3xf32>
    tpu.vector_store %arg3[%c26, %c0_203], %798 {strides = array<i32>} : memref<50x3xf32, #tpu.memory_space<vmem>>, vector<2x3xf32>,
    %800 = vector.extract_strided_slice %25 {offsets = [28, 0], sizes = [2, 5], strides = [1, 1]} : vector<50x5xf32> to vector<2x5xf32>
    %cst_204 = arith.constant 0.949999988 : f32
    %801 = vector.broadcast %cst_204 : f32 to vector<2x5xf32>
    %802 = arith.mulf %801, %755 : vector<2x5xf32>
    %803 = arith.addf %802, %800 : vector<2x5xf32>
    %cst_205 = arith.constant 1.000000e+00 : f32
    %804 = vector.broadcast %cst_205 : f32 to vector<2x5xf32>
    %805 = arith.cmpf ogt, %755, %804 : vector<2x5xf32>
    %cst_206 = arith.constant 1.000000e+00 : f32
    %cst_207 = arith.constant 0.000000e+00 : f32
    %806 = vector.broadcast %cst_206 : f32 to vector<2x5xf32>
    %807 = vector.broadcast %cst_207 : f32 to vector<2x5xf32>
    %808 = arith.select %805, %806, %807 : vector<2x5xi1>, vector<2x5xf32>
    %809 = arith.subf %803, %808 : vector<2x5xf32>
    %810 = vector.extract_strided_slice %809 {offsets = [0, 0], sizes = [2, 1], strides = [1, 1]} : vector<2x5xf32> to vector<2x1xf32>
    %811 = vector.shape_cast %810 : vector<2x1xf32> to vector<2x1xf32>
    %812 = vector.broadcast %811 : vector<2x1xf32> to vector<2x3xf32>
    %cst_208 = arith.constant 1.000000e+00 : f32
    %813 = vector.broadcast %cst_208 : f32 to vector<2x3xf32>
    %814 = arith.cmpf ogt, %812, %813 : vector<2x3xf32>
    %815 = arith.select %814, %28, %41 : vector<2x3xi1>, vector<2x3xf32>
    %816 = vector.extract_strided_slice %809 {offsets = [0, 1], sizes = [2, 1], strides = [1, 1]} : vector<2x5xf32> to vector<2x1xf32>
    %817 = vector.shape_cast %816 : vector<2x1xf32> to vector<2x1xf32>
    %818 = vector.broadcast %817 : vector<2x1xf32> to vector<2x3xf32>
    %cst_209 = arith.constant 1.000000e+00 : f32
    %819 = vector.broadcast %cst_209 : f32 to vector<2x3xf32>
    %820 = arith.cmpf ogt, %818, %819 : vector<2x3xf32>
    %821 = arith.select %820, %31, %41 : vector<2x3xi1>, vector<2x3xf32>
    %822 = vector.extract_strided_slice %809 {offsets = [0, 2], sizes = [2, 1], strides = [1, 1]} : vector<2x5xf32> to vector<2x1xf32>
    %823 = vector.shape_cast %822 : vector<2x1xf32> to vector<2x1xf32>
    %824 = vector.broadcast %823 : vector<2x1xf32> to vector<2x3xf32>
    %cst_210 = arith.constant 1.000000e+00 : f32
    %825 = vector.broadcast %cst_210 : f32 to vector<2x3xf32>
    %826 = arith.cmpf ogt, %824, %825 : vector<2x3xf32>
    %827 = arith.select %826, %34, %41 : vector<2x3xi1>, vector<2x3xf32>
    %828 = vector.extract_strided_slice %809 {offsets = [0, 3], sizes = [2, 1], strides = [1, 1]} : vector<2x5xf32> to vector<2x1xf32>
    %829 = vector.shape_cast %828 : vector<2x1xf32> to vector<2x1xf32>
    %830 = vector.broadcast %829 : vector<2x1xf32> to vector<2x3xf32>
    %cst_211 = arith.constant 1.000000e+00 : f32
    %831 = vector.broadcast %cst_211 : f32 to vector<2x3xf32>
    %832 = arith.cmpf ogt, %830, %831 : vector<2x3xf32>
    %833 = arith.select %832, %37, %41 : vector<2x3xi1>, vector<2x3xf32>
    %834 = vector.extract_strided_slice %809 {offsets = [0, 4], sizes = [2, 1], strides = [1, 1]} : vector<2x5xf32> to vector<2x1xf32>
    %835 = vector.shape_cast %834 : vector<2x1xf32> to vector<2x1xf32>
    %836 = vector.broadcast %835 : vector<2x1xf32> to vector<2x3xf32>
    %cst_212 = arith.constant 1.000000e+00 : f32
    %837 = vector.broadcast %cst_212 : f32 to vector<2x3xf32>
    %838 = arith.cmpf ogt, %836, %837 : vector<2x3xf32>
    %839 = arith.select %838, %40, %41 : vector<2x3xi1>, vector<2x3xf32>
    %840 = arith.addf %815, %821 : vector<2x3xf32>
    %841 = arith.addf %827, %833 : vector<2x3xf32>
    %842 = arith.addf %840, %841 : vector<2x3xf32>
    %843 = arith.addf %842, %839 : vector<2x3xf32>
    %cst_213 = arith.constant 0.949999988 : f32
    %844 = vector.broadcast %cst_213 : f32 to vector<2x3xf32>
    %845 = arith.mulf %844, %798 : vector<2x3xf32>
    %846 = arith.addf %845, %843 : vector<2x3xf32>
    %cst_214 = arith.constant 1.000000e+00 : f32
    %847 = vector.broadcast %cst_214 : f32 to vector<2x3xf32>
    %848 = arith.cmpf ogt, %798, %847 : vector<2x3xf32>
    %cst_215 = arith.constant 1.000000e+00 : f32
    %cst_216 = arith.constant 0.000000e+00 : f32
    %849 = vector.broadcast %cst_215 : f32 to vector<2x3xf32>
    %850 = vector.broadcast %cst_216 : f32 to vector<2x3xf32>
    %851 = arith.select %848, %849, %850 : vector<2x3xi1>, vector<2x3xf32>
    %852 = arith.subf %846, %851 : vector<2x3xf32>
    %c28 = arith.constant 28 : index
    %c0_217 = arith.constant 0 : index
    %853 = vector.load %arg3[%c28, %c0_217] : memref<50x3xf32, #tpu.memory_space<vmem>>, vector<2x3xf32>
    tpu.vector_store %arg3[%c28, %c0_217], %852 {strides = array<i32>} : memref<50x3xf32, #tpu.memory_space<vmem>>, vector<2x3xf32>,
    %854 = vector.extract_strided_slice %25 {offsets = [30, 0], sizes = [2, 5], strides = [1, 1]} : vector<50x5xf32> to vector<2x5xf32>
    %cst_218 = arith.constant 0.949999988 : f32
    %855 = vector.broadcast %cst_218 : f32 to vector<2x5xf32>
    %856 = arith.mulf %855, %809 : vector<2x5xf32>
    %857 = arith.addf %856, %854 : vector<2x5xf32>
    %cst_219 = arith.constant 1.000000e+00 : f32
    %858 = vector.broadcast %cst_219 : f32 to vector<2x5xf32>
    %859 = arith.cmpf ogt, %809, %858 : vector<2x5xf32>
    %cst_220 = arith.constant 1.000000e+00 : f32
    %cst_221 = arith.constant 0.000000e+00 : f32
    %860 = vector.broadcast %cst_220 : f32 to vector<2x5xf32>
    %861 = vector.broadcast %cst_221 : f32 to vector<2x5xf32>
    %862 = arith.select %859, %860, %861 : vector<2x5xi1>, vector<2x5xf32>
    %863 = arith.subf %857, %862 : vector<2x5xf32>
    %864 = vector.extract_strided_slice %863 {offsets = [0, 0], sizes = [2, 1], strides = [1, 1]} : vector<2x5xf32> to vector<2x1xf32>
    %865 = vector.shape_cast %864 : vector<2x1xf32> to vector<2x1xf32>
    %866 = vector.broadcast %865 : vector<2x1xf32> to vector<2x3xf32>
    %cst_222 = arith.constant 1.000000e+00 : f32
    %867 = vector.broadcast %cst_222 : f32 to vector<2x3xf32>
    %868 = arith.cmpf ogt, %866, %867 : vector<2x3xf32>
    %869 = arith.select %868, %28, %41 : vector<2x3xi1>, vector<2x3xf32>
    %870 = vector.extract_strided_slice %863 {offsets = [0, 1], sizes = [2, 1], strides = [1, 1]} : vector<2x5xf32> to vector<2x1xf32>
    %871 = vector.shape_cast %870 : vector<2x1xf32> to vector<2x1xf32>
    %872 = vector.broadcast %871 : vector<2x1xf32> to vector<2x3xf32>
    %cst_223 = arith.constant 1.000000e+00 : f32
    %873 = vector.broadcast %cst_223 : f32 to vector<2x3xf32>
    %874 = arith.cmpf ogt, %872, %873 : vector<2x3xf32>
    %875 = arith.select %874, %31, %41 : vector<2x3xi1>, vector<2x3xf32>
    %876 = vector.extract_strided_slice %863 {offsets = [0, 2], sizes = [2, 1], strides = [1, 1]} : vector<2x5xf32> to vector<2x1xf32>
    %877 = vector.shape_cast %876 : vector<2x1xf32> to vector<2x1xf32>
    %878 = vector.broadcast %877 : vector<2x1xf32> to vector<2x3xf32>
    %cst_224 = arith.constant 1.000000e+00 : f32
    %879 = vector.broadcast %cst_224 : f32 to vector<2x3xf32>
    %880 = arith.cmpf ogt, %878, %879 : vector<2x3xf32>
    %881 = arith.select %880, %34, %41 : vector<2x3xi1>, vector<2x3xf32>
    %882 = vector.extract_strided_slice %863 {offsets = [0, 3], sizes = [2, 1], strides = [1, 1]} : vector<2x5xf32> to vector<2x1xf32>
    %883 = vector.shape_cast %882 : vector<2x1xf32> to vector<2x1xf32>
    %884 = vector.broadcast %883 : vector<2x1xf32> to vector<2x3xf32>
    %cst_225 = arith.constant 1.000000e+00 : f32
    %885 = vector.broadcast %cst_225 : f32 to vector<2x3xf32>
    %886 = arith.cmpf ogt, %884, %885 : vector<2x3xf32>
    %887 = arith.select %886, %37, %41 : vector<2x3xi1>, vector<2x3xf32>
    %888 = vector.extract_strided_slice %863 {offsets = [0, 4], sizes = [2, 1], strides = [1, 1]} : vector<2x5xf32> to vector<2x1xf32>
    %889 = vector.shape_cast %888 : vector<2x1xf32> to vector<2x1xf32>
    %890 = vector.broadcast %889 : vector<2x1xf32> to vector<2x3xf32>
    %cst_226 = arith.constant 1.000000e+00 : f32
    %891 = vector.broadcast %cst_226 : f32 to vector<2x3xf32>
    %892 = arith.cmpf ogt, %890, %891 : vector<2x3xf32>
    %893 = arith.select %892, %40, %41 : vector<2x3xi1>, vector<2x3xf32>
    %894 = arith.addf %869, %875 : vector<2x3xf32>
    %895 = arith.addf %881, %887 : vector<2x3xf32>
    %896 = arith.addf %894, %895 : vector<2x3xf32>
    %897 = arith.addf %896, %893 : vector<2x3xf32>
    %cst_227 = arith.constant 0.949999988 : f32
    %898 = vector.broadcast %cst_227 : f32 to vector<2x3xf32>
    %899 = arith.mulf %898, %852 : vector<2x3xf32>
    %900 = arith.addf %899, %897 : vector<2x3xf32>
    %cst_228 = arith.constant 1.000000e+00 : f32
    %901 = vector.broadcast %cst_228 : f32 to vector<2x3xf32>
    %902 = arith.cmpf ogt, %852, %901 : vector<2x3xf32>
    %cst_229 = arith.constant 1.000000e+00 : f32
    %cst_230 = arith.constant 0.000000e+00 : f32
    %903 = vector.broadcast %cst_229 : f32 to vector<2x3xf32>
    %904 = vector.broadcast %cst_230 : f32 to vector<2x3xf32>
    %905 = arith.select %902, %903, %904 : vector<2x3xi1>, vector<2x3xf32>
    %906 = arith.subf %900, %905 : vector<2x3xf32>
    %c30 = arith.constant 30 : index
    %c0_231 = arith.constant 0 : index
    %907 = vector.load %arg3[%c30, %c0_231] : memref<50x3xf32, #tpu.memory_space<vmem>>, vector<2x3xf32>
    tpu.vector_store %arg3[%c30, %c0_231], %906 {strides = array<i32>} : memref<50x3xf32, #tpu.memory_space<vmem>>, vector<2x3xf32>,
    %908 = vector.extract_strided_slice %25 {offsets = [32, 0], sizes = [2, 5], strides = [1, 1]} : vector<50x5xf32> to vector<2x5xf32>
    %cst_232 = arith.constant 0.949999988 : f32
    %909 = vector.broadcast %cst_232 : f32 to vector<2x5xf32>
    %910 = arith.mulf %909, %863 : vector<2x5xf32>
    %911 = arith.addf %910, %908 : vector<2x5xf32>
    %cst_233 = arith.constant 1.000000e+00 : f32
    %912 = vector.broadcast %cst_233 : f32 to vector<2x5xf32>
    %913 = arith.cmpf ogt, %863, %912 : vector<2x5xf32>
    %cst_234 = arith.constant 1.000000e+00 : f32
    %cst_235 = arith.constant 0.000000e+00 : f32
    %914 = vector.broadcast %cst_234 : f32 to vector<2x5xf32>
    %915 = vector.broadcast %cst_235 : f32 to vector<2x5xf32>
    %916 = arith.select %913, %914, %915 : vector<2x5xi1>, vector<2x5xf32>
    %917 = arith.subf %911, %916 : vector<2x5xf32>
    %918 = vector.extract_strided_slice %917 {offsets = [0, 0], sizes = [2, 1], strides = [1, 1]} : vector<2x5xf32> to vector<2x1xf32>
    %919 = vector.shape_cast %918 : vector<2x1xf32> to vector<2x1xf32>
    %920 = vector.broadcast %919 : vector<2x1xf32> to vector<2x3xf32>
    %cst_236 = arith.constant 1.000000e+00 : f32
    %921 = vector.broadcast %cst_236 : f32 to vector<2x3xf32>
    %922 = arith.cmpf ogt, %920, %921 : vector<2x3xf32>
    %923 = arith.select %922, %28, %41 : vector<2x3xi1>, vector<2x3xf32>
    %924 = vector.extract_strided_slice %917 {offsets = [0, 1], sizes = [2, 1], strides = [1, 1]} : vector<2x5xf32> to vector<2x1xf32>
    %925 = vector.shape_cast %924 : vector<2x1xf32> to vector<2x1xf32>
    %926 = vector.broadcast %925 : vector<2x1xf32> to vector<2x3xf32>
    %cst_237 = arith.constant 1.000000e+00 : f32
    %927 = vector.broadcast %cst_237 : f32 to vector<2x3xf32>
    %928 = arith.cmpf ogt, %926, %927 : vector<2x3xf32>
    %929 = arith.select %928, %31, %41 : vector<2x3xi1>, vector<2x3xf32>
    %930 = vector.extract_strided_slice %917 {offsets = [0, 2], sizes = [2, 1], strides = [1, 1]} : vector<2x5xf32> to vector<2x1xf32>
    %931 = vector.shape_cast %930 : vector<2x1xf32> to vector<2x1xf32>
    %932 = vector.broadcast %931 : vector<2x1xf32> to vector<2x3xf32>
    %cst_238 = arith.constant 1.000000e+00 : f32
    %933 = vector.broadcast %cst_238 : f32 to vector<2x3xf32>
    %934 = arith.cmpf ogt, %932, %933 : vector<2x3xf32>
    %935 = arith.select %934, %34, %41 : vector<2x3xi1>, vector<2x3xf32>
    %936 = vector.extract_strided_slice %917 {offsets = [0, 3], sizes = [2, 1], strides = [1, 1]} : vector<2x5xf32> to vector<2x1xf32>
    %937 = vector.shape_cast %936 : vector<2x1xf32> to vector<2x1xf32>
    %938 = vector.broadcast %937 : vector<2x1xf32> to vector<2x3xf32>
    %cst_239 = arith.constant 1.000000e+00 : f32
    %939 = vector.broadcast %cst_239 : f32 to vector<2x3xf32>
    %940 = arith.cmpf ogt, %938, %939 : vector<2x3xf32>
    %941 = arith.select %940, %37, %41 : vector<2x3xi1>, vector<2x3xf32>
    %942 = vector.extract_strided_slice %917 {offsets = [0, 4], sizes = [2, 1], strides = [1, 1]} : vector<2x5xf32> to vector<2x1xf32>
    %943 = vector.shape_cast %942 : vector<2x1xf32> to vector<2x1xf32>
    %944 = vector.broadcast %943 : vector<2x1xf32> to vector<2x3xf32>
    %cst_240 = arith.constant 1.000000e+00 : f32
    %945 = vector.broadcast %cst_240 : f32 to vector<2x3xf32>
    %946 = arith.cmpf ogt, %944, %945 : vector<2x3xf32>
    %947 = arith.select %946, %40, %41 : vector<2x3xi1>, vector<2x3xf32>
    %948 = arith.addf %923, %929 : vector<2x3xf32>
    %949 = arith.addf %935, %941 : vector<2x3xf32>
    %950 = arith.addf %948, %949 : vector<2x3xf32>
    %951 = arith.addf %950, %947 : vector<2x3xf32>
    %cst_241 = arith.constant 0.949999988 : f32
    %952 = vector.broadcast %cst_241 : f32 to vector<2x3xf32>
    %953 = arith.mulf %952, %906 : vector<2x3xf32>
    %954 = arith.addf %953, %951 : vector<2x3xf32>
    %cst_242 = arith.constant 1.000000e+00 : f32
    %955 = vector.broadcast %cst_242 : f32 to vector<2x3xf32>
    %956 = arith.cmpf ogt, %906, %955 : vector<2x3xf32>
    %cst_243 = arith.constant 1.000000e+00 : f32
    %cst_244 = arith.constant 0.000000e+00 : f32
    %957 = vector.broadcast %cst_243 : f32 to vector<2x3xf32>
    %958 = vector.broadcast %cst_244 : f32 to vector<2x3xf32>
    %959 = arith.select %956, %957, %958 : vector<2x3xi1>, vector<2x3xf32>
    %960 = arith.subf %954, %959 : vector<2x3xf32>
    %c32 = arith.constant 32 : index
    %c0_245 = arith.constant 0 : index
    %961 = vector.load %arg3[%c32, %c0_245] : memref<50x3xf32, #tpu.memory_space<vmem>>, vector<2x3xf32>
    tpu.vector_store %arg3[%c32, %c0_245], %960 {strides = array<i32>} : memref<50x3xf32, #tpu.memory_space<vmem>>, vector<2x3xf32>,
    %962 = vector.extract_strided_slice %25 {offsets = [34, 0], sizes = [2, 5], strides = [1, 1]} : vector<50x5xf32> to vector<2x5xf32>
    %cst_246 = arith.constant 0.949999988 : f32
    %963 = vector.broadcast %cst_246 : f32 to vector<2x5xf32>
    %964 = arith.mulf %963, %917 : vector<2x5xf32>
    %965 = arith.addf %964, %962 : vector<2x5xf32>
    %cst_247 = arith.constant 1.000000e+00 : f32
    %966 = vector.broadcast %cst_247 : f32 to vector<2x5xf32>
    %967 = arith.cmpf ogt, %917, %966 : vector<2x5xf32>
    %cst_248 = arith.constant 1.000000e+00 : f32
    %cst_249 = arith.constant 0.000000e+00 : f32
    %968 = vector.broadcast %cst_248 : f32 to vector<2x5xf32>
    %969 = vector.broadcast %cst_249 : f32 to vector<2x5xf32>
    %970 = arith.select %967, %968, %969 : vector<2x5xi1>, vector<2x5xf32>
    %971 = arith.subf %965, %970 : vector<2x5xf32>
    %972 = vector.extract_strided_slice %971 {offsets = [0, 0], sizes = [2, 1], strides = [1, 1]} : vector<2x5xf32> to vector<2x1xf32>
    %973 = vector.shape_cast %972 : vector<2x1xf32> to vector<2x1xf32>
    %974 = vector.broadcast %973 : vector<2x1xf32> to vector<2x3xf32>
    %cst_250 = arith.constant 1.000000e+00 : f32
    %975 = vector.broadcast %cst_250 : f32 to vector<2x3xf32>
    %976 = arith.cmpf ogt, %974, %975 : vector<2x3xf32>
    %977 = arith.select %976, %28, %41 : vector<2x3xi1>, vector<2x3xf32>
    %978 = vector.extract_strided_slice %971 {offsets = [0, 1], sizes = [2, 1], strides = [1, 1]} : vector<2x5xf32> to vector<2x1xf32>
    %979 = vector.shape_cast %978 : vector<2x1xf32> to vector<2x1xf32>
    %980 = vector.broadcast %979 : vector<2x1xf32> to vector<2x3xf32>
    %cst_251 = arith.constant 1.000000e+00 : f32
    %981 = vector.broadcast %cst_251 : f32 to vector<2x3xf32>
    %982 = arith.cmpf ogt, %980, %981 : vector<2x3xf32>
    %983 = arith.select %982, %31, %41 : vector<2x3xi1>, vector<2x3xf32>
    %984 = vector.extract_strided_slice %971 {offsets = [0, 2], sizes = [2, 1], strides = [1, 1]} : vector<2x5xf32> to vector<2x1xf32>
    %985 = vector.shape_cast %984 : vector<2x1xf32> to vector<2x1xf32>
    %986 = vector.broadcast %985 : vector<2x1xf32> to vector<2x3xf32>
    %cst_252 = arith.constant 1.000000e+00 : f32
    %987 = vector.broadcast %cst_252 : f32 to vector<2x3xf32>
    %988 = arith.cmpf ogt, %986, %987 : vector<2x3xf32>
    %989 = arith.select %988, %34, %41 : vector<2x3xi1>, vector<2x3xf32>
    %990 = vector.extract_strided_slice %971 {offsets = [0, 3], sizes = [2, 1], strides = [1, 1]} : vector<2x5xf32> to vector<2x1xf32>
    %991 = vector.shape_cast %990 : vector<2x1xf32> to vector<2x1xf32>
    %992 = vector.broadcast %991 : vector<2x1xf32> to vector<2x3xf32>
    %cst_253 = arith.constant 1.000000e+00 : f32
    %993 = vector.broadcast %cst_253 : f32 to vector<2x3xf32>
    %994 = arith.cmpf ogt, %992, %993 : vector<2x3xf32>
    %995 = arith.select %994, %37, %41 : vector<2x3xi1>, vector<2x3xf32>
    %996 = vector.extract_strided_slice %971 {offsets = [0, 4], sizes = [2, 1], strides = [1, 1]} : vector<2x5xf32> to vector<2x1xf32>
    %997 = vector.shape_cast %996 : vector<2x1xf32> to vector<2x1xf32>
    %998 = vector.broadcast %997 : vector<2x1xf32> to vector<2x3xf32>
    %cst_254 = arith.constant 1.000000e+00 : f32
    %999 = vector.broadcast %cst_254 : f32 to vector<2x3xf32>
    %1000 = arith.cmpf ogt, %998, %999 : vector<2x3xf32>
    %1001 = arith.select %1000, %40, %41 : vector<2x3xi1>, vector<2x3xf32>
    %1002 = arith.addf %977, %983 : vector<2x3xf32>
    %1003 = arith.addf %989, %995 : vector<2x3xf32>
    %1004 = arith.addf %1002, %1003 : vector<2x3xf32>
    %1005 = arith.addf %1004, %1001 : vector<2x3xf32>
    %cst_255 = arith.constant 0.949999988 : f32
    %1006 = vector.broadcast %cst_255 : f32 to vector<2x3xf32>
    %1007 = arith.mulf %1006, %960 : vector<2x3xf32>
    %1008 = arith.addf %1007, %1005 : vector<2x3xf32>
    %cst_256 = arith.constant 1.000000e+00 : f32
    %1009 = vector.broadcast %cst_256 : f32 to vector<2x3xf32>
    %1010 = arith.cmpf ogt, %960, %1009 : vector<2x3xf32>
    %cst_257 = arith.constant 1.000000e+00 : f32
    %cst_258 = arith.constant 0.000000e+00 : f32
    %1011 = vector.broadcast %cst_257 : f32 to vector<2x3xf32>
    %1012 = vector.broadcast %cst_258 : f32 to vector<2x3xf32>
    %1013 = arith.select %1010, %1011, %1012 : vector<2x3xi1>, vector<2x3xf32>
    %1014 = arith.subf %1008, %1013 : vector<2x3xf32>
    %c34 = arith.constant 34 : index
    %c0_259 = arith.constant 0 : index
    %1015 = vector.load %arg3[%c34, %c0_259] : memref<50x3xf32, #tpu.memory_space<vmem>>, vector<2x3xf32>
    tpu.vector_store %arg3[%c34, %c0_259], %1014 {strides = array<i32>} : memref<50x3xf32, #tpu.memory_space<vmem>>, vector<2x3xf32>,
    %1016 = vector.extract_strided_slice %25 {offsets = [36, 0], sizes = [2, 5], strides = [1, 1]} : vector<50x5xf32> to vector<2x5xf32>
    %cst_260 = arith.constant 0.949999988 : f32
    %1017 = vector.broadcast %cst_260 : f32 to vector<2x5xf32>
    %1018 = arith.mulf %1017, %971 : vector<2x5xf32>
    %1019 = arith.addf %1018, %1016 : vector<2x5xf32>
    %cst_261 = arith.constant 1.000000e+00 : f32
    %1020 = vector.broadcast %cst_261 : f32 to vector<2x5xf32>
    %1021 = arith.cmpf ogt, %971, %1020 : vector<2x5xf32>
    %cst_262 = arith.constant 1.000000e+00 : f32
    %cst_263 = arith.constant 0.000000e+00 : f32
    %1022 = vector.broadcast %cst_262 : f32 to vector<2x5xf32>
    %1023 = vector.broadcast %cst_263 : f32 to vector<2x5xf32>
    %1024 = arith.select %1021, %1022, %1023 : vector<2x5xi1>, vector<2x5xf32>
    %1025 = arith.subf %1019, %1024 : vector<2x5xf32>
    %1026 = vector.extract_strided_slice %1025 {offsets = [0, 0], sizes = [2, 1], strides = [1, 1]} : vector<2x5xf32> to vector<2x1xf32>
    %1027 = vector.shape_cast %1026 : vector<2x1xf32> to vector<2x1xf32>
    %1028 = vector.broadcast %1027 : vector<2x1xf32> to vector<2x3xf32>
    %cst_264 = arith.constant 1.000000e+00 : f32
    %1029 = vector.broadcast %cst_264 : f32 to vector<2x3xf32>
    %1030 = arith.cmpf ogt, %1028, %1029 : vector<2x3xf32>
    %1031 = arith.select %1030, %28, %41 : vector<2x3xi1>, vector<2x3xf32>
    %1032 = vector.extract_strided_slice %1025 {offsets = [0, 1], sizes = [2, 1], strides = [1, 1]} : vector<2x5xf32> to vector<2x1xf32>
    %1033 = vector.shape_cast %1032 : vector<2x1xf32> to vector<2x1xf32>
    %1034 = vector.broadcast %1033 : vector<2x1xf32> to vector<2x3xf32>
    %cst_265 = arith.constant 1.000000e+00 : f32
    %1035 = vector.broadcast %cst_265 : f32 to vector<2x3xf32>
    %1036 = arith.cmpf ogt, %1034, %1035 : vector<2x3xf32>
    %1037 = arith.select %1036, %31, %41 : vector<2x3xi1>, vector<2x3xf32>
    %1038 = vector.extract_strided_slice %1025 {offsets = [0, 2], sizes = [2, 1], strides = [1, 1]} : vector<2x5xf32> to vector<2x1xf32>
    %1039 = vector.shape_cast %1038 : vector<2x1xf32> to vector<2x1xf32>
    %1040 = vector.broadcast %1039 : vector<2x1xf32> to vector<2x3xf32>
    %cst_266 = arith.constant 1.000000e+00 : f32
    %1041 = vector.broadcast %cst_266 : f32 to vector<2x3xf32>
    %1042 = arith.cmpf ogt, %1040, %1041 : vector<2x3xf32>
    %1043 = arith.select %1042, %34, %41 : vector<2x3xi1>, vector<2x3xf32>
    %1044 = vector.extract_strided_slice %1025 {offsets = [0, 3], sizes = [2, 1], strides = [1, 1]} : vector<2x5xf32> to vector<2x1xf32>
    %1045 = vector.shape_cast %1044 : vector<2x1xf32> to vector<2x1xf32>
    %1046 = vector.broadcast %1045 : vector<2x1xf32> to vector<2x3xf32>
    %cst_267 = arith.constant 1.000000e+00 : f32
    %1047 = vector.broadcast %cst_267 : f32 to vector<2x3xf32>
    %1048 = arith.cmpf ogt, %1046, %1047 : vector<2x3xf32>
    %1049 = arith.select %1048, %37, %41 : vector<2x3xi1>, vector<2x3xf32>
    %1050 = vector.extract_strided_slice %1025 {offsets = [0, 4], sizes = [2, 1], strides = [1, 1]} : vector<2x5xf32> to vector<2x1xf32>
    %1051 = vector.shape_cast %1050 : vector<2x1xf32> to vector<2x1xf32>
    %1052 = vector.broadcast %1051 : vector<2x1xf32> to vector<2x3xf32>
    %cst_268 = arith.constant 1.000000e+00 : f32
    %1053 = vector.broadcast %cst_268 : f32 to vector<2x3xf32>
    %1054 = arith.cmpf ogt, %1052, %1053 : vector<2x3xf32>
    %1055 = arith.select %1054, %40, %41 : vector<2x3xi1>, vector<2x3xf32>
    %1056 = arith.addf %1031, %1037 : vector<2x3xf32>
    %1057 = arith.addf %1043, %1049 : vector<2x3xf32>
    %1058 = arith.addf %1056, %1057 : vector<2x3xf32>
    %1059 = arith.addf %1058, %1055 : vector<2x3xf32>
    %cst_269 = arith.constant 0.949999988 : f32
    %1060 = vector.broadcast %cst_269 : f32 to vector<2x3xf32>
    %1061 = arith.mulf %1060, %1014 : vector<2x3xf32>
    %1062 = arith.addf %1061, %1059 : vector<2x3xf32>
    %cst_270 = arith.constant 1.000000e+00 : f32
    %1063 = vector.broadcast %cst_270 : f32 to vector<2x3xf32>
    %1064 = arith.cmpf ogt, %1014, %1063 : vector<2x3xf32>
    %cst_271 = arith.constant 1.000000e+00 : f32
    %cst_272 = arith.constant 0.000000e+00 : f32
    %1065 = vector.broadcast %cst_271 : f32 to vector<2x3xf32>
    %1066 = vector.broadcast %cst_272 : f32 to vector<2x3xf32>
    %1067 = arith.select %1064, %1065, %1066 : vector<2x3xi1>, vector<2x3xf32>
    %1068 = arith.subf %1062, %1067 : vector<2x3xf32>
    %c36 = arith.constant 36 : index
    %c0_273 = arith.constant 0 : index
    %1069 = vector.load %arg3[%c36, %c0_273] : memref<50x3xf32, #tpu.memory_space<vmem>>, vector<2x3xf32>
    tpu.vector_store %arg3[%c36, %c0_273], %1068 {strides = array<i32>} : memref<50x3xf32, #tpu.memory_space<vmem>>, vector<2x3xf32>,
    %1070 = vector.extract_strided_slice %25 {offsets = [38, 0], sizes = [2, 5], strides = [1, 1]} : vector<50x5xf32> to vector<2x5xf32>
    %cst_274 = arith.constant 0.949999988 : f32
    %1071 = vector.broadcast %cst_274 : f32 to vector<2x5xf32>
    %1072 = arith.mulf %1071, %1025 : vector<2x5xf32>
    %1073 = arith.addf %1072, %1070 : vector<2x5xf32>
    %cst_275 = arith.constant 1.000000e+00 : f32
    %1074 = vector.broadcast %cst_275 : f32 to vector<2x5xf32>
    %1075 = arith.cmpf ogt, %1025, %1074 : vector<2x5xf32>
    %cst_276 = arith.constant 1.000000e+00 : f32
    %cst_277 = arith.constant 0.000000e+00 : f32
    %1076 = vector.broadcast %cst_276 : f32 to vector<2x5xf32>
    %1077 = vector.broadcast %cst_277 : f32 to vector<2x5xf32>
    %1078 = arith.select %1075, %1076, %1077 : vector<2x5xi1>, vector<2x5xf32>
    %1079 = arith.subf %1073, %1078 : vector<2x5xf32>
    %1080 = vector.extract_strided_slice %1079 {offsets = [0, 0], sizes = [2, 1], strides = [1, 1]} : vector<2x5xf32> to vector<2x1xf32>
    %1081 = vector.shape_cast %1080 : vector<2x1xf32> to vector<2x1xf32>
    %1082 = vector.broadcast %1081 : vector<2x1xf32> to vector<2x3xf32>
    %cst_278 = arith.constant 1.000000e+00 : f32
    %1083 = vector.broadcast %cst_278 : f32 to vector<2x3xf32>
    %1084 = arith.cmpf ogt, %1082, %1083 : vector<2x3xf32>
    %1085 = arith.select %1084, %28, %41 : vector<2x3xi1>, vector<2x3xf32>
    %1086 = vector.extract_strided_slice %1079 {offsets = [0, 1], sizes = [2, 1], strides = [1, 1]} : vector<2x5xf32> to vector<2x1xf32>
    %1087 = vector.shape_cast %1086 : vector<2x1xf32> to vector<2x1xf32>
    %1088 = vector.broadcast %1087 : vector<2x1xf32> to vector<2x3xf32>
    %cst_279 = arith.constant 1.000000e+00 : f32
    %1089 = vector.broadcast %cst_279 : f32 to vector<2x3xf32>
    %1090 = arith.cmpf ogt, %1088, %1089 : vector<2x3xf32>
    %1091 = arith.select %1090, %31, %41 : vector<2x3xi1>, vector<2x3xf32>
    %1092 = vector.extract_strided_slice %1079 {offsets = [0, 2], sizes = [2, 1], strides = [1, 1]} : vector<2x5xf32> to vector<2x1xf32>
    %1093 = vector.shape_cast %1092 : vector<2x1xf32> to vector<2x1xf32>
    %1094 = vector.broadcast %1093 : vector<2x1xf32> to vector<2x3xf32>
    %cst_280 = arith.constant 1.000000e+00 : f32
    %1095 = vector.broadcast %cst_280 : f32 to vector<2x3xf32>
    %1096 = arith.cmpf ogt, %1094, %1095 : vector<2x3xf32>
    %1097 = arith.select %1096, %34, %41 : vector<2x3xi1>, vector<2x3xf32>
    %1098 = vector.extract_strided_slice %1079 {offsets = [0, 3], sizes = [2, 1], strides = [1, 1]} : vector<2x5xf32> to vector<2x1xf32>
    %1099 = vector.shape_cast %1098 : vector<2x1xf32> to vector<2x1xf32>
    %1100 = vector.broadcast %1099 : vector<2x1xf32> to vector<2x3xf32>
    %cst_281 = arith.constant 1.000000e+00 : f32
    %1101 = vector.broadcast %cst_281 : f32 to vector<2x3xf32>
    %1102 = arith.cmpf ogt, %1100, %1101 : vector<2x3xf32>
    %1103 = arith.select %1102, %37, %41 : vector<2x3xi1>, vector<2x3xf32>
    %1104 = vector.extract_strided_slice %1079 {offsets = [0, 4], sizes = [2, 1], strides = [1, 1]} : vector<2x5xf32> to vector<2x1xf32>
    %1105 = vector.shape_cast %1104 : vector<2x1xf32> to vector<2x1xf32>
    %1106 = vector.broadcast %1105 : vector<2x1xf32> to vector<2x3xf32>
    %cst_282 = arith.constant 1.000000e+00 : f32
    %1107 = vector.broadcast %cst_282 : f32 to vector<2x3xf32>
    %1108 = arith.cmpf ogt, %1106, %1107 : vector<2x3xf32>
    %1109 = arith.select %1108, %40, %41 : vector<2x3xi1>, vector<2x3xf32>
    %1110 = arith.addf %1085, %1091 : vector<2x3xf32>
    %1111 = arith.addf %1097, %1103 : vector<2x3xf32>
    %1112 = arith.addf %1110, %1111 : vector<2x3xf32>
    %1113 = arith.addf %1112, %1109 : vector<2x3xf32>
    %cst_283 = arith.constant 0.949999988 : f32
    %1114 = vector.broadcast %cst_283 : f32 to vector<2x3xf32>
    %1115 = arith.mulf %1114, %1068 : vector<2x3xf32>
    %1116 = arith.addf %1115, %1113 : vector<2x3xf32>
    %cst_284 = arith.constant 1.000000e+00 : f32
    %1117 = vector.broadcast %cst_284 : f32 to vector<2x3xf32>
    %1118 = arith.cmpf ogt, %1068, %1117 : vector<2x3xf32>
    %cst_285 = arith.constant 1.000000e+00 : f32
    %cst_286 = arith.constant 0.000000e+00 : f32
    %1119 = vector.broadcast %cst_285 : f32 to vector<2x3xf32>
    %1120 = vector.broadcast %cst_286 : f32 to vector<2x3xf32>
    %1121 = arith.select %1118, %1119, %1120 : vector<2x3xi1>, vector<2x3xf32>
    %1122 = arith.subf %1116, %1121 : vector<2x3xf32>
    %c38 = arith.constant 38 : index
    %c0_287 = arith.constant 0 : index
    %1123 = vector.load %arg3[%c38, %c0_287] : memref<50x3xf32, #tpu.memory_space<vmem>>, vector<2x3xf32>
    tpu.vector_store %arg3[%c38, %c0_287], %1122 {strides = array<i32>} : memref<50x3xf32, #tpu.memory_space<vmem>>, vector<2x3xf32>,
    %1124 = vector.extract_strided_slice %25 {offsets = [40, 0], sizes = [2, 5], strides = [1, 1]} : vector<50x5xf32> to vector<2x5xf32>
    %cst_288 = arith.constant 0.949999988 : f32
    %1125 = vector.broadcast %cst_288 : f32 to vector<2x5xf32>
    %1126 = arith.mulf %1125, %1079 : vector<2x5xf32>
    %1127 = arith.addf %1126, %1124 : vector<2x5xf32>
    %cst_289 = arith.constant 1.000000e+00 : f32
    %1128 = vector.broadcast %cst_289 : f32 to vector<2x5xf32>
    %1129 = arith.cmpf ogt, %1079, %1128 : vector<2x5xf32>
    %cst_290 = arith.constant 1.000000e+00 : f32
    %cst_291 = arith.constant 0.000000e+00 : f32
    %1130 = vector.broadcast %cst_290 : f32 to vector<2x5xf32>
    %1131 = vector.broadcast %cst_291 : f32 to vector<2x5xf32>
    %1132 = arith.select %1129, %1130, %1131 : vector<2x5xi1>, vector<2x5xf32>
    %1133 = arith.subf %1127, %1132 : vector<2x5xf32>
    %1134 = vector.extract_strided_slice %1133 {offsets = [0, 0], sizes = [2, 1], strides = [1, 1]} : vector<2x5xf32> to vector<2x1xf32>
    %1135 = vector.shape_cast %1134 : vector<2x1xf32> to vector<2x1xf32>
    %1136 = vector.broadcast %1135 : vector<2x1xf32> to vector<2x3xf32>
    %cst_292 = arith.constant 1.000000e+00 : f32
    %1137 = vector.broadcast %cst_292 : f32 to vector<2x3xf32>
    %1138 = arith.cmpf ogt, %1136, %1137 : vector<2x3xf32>
    %1139 = arith.select %1138, %28, %41 : vector<2x3xi1>, vector<2x3xf32>
    %1140 = vector.extract_strided_slice %1133 {offsets = [0, 1], sizes = [2, 1], strides = [1, 1]} : vector<2x5xf32> to vector<2x1xf32>
    %1141 = vector.shape_cast %1140 : vector<2x1xf32> to vector<2x1xf32>
    %1142 = vector.broadcast %1141 : vector<2x1xf32> to vector<2x3xf32>
    %cst_293 = arith.constant 1.000000e+00 : f32
    %1143 = vector.broadcast %cst_293 : f32 to vector<2x3xf32>
    %1144 = arith.cmpf ogt, %1142, %1143 : vector<2x3xf32>
    %1145 = arith.select %1144, %31, %41 : vector<2x3xi1>, vector<2x3xf32>
    %1146 = vector.extract_strided_slice %1133 {offsets = [0, 2], sizes = [2, 1], strides = [1, 1]} : vector<2x5xf32> to vector<2x1xf32>
    %1147 = vector.shape_cast %1146 : vector<2x1xf32> to vector<2x1xf32>
    %1148 = vector.broadcast %1147 : vector<2x1xf32> to vector<2x3xf32>
    %cst_294 = arith.constant 1.000000e+00 : f32
    %1149 = vector.broadcast %cst_294 : f32 to vector<2x3xf32>
    %1150 = arith.cmpf ogt, %1148, %1149 : vector<2x3xf32>
    %1151 = arith.select %1150, %34, %41 : vector<2x3xi1>, vector<2x3xf32>
    %1152 = vector.extract_strided_slice %1133 {offsets = [0, 3], sizes = [2, 1], strides = [1, 1]} : vector<2x5xf32> to vector<2x1xf32>
    %1153 = vector.shape_cast %1152 : vector<2x1xf32> to vector<2x1xf32>
    %1154 = vector.broadcast %1153 : vector<2x1xf32> to vector<2x3xf32>
    %cst_295 = arith.constant 1.000000e+00 : f32
    %1155 = vector.broadcast %cst_295 : f32 to vector<2x3xf32>
    %1156 = arith.cmpf ogt, %1154, %1155 : vector<2x3xf32>
    %1157 = arith.select %1156, %37, %41 : vector<2x3xi1>, vector<2x3xf32>
    %1158 = vector.extract_strided_slice %1133 {offsets = [0, 4], sizes = [2, 1], strides = [1, 1]} : vector<2x5xf32> to vector<2x1xf32>
    %1159 = vector.shape_cast %1158 : vector<2x1xf32> to vector<2x1xf32>
    %1160 = vector.broadcast %1159 : vector<2x1xf32> to vector<2x3xf32>
    %cst_296 = arith.constant 1.000000e+00 : f32
    %1161 = vector.broadcast %cst_296 : f32 to vector<2x3xf32>
    %1162 = arith.cmpf ogt, %1160, %1161 : vector<2x3xf32>
    %1163 = arith.select %1162, %40, %41 : vector<2x3xi1>, vector<2x3xf32>
    %1164 = arith.addf %1139, %1145 : vector<2x3xf32>
    %1165 = arith.addf %1151, %1157 : vector<2x3xf32>
    %1166 = arith.addf %1164, %1165 : vector<2x3xf32>
    %1167 = arith.addf %1166, %1163 : vector<2x3xf32>
    %cst_297 = arith.constant 0.949999988 : f32
    %1168 = vector.broadcast %cst_297 : f32 to vector<2x3xf32>
    %1169 = arith.mulf %1168, %1122 : vector<2x3xf32>
    %1170 = arith.addf %1169, %1167 : vector<2x3xf32>
    %cst_298 = arith.constant 1.000000e+00 : f32
    %1171 = vector.broadcast %cst_298 : f32 to vector<2x3xf32>
    %1172 = arith.cmpf ogt, %1122, %1171 : vector<2x3xf32>
    %cst_299 = arith.constant 1.000000e+00 : f32
    %cst_300 = arith.constant 0.000000e+00 : f32
    %1173 = vector.broadcast %cst_299 : f32 to vector<2x3xf32>
    %1174 = vector.broadcast %cst_300 : f32 to vector<2x3xf32>
    %1175 = arith.select %1172, %1173, %1174 : vector<2x3xi1>, vector<2x3xf32>
    %1176 = arith.subf %1170, %1175 : vector<2x3xf32>
    %c40 = arith.constant 40 : index
    %c0_301 = arith.constant 0 : index
    %1177 = vector.load %arg3[%c40, %c0_301] : memref<50x3xf32, #tpu.memory_space<vmem>>, vector<2x3xf32>
    tpu.vector_store %arg3[%c40, %c0_301], %1176 {strides = array<i32>} : memref<50x3xf32, #tpu.memory_space<vmem>>, vector<2x3xf32>,
    %1178 = vector.extract_strided_slice %25 {offsets = [42, 0], sizes = [2, 5], strides = [1, 1]} : vector<50x5xf32> to vector<2x5xf32>
    %cst_302 = arith.constant 0.949999988 : f32
    %1179 = vector.broadcast %cst_302 : f32 to vector<2x5xf32>
    %1180 = arith.mulf %1179, %1133 : vector<2x5xf32>
    %1181 = arith.addf %1180, %1178 : vector<2x5xf32>
    %cst_303 = arith.constant 1.000000e+00 : f32
    %1182 = vector.broadcast %cst_303 : f32 to vector<2x5xf32>
    %1183 = arith.cmpf ogt, %1133, %1182 : vector<2x5xf32>
    %cst_304 = arith.constant 1.000000e+00 : f32
    %cst_305 = arith.constant 0.000000e+00 : f32
    %1184 = vector.broadcast %cst_304 : f32 to vector<2x5xf32>
    %1185 = vector.broadcast %cst_305 : f32 to vector<2x5xf32>
    %1186 = arith.select %1183, %1184, %1185 : vector<2x5xi1>, vector<2x5xf32>
    %1187 = arith.subf %1181, %1186 : vector<2x5xf32>
    %1188 = vector.extract_strided_slice %1187 {offsets = [0, 0], sizes = [2, 1], strides = [1, 1]} : vector<2x5xf32> to vector<2x1xf32>
    %1189 = vector.shape_cast %1188 : vector<2x1xf32> to vector<2x1xf32>
    %1190 = vector.broadcast %1189 : vector<2x1xf32> to vector<2x3xf32>
    %cst_306 = arith.constant 1.000000e+00 : f32
    %1191 = vector.broadcast %cst_306 : f32 to vector<2x3xf32>
    %1192 = arith.cmpf ogt, %1190, %1191 : vector<2x3xf32>
    %1193 = arith.select %1192, %28, %41 : vector<2x3xi1>, vector<2x3xf32>
    %1194 = vector.extract_strided_slice %1187 {offsets = [0, 1], sizes = [2, 1], strides = [1, 1]} : vector<2x5xf32> to vector<2x1xf32>
    %1195 = vector.shape_cast %1194 : vector<2x1xf32> to vector<2x1xf32>
    %1196 = vector.broadcast %1195 : vector<2x1xf32> to vector<2x3xf32>
    %cst_307 = arith.constant 1.000000e+00 : f32
    %1197 = vector.broadcast %cst_307 : f32 to vector<2x3xf32>
    %1198 = arith.cmpf ogt, %1196, %1197 : vector<2x3xf32>
    %1199 = arith.select %1198, %31, %41 : vector<2x3xi1>, vector<2x3xf32>
    %1200 = vector.extract_strided_slice %1187 {offsets = [0, 2], sizes = [2, 1], strides = [1, 1]} : vector<2x5xf32> to vector<2x1xf32>
    %1201 = vector.shape_cast %1200 : vector<2x1xf32> to vector<2x1xf32>
    %1202 = vector.broadcast %1201 : vector<2x1xf32> to vector<2x3xf32>
    %cst_308 = arith.constant 1.000000e+00 : f32
    %1203 = vector.broadcast %cst_308 : f32 to vector<2x3xf32>
    %1204 = arith.cmpf ogt, %1202, %1203 : vector<2x3xf32>
    %1205 = arith.select %1204, %34, %41 : vector<2x3xi1>, vector<2x3xf32>
    %1206 = vector.extract_strided_slice %1187 {offsets = [0, 3], sizes = [2, 1], strides = [1, 1]} : vector<2x5xf32> to vector<2x1xf32>
    %1207 = vector.shape_cast %1206 : vector<2x1xf32> to vector<2x1xf32>
    %1208 = vector.broadcast %1207 : vector<2x1xf32> to vector<2x3xf32>
    %cst_309 = arith.constant 1.000000e+00 : f32
    %1209 = vector.broadcast %cst_309 : f32 to vector<2x3xf32>
    %1210 = arith.cmpf ogt, %1208, %1209 : vector<2x3xf32>
    %1211 = arith.select %1210, %37, %41 : vector<2x3xi1>, vector<2x3xf32>
    %1212 = vector.extract_strided_slice %1187 {offsets = [0, 4], sizes = [2, 1], strides = [1, 1]} : vector<2x5xf32> to vector<2x1xf32>
    %1213 = vector.shape_cast %1212 : vector<2x1xf32> to vector<2x1xf32>
    %1214 = vector.broadcast %1213 : vector<2x1xf32> to vector<2x3xf32>
    %cst_310 = arith.constant 1.000000e+00 : f32
    %1215 = vector.broadcast %cst_310 : f32 to vector<2x3xf32>
    %1216 = arith.cmpf ogt, %1214, %1215 : vector<2x3xf32>
    %1217 = arith.select %1216, %40, %41 : vector<2x3xi1>, vector<2x3xf32>
    %1218 = arith.addf %1193, %1199 : vector<2x3xf32>
    %1219 = arith.addf %1205, %1211 : vector<2x3xf32>
    %1220 = arith.addf %1218, %1219 : vector<2x3xf32>
    %1221 = arith.addf %1220, %1217 : vector<2x3xf32>
    %cst_311 = arith.constant 0.949999988 : f32
    %1222 = vector.broadcast %cst_311 : f32 to vector<2x3xf32>
    %1223 = arith.mulf %1222, %1176 : vector<2x3xf32>
    %1224 = arith.addf %1223, %1221 : vector<2x3xf32>
    %cst_312 = arith.constant 1.000000e+00 : f32
    %1225 = vector.broadcast %cst_312 : f32 to vector<2x3xf32>
    %1226 = arith.cmpf ogt, %1176, %1225 : vector<2x3xf32>
    %cst_313 = arith.constant 1.000000e+00 : f32
    %cst_314 = arith.constant 0.000000e+00 : f32
    %1227 = vector.broadcast %cst_313 : f32 to vector<2x3xf32>
    %1228 = vector.broadcast %cst_314 : f32 to vector<2x3xf32>
    %1229 = arith.select %1226, %1227, %1228 : vector<2x3xi1>, vector<2x3xf32>
    %1230 = arith.subf %1224, %1229 : vector<2x3xf32>
    %c42 = arith.constant 42 : index
    %c0_315 = arith.constant 0 : index
    %1231 = vector.load %arg3[%c42, %c0_315] : memref<50x3xf32, #tpu.memory_space<vmem>>, vector<2x3xf32>
    tpu.vector_store %arg3[%c42, %c0_315], %1230 {strides = array<i32>} : memref<50x3xf32, #tpu.memory_space<vmem>>, vector<2x3xf32>,
    %1232 = vector.extract_strided_slice %25 {offsets = [44, 0], sizes = [2, 5], strides = [1, 1]} : vector<50x5xf32> to vector<2x5xf32>
    %cst_316 = arith.constant 0.949999988 : f32
    %1233 = vector.broadcast %cst_316 : f32 to vector<2x5xf32>
    %1234 = arith.mulf %1233, %1187 : vector<2x5xf32>
    %1235 = arith.addf %1234, %1232 : vector<2x5xf32>
    %cst_317 = arith.constant 1.000000e+00 : f32
    %1236 = vector.broadcast %cst_317 : f32 to vector<2x5xf32>
    %1237 = arith.cmpf ogt, %1187, %1236 : vector<2x5xf32>
    %cst_318 = arith.constant 1.000000e+00 : f32
    %cst_319 = arith.constant 0.000000e+00 : f32
    %1238 = vector.broadcast %cst_318 : f32 to vector<2x5xf32>
    %1239 = vector.broadcast %cst_319 : f32 to vector<2x5xf32>
    %1240 = arith.select %1237, %1238, %1239 : vector<2x5xi1>, vector<2x5xf32>
    %1241 = arith.subf %1235, %1240 : vector<2x5xf32>
    %1242 = vector.extract_strided_slice %1241 {offsets = [0, 0], sizes = [2, 1], strides = [1, 1]} : vector<2x5xf32> to vector<2x1xf32>
    %1243 = vector.shape_cast %1242 : vector<2x1xf32> to vector<2x1xf32>
    %1244 = vector.broadcast %1243 : vector<2x1xf32> to vector<2x3xf32>
    %cst_320 = arith.constant 1.000000e+00 : f32
    %1245 = vector.broadcast %cst_320 : f32 to vector<2x3xf32>
    %1246 = arith.cmpf ogt, %1244, %1245 : vector<2x3xf32>
    %1247 = arith.select %1246, %28, %41 : vector<2x3xi1>, vector<2x3xf32>
    %1248 = vector.extract_strided_slice %1241 {offsets = [0, 1], sizes = [2, 1], strides = [1, 1]} : vector<2x5xf32> to vector<2x1xf32>
    %1249 = vector.shape_cast %1248 : vector<2x1xf32> to vector<2x1xf32>
    %1250 = vector.broadcast %1249 : vector<2x1xf32> to vector<2x3xf32>
    %cst_321 = arith.constant 1.000000e+00 : f32
    %1251 = vector.broadcast %cst_321 : f32 to vector<2x3xf32>
    %1252 = arith.cmpf ogt, %1250, %1251 : vector<2x3xf32>
    %1253 = arith.select %1252, %31, %41 : vector<2x3xi1>, vector<2x3xf32>
    %1254 = vector.extract_strided_slice %1241 {offsets = [0, 2], sizes = [2, 1], strides = [1, 1]} : vector<2x5xf32> to vector<2x1xf32>
    %1255 = vector.shape_cast %1254 : vector<2x1xf32> to vector<2x1xf32>
    %1256 = vector.broadcast %1255 : vector<2x1xf32> to vector<2x3xf32>
    %cst_322 = arith.constant 1.000000e+00 : f32
    %1257 = vector.broadcast %cst_322 : f32 to vector<2x3xf32>
    %1258 = arith.cmpf ogt, %1256, %1257 : vector<2x3xf32>
    %1259 = arith.select %1258, %34, %41 : vector<2x3xi1>, vector<2x3xf32>
    %1260 = vector.extract_strided_slice %1241 {offsets = [0, 3], sizes = [2, 1], strides = [1, 1]} : vector<2x5xf32> to vector<2x1xf32>
    %1261 = vector.shape_cast %1260 : vector<2x1xf32> to vector<2x1xf32>
    %1262 = vector.broadcast %1261 : vector<2x1xf32> to vector<2x3xf32>
    %cst_323 = arith.constant 1.000000e+00 : f32
    %1263 = vector.broadcast %cst_323 : f32 to vector<2x3xf32>
    %1264 = arith.cmpf ogt, %1262, %1263 : vector<2x3xf32>
    %1265 = arith.select %1264, %37, %41 : vector<2x3xi1>, vector<2x3xf32>
    %1266 = vector.extract_strided_slice %1241 {offsets = [0, 4], sizes = [2, 1], strides = [1, 1]} : vector<2x5xf32> to vector<2x1xf32>
    %1267 = vector.shape_cast %1266 : vector<2x1xf32> to vector<2x1xf32>
    %1268 = vector.broadcast %1267 : vector<2x1xf32> to vector<2x3xf32>
    %cst_324 = arith.constant 1.000000e+00 : f32
    %1269 = vector.broadcast %cst_324 : f32 to vector<2x3xf32>
    %1270 = arith.cmpf ogt, %1268, %1269 : vector<2x3xf32>
    %1271 = arith.select %1270, %40, %41 : vector<2x3xi1>, vector<2x3xf32>
    %1272 = arith.addf %1247, %1253 : vector<2x3xf32>
    %1273 = arith.addf %1259, %1265 : vector<2x3xf32>
    %1274 = arith.addf %1272, %1273 : vector<2x3xf32>
    %1275 = arith.addf %1274, %1271 : vector<2x3xf32>
    %cst_325 = arith.constant 0.949999988 : f32
    %1276 = vector.broadcast %cst_325 : f32 to vector<2x3xf32>
    %1277 = arith.mulf %1276, %1230 : vector<2x3xf32>
    %1278 = arith.addf %1277, %1275 : vector<2x3xf32>
    %cst_326 = arith.constant 1.000000e+00 : f32
    %1279 = vector.broadcast %cst_326 : f32 to vector<2x3xf32>
    %1280 = arith.cmpf ogt, %1230, %1279 : vector<2x3xf32>
    %cst_327 = arith.constant 1.000000e+00 : f32
    %cst_328 = arith.constant 0.000000e+00 : f32
    %1281 = vector.broadcast %cst_327 : f32 to vector<2x3xf32>
    %1282 = vector.broadcast %cst_328 : f32 to vector<2x3xf32>
    %1283 = arith.select %1280, %1281, %1282 : vector<2x3xi1>, vector<2x3xf32>
    %1284 = arith.subf %1278, %1283 : vector<2x3xf32>
    %c44 = arith.constant 44 : index
    %c0_329 = arith.constant 0 : index
    %1285 = vector.load %arg3[%c44, %c0_329] : memref<50x3xf32, #tpu.memory_space<vmem>>, vector<2x3xf32>
    tpu.vector_store %arg3[%c44, %c0_329], %1284 {strides = array<i32>} : memref<50x3xf32, #tpu.memory_space<vmem>>, vector<2x3xf32>,
    %1286 = vector.extract_strided_slice %25 {offsets = [46, 0], sizes = [2, 5], strides = [1, 1]} : vector<50x5xf32> to vector<2x5xf32>
    %cst_330 = arith.constant 0.949999988 : f32
    %1287 = vector.broadcast %cst_330 : f32 to vector<2x5xf32>
    %1288 = arith.mulf %1287, %1241 : vector<2x5xf32>
    %1289 = arith.addf %1288, %1286 : vector<2x5xf32>
    %cst_331 = arith.constant 1.000000e+00 : f32
    %1290 = vector.broadcast %cst_331 : f32 to vector<2x5xf32>
    %1291 = arith.cmpf ogt, %1241, %1290 : vector<2x5xf32>
    %cst_332 = arith.constant 1.000000e+00 : f32
    %cst_333 = arith.constant 0.000000e+00 : f32
    %1292 = vector.broadcast %cst_332 : f32 to vector<2x5xf32>
    %1293 = vector.broadcast %cst_333 : f32 to vector<2x5xf32>
    %1294 = arith.select %1291, %1292, %1293 : vector<2x5xi1>, vector<2x5xf32>
    %1295 = arith.subf %1289, %1294 : vector<2x5xf32>
    %1296 = vector.extract_strided_slice %1295 {offsets = [0, 0], sizes = [2, 1], strides = [1, 1]} : vector<2x5xf32> to vector<2x1xf32>
    %1297 = vector.shape_cast %1296 : vector<2x1xf32> to vector<2x1xf32>
    %1298 = vector.broadcast %1297 : vector<2x1xf32> to vector<2x3xf32>
    %cst_334 = arith.constant 1.000000e+00 : f32
    %1299 = vector.broadcast %cst_334 : f32 to vector<2x3xf32>
    %1300 = arith.cmpf ogt, %1298, %1299 : vector<2x3xf32>
    %1301 = arith.select %1300, %28, %41 : vector<2x3xi1>, vector<2x3xf32>
    %1302 = vector.extract_strided_slice %1295 {offsets = [0, 1], sizes = [2, 1], strides = [1, 1]} : vector<2x5xf32> to vector<2x1xf32>
    %1303 = vector.shape_cast %1302 : vector<2x1xf32> to vector<2x1xf32>
    %1304 = vector.broadcast %1303 : vector<2x1xf32> to vector<2x3xf32>
    %cst_335 = arith.constant 1.000000e+00 : f32
    %1305 = vector.broadcast %cst_335 : f32 to vector<2x3xf32>
    %1306 = arith.cmpf ogt, %1304, %1305 : vector<2x3xf32>
    %1307 = arith.select %1306, %31, %41 : vector<2x3xi1>, vector<2x3xf32>
    %1308 = vector.extract_strided_slice %1295 {offsets = [0, 2], sizes = [2, 1], strides = [1, 1]} : vector<2x5xf32> to vector<2x1xf32>
    %1309 = vector.shape_cast %1308 : vector<2x1xf32> to vector<2x1xf32>
    %1310 = vector.broadcast %1309 : vector<2x1xf32> to vector<2x3xf32>
    %cst_336 = arith.constant 1.000000e+00 : f32
    %1311 = vector.broadcast %cst_336 : f32 to vector<2x3xf32>
    %1312 = arith.cmpf ogt, %1310, %1311 : vector<2x3xf32>
    %1313 = arith.select %1312, %34, %41 : vector<2x3xi1>, vector<2x3xf32>
    %1314 = vector.extract_strided_slice %1295 {offsets = [0, 3], sizes = [2, 1], strides = [1, 1]} : vector<2x5xf32> to vector<2x1xf32>
    %1315 = vector.shape_cast %1314 : vector<2x1xf32> to vector<2x1xf32>
    %1316 = vector.broadcast %1315 : vector<2x1xf32> to vector<2x3xf32>
    %cst_337 = arith.constant 1.000000e+00 : f32
    %1317 = vector.broadcast %cst_337 : f32 to vector<2x3xf32>
    %1318 = arith.cmpf ogt, %1316, %1317 : vector<2x3xf32>
    %1319 = arith.select %1318, %37, %41 : vector<2x3xi1>, vector<2x3xf32>
    %1320 = vector.extract_strided_slice %1295 {offsets = [0, 4], sizes = [2, 1], strides = [1, 1]} : vector<2x5xf32> to vector<2x1xf32>
    %1321 = vector.shape_cast %1320 : vector<2x1xf32> to vector<2x1xf32>
    %1322 = vector.broadcast %1321 : vector<2x1xf32> to vector<2x3xf32>
    %cst_338 = arith.constant 1.000000e+00 : f32
    %1323 = vector.broadcast %cst_338 : f32 to vector<2x3xf32>
    %1324 = arith.cmpf ogt, %1322, %1323 : vector<2x3xf32>
    %1325 = arith.select %1324, %40, %41 : vector<2x3xi1>, vector<2x3xf32>
    %1326 = arith.addf %1301, %1307 : vector<2x3xf32>
    %1327 = arith.addf %1313, %1319 : vector<2x3xf32>
    %1328 = arith.addf %1326, %1327 : vector<2x3xf32>
    %1329 = arith.addf %1328, %1325 : vector<2x3xf32>
    %cst_339 = arith.constant 0.949999988 : f32
    %1330 = vector.broadcast %cst_339 : f32 to vector<2x3xf32>
    %1331 = arith.mulf %1330, %1284 : vector<2x3xf32>
    %1332 = arith.addf %1331, %1329 : vector<2x3xf32>
    %cst_340 = arith.constant 1.000000e+00 : f32
    %1333 = vector.broadcast %cst_340 : f32 to vector<2x3xf32>
    %1334 = arith.cmpf ogt, %1284, %1333 : vector<2x3xf32>
    %cst_341 = arith.constant 1.000000e+00 : f32
    %cst_342 = arith.constant 0.000000e+00 : f32
    %1335 = vector.broadcast %cst_341 : f32 to vector<2x3xf32>
    %1336 = vector.broadcast %cst_342 : f32 to vector<2x3xf32>
    %1337 = arith.select %1334, %1335, %1336 : vector<2x3xi1>, vector<2x3xf32>
    %1338 = arith.subf %1332, %1337 : vector<2x3xf32>
    %c46 = arith.constant 46 : index
    %c0_343 = arith.constant 0 : index
    %1339 = vector.load %arg3[%c46, %c0_343] : memref<50x3xf32, #tpu.memory_space<vmem>>, vector<2x3xf32>
    tpu.vector_store %arg3[%c46, %c0_343], %1338 {strides = array<i32>} : memref<50x3xf32, #tpu.memory_space<vmem>>, vector<2x3xf32>,
    %1340 = vector.extract_strided_slice %25 {offsets = [48, 0], sizes = [2, 5], strides = [1, 1]} : vector<50x5xf32> to vector<2x5xf32>
    %cst_344 = arith.constant 0.949999988 : f32
    %1341 = vector.broadcast %cst_344 : f32 to vector<2x5xf32>
    %1342 = arith.mulf %1341, %1295 : vector<2x5xf32>
    %1343 = arith.addf %1342, %1340 : vector<2x5xf32>
    %cst_345 = arith.constant 1.000000e+00 : f32
    %1344 = vector.broadcast %cst_345 : f32 to vector<2x5xf32>
    %1345 = arith.cmpf ogt, %1295, %1344 : vector<2x5xf32>
    %cst_346 = arith.constant 1.000000e+00 : f32
    %cst_347 = arith.constant 0.000000e+00 : f32
    %1346 = vector.broadcast %cst_346 : f32 to vector<2x5xf32>
    %1347 = vector.broadcast %cst_347 : f32 to vector<2x5xf32>
    %1348 = arith.select %1345, %1346, %1347 : vector<2x5xi1>, vector<2x5xf32>
    %1349 = arith.subf %1343, %1348 : vector<2x5xf32>
    %1350 = vector.extract_strided_slice %1349 {offsets = [0, 0], sizes = [2, 1], strides = [1, 1]} : vector<2x5xf32> to vector<2x1xf32>
    %1351 = vector.shape_cast %1350 : vector<2x1xf32> to vector<2x1xf32>
    %1352 = vector.broadcast %1351 : vector<2x1xf32> to vector<2x3xf32>
    %cst_348 = arith.constant 1.000000e+00 : f32
    %1353 = vector.broadcast %cst_348 : f32 to vector<2x3xf32>
    %1354 = arith.cmpf ogt, %1352, %1353 : vector<2x3xf32>
    %1355 = arith.select %1354, %28, %41 : vector<2x3xi1>, vector<2x3xf32>
    %1356 = vector.extract_strided_slice %1349 {offsets = [0, 1], sizes = [2, 1], strides = [1, 1]} : vector<2x5xf32> to vector<2x1xf32>
    %1357 = vector.shape_cast %1356 : vector<2x1xf32> to vector<2x1xf32>
    %1358 = vector.broadcast %1357 : vector<2x1xf32> to vector<2x3xf32>
    %cst_349 = arith.constant 1.000000e+00 : f32
    %1359 = vector.broadcast %cst_349 : f32 to vector<2x3xf32>
    %1360 = arith.cmpf ogt, %1358, %1359 : vector<2x3xf32>
    %1361 = arith.select %1360, %31, %41 : vector<2x3xi1>, vector<2x3xf32>
    %1362 = vector.extract_strided_slice %1349 {offsets = [0, 2], sizes = [2, 1], strides = [1, 1]} : vector<2x5xf32> to vector<2x1xf32>
    %1363 = vector.shape_cast %1362 : vector<2x1xf32> to vector<2x1xf32>
    %1364 = vector.broadcast %1363 : vector<2x1xf32> to vector<2x3xf32>
    %cst_350 = arith.constant 1.000000e+00 : f32
    %1365 = vector.broadcast %cst_350 : f32 to vector<2x3xf32>
    %1366 = arith.cmpf ogt, %1364, %1365 : vector<2x3xf32>
    %1367 = arith.select %1366, %34, %41 : vector<2x3xi1>, vector<2x3xf32>
    %1368 = vector.extract_strided_slice %1349 {offsets = [0, 3], sizes = [2, 1], strides = [1, 1]} : vector<2x5xf32> to vector<2x1xf32>
    %1369 = vector.shape_cast %1368 : vector<2x1xf32> to vector<2x1xf32>
    %1370 = vector.broadcast %1369 : vector<2x1xf32> to vector<2x3xf32>
    %cst_351 = arith.constant 1.000000e+00 : f32
    %1371 = vector.broadcast %cst_351 : f32 to vector<2x3xf32>
    %1372 = arith.cmpf ogt, %1370, %1371 : vector<2x3xf32>
    %1373 = arith.select %1372, %37, %41 : vector<2x3xi1>, vector<2x3xf32>
    %1374 = vector.extract_strided_slice %1349 {offsets = [0, 4], sizes = [2, 1], strides = [1, 1]} : vector<2x5xf32> to vector<2x1xf32>
    %1375 = vector.shape_cast %1374 : vector<2x1xf32> to vector<2x1xf32>
    %1376 = vector.broadcast %1375 : vector<2x1xf32> to vector<2x3xf32>
    %cst_352 = arith.constant 1.000000e+00 : f32
    %1377 = vector.broadcast %cst_352 : f32 to vector<2x3xf32>
    %1378 = arith.cmpf ogt, %1376, %1377 : vector<2x3xf32>
    %1379 = arith.select %1378, %40, %41 : vector<2x3xi1>, vector<2x3xf32>
    %1380 = arith.addf %1355, %1361 : vector<2x3xf32>
    %1381 = arith.addf %1367, %1373 : vector<2x3xf32>
    %1382 = arith.addf %1380, %1381 : vector<2x3xf32>
    %1383 = arith.addf %1382, %1379 : vector<2x3xf32>
    %cst_353 = arith.constant 0.949999988 : f32
    %1384 = vector.broadcast %cst_353 : f32 to vector<2x3xf32>
    %1385 = arith.mulf %1384, %1338 : vector<2x3xf32>
    %1386 = arith.addf %1385, %1383 : vector<2x3xf32>
    %cst_354 = arith.constant 1.000000e+00 : f32
    %1387 = vector.broadcast %cst_354 : f32 to vector<2x3xf32>
    %1388 = arith.cmpf ogt, %1338, %1387 : vector<2x3xf32>
    %cst_355 = arith.constant 1.000000e+00 : f32
    %cst_356 = arith.constant 0.000000e+00 : f32
    %1389 = vector.broadcast %cst_355 : f32 to vector<2x3xf32>
    %1390 = vector.broadcast %cst_356 : f32 to vector<2x3xf32>
    %1391 = arith.select %1388, %1389, %1390 : vector<2x3xi1>, vector<2x3xf32>
    %1392 = arith.subf %1386, %1391 : vector<2x3xf32>
    %c48 = arith.constant 48 : index
    %c0_357 = arith.constant 0 : index
    %1393 = vector.load %arg3[%c48, %c0_357] : memref<50x3xf32, #tpu.memory_space<vmem>>, vector<2x3xf32>
    tpu.vector_store %arg3[%c48, %c0_357], %1392 {strides = array<i32>} : memref<50x3xf32, #tpu.memory_space<vmem>>, vector<2x3xf32>,
    return
  }
}

</mosaic_0001>

<bundles_post_ra>
// kernel: snn_forward.1
= control target key start
LH: loop header
LB: loop body
LE: loop exit
PB: predicated region body
PF: predicated region fallthrough
CT: control target
= control target key end

     0   :  { %v1517_v0 = vmov 0   ;;  %v1518_v7 = vmov 1   ;;  %v1519_v8 = vmov 3   ;;  %v1520_v10 = vmov 2   ;;  %s2450_s0 = inlined_call_operand.vmem [shape: f32[50,4], index: 0, kind: input, shape index: {}]   ;;  %s2451_s1 = inlined_call_operand.vmem [shape: f32[4,5], index: 1, kind: input, shape index: {}]   ;;  %s2452_s2 = inlined_call_operand.vmem [shape: f32[5,3], index: 2, kind: input, shape index: {}]   ;;  %s2453_s3 = inlined_call_operand.vmem [shape: f32[50,3], index: 3, kind: output, shape index: {}]  }
   0x1   :  { %1401 = vset.pattern.permute.xlu2 %v1517_v0  ;;  %1400 = vset.pattern.permute.xlu1 %v1517_v0  ;;  %v18_v1 = vld [vmem:[%s2450_s0 + $0x20] sm:$0xff]  ;;  %v16_v2 = vld [vmem:[%s2450_s0 + $0x10] sm:$0xff]  ;;  %v19_v4 = vld [vmem:[%s2450_s0 + $0x28] sm:$0xff]  ;;  %v1521_v60 = vmov 0.0  }
   0x2   :  { %v14_v3 = vld [vmem:[%s2450_s0] sm:$0xff]  ;;  %1399 = vset.pattern.permute.xlu0 %v1517_v0  ;;  %45 = vperm.xlu2 %1401, %v18_v1   ;;  %v17_v5 = vld [vmem:[%s2450_s0 + $0x18] sm:$0xff]  ;;  %v15_v6 = vld [vmem:[%s2450_s0 + $0x8] sm:$0xff] }
   0x3   :  { %35 = vperm.xlu1 %1400, %v16_v2   ;;  %25 = vperm.xlu0 %1399, %v14_v3   ;;  %v1571_v9 = vld [vmem:[%s2450_s0 + $0x30] sm:$0x3]  ;;  %v21_v26 = vld [vmem:[%s2451_s1] sm:$0xf] }
   0x4   :  { %v1606_v28 = vperm.slane %v21_v26, 3  ;;  %v1609_v32 = vperm.slane %v21_v26, 1  ;;  %v1611_v34 = vperm.slane %v21_v26, 0  ;;  %v1614_v36 = vperm.slane %v21_v26, 2 }
   0xa   :  { %50 = vperm.xlu2 %1401, %v19_v4  }
   0xb   :  { %40 = vperm.xlu1 %1400, %v17_v5   ;;  %30 = vperm.xlu0 %1399, %v15_v6  }
  0x12   :  { %1403 = vset.pattern.permute.xlu2 %v1518_v7 }
  0x13   :  { %1402 = vset.pattern.permute.xlu1 %v1518_v7  ;;  %1404 = vset.pattern.permute.xlu0 %v1518_v7 }
  0x14   :  { %71 = vperm.xlu2 %1403, %v15_v6   ;;  %67 = vperm.xlu1 %1402, %v14_v3  }
  0x15   :  { %75 = vperm.xlu0 %1404, %v16_v2  }
  0x1c   :  { %83 = vperm.xlu2 %1403, %v18_v1   ;;  %79 = vperm.xlu1 %1402, %v17_v5  }
  0x1d   :  { %1408 = vset.pattern.permute.xlu0 %v1519_v8 }
  0x1e   :  { %143 = vperm.xlu0 %1408, %v15_v6  }
  0x24   :  { %91 = vperm.xlu2 %1403, %v1571_v9   ;;  %87 = vperm.xlu1 %1402, %v19_v4  }
  0x26   :  { %163 = vperm.xlu0 %1408, %v1571_v9  }
  0x2c   :  { %1406 = vset.pattern.permute.xlu2 %v1520_v10  ;;  %1405 = vset.pattern.permute.xlu1 %v1520_v10 }
  0x2d   :  { %111 = vperm.xlu2 %1406, %v16_v2   ;;  %107 = vperm.xlu1 %1405, %v15_v6  }
  0x2e   :  { %1410 = vset.pattern.permute.xlu0 %v1520_v10 }
  0x2f   :  { %103 = vperm.xlu0 %1410, %v14_v3  }
  0x35   :  { %119 = vperm.xlu2 %1406, %v18_v1   ;;  %115 = vperm.xlu1 %1405, %v17_v5  }
  0x37   :  { %123 = vperm.xlu0 %1410, %v19_v4  }
  0x3d   :  { %1407 = vset.pattern.permute.xlu2 %v1519_v8  ;;  %127 = vperm.xlu1 %1405, %v1571_v9  }
  0x3e   :  { %139 = vperm.xlu2 %1407, %v14_v3  }
  0x45   :  { %1409 = vset.pattern.permute.xlu1 %v1519_v8 }
  0x46   :  { %151 = vperm.xlu2 %1407, %v17_v5   ;;  %147 = vperm.xlu1 %1409, %v16_v2  }
  0x4e   :  { %159 = vperm.xlu2 %1407, %v19_v4   ;;  %155 = vperm.xlu1 %1409, %v18_v1  }
  0x56   :  { %1412 = vset.pattern.permute.xlu2 %v1518_v7  ;;  %1411 = vset.pattern.permute.xlu1 %v1517_v0 }
  0x5c   :  { %v1583_v11 = vpop.permute.xlu2 %45 }
  0x64   :  { %v51_v12 = vpop.permute.xlu2 %50 }
  0x65   :  { %v64_v56 = vmul.f32 %v1611_v34, %v51_v12 }
  0x6e   :  { %v1585_v13 = vpop.permute.xlu2 %71 }
  0x75   :  { %v26_v14 = vpop.permute.xlu0 %25  ;;  %v1587_v15 = vpop.permute.xlu1 %35 }
  0x76   :  { %v1589_v16 = vpop.permute.xlu2 %83  ;;  %v59_v40 = vmul.f32 %v1611_v34, %v26_v14 }
  0x7d   :  { %v1591_v17 = vpop.permute.xlu0 %30  ;;  %v41_v18 = vpop.permute.xlu1 %40 }
  0x7e   :  { %v1593_v19 = vpop.permute.xlu2 %91  ;;  %v62_v45 = vmul.f32 %v1611_v34, %v41_v18  ;;  %v1522_v18 = vmov 4  }
  0x86   :  { %v68_v20 = vpop.permute.xlu1 %67 }
  0x87   :  { %v1595_v21 = vpop.permute.xlu0 %75  ;;  %v1597_v22 = vpop.permute.xlu2 %111  ;;  %v95_v35 = vmul.f32 %v1609_v32, %v68_v20 }
  0x89   :  { %v174_v42 = vadd.f32 %v95_v35, %v59_v40 }
  0x8e   :  { %v80_v23 = vpop.permute.xlu1 %79 }
  0x8f   :  { %v1599_v24 = vpop.permute.xlu2 %119  ;;  %v98_v46 = vmul.f32 %v1609_v32, %v80_v23 }
  0x90   :  { %v1601_v25 = vpop.permute.xlu0 %143 }
  0x91   :  { %v177_v59 = vadd.f32 %v98_v46, %v62_v45  ;;  %v168_v35 = vmul.f32 %v1606_v28, %v1601_v25  ;;  %v99_v46 = vmul.f32 %v1609_v32, %v1589_v16 }
  0x96   :  { %v88_v27 = vpop.permute.xlu1 %87 }
  0x97   :  { %v100_v48 = vmul.f32 %v1609_v32, %v88_v27 }
  0x98   :  { %v164_v29 = vpop.permute.xlu0 %163  ;;  %v140_v30 = vpop.permute.xlu2 %139 }
  0x99   :  { %v173_v31 = vmul.f32 %v1606_v28, %v164_v29  ;;  %v167_v37 = vmul.f32 %v1606_v28, %v140_v30  ;;  %v179_v63 = vadd.f32 %v100_v48, %v64_v56  ;;  %v60_v29 = vmul.f32 %v1611_v34, %v1591_v17 }
  0x9f   :  { %v108_v33 = vpop.permute.xlu1 %107 }
  0xa0   :  { %v152_v38 = vpop.permute.xlu2 %151  ;;  %v132_v26 = vmul.f32 %v1614_v36, %v108_v33 }
  0xa1   :  { %v104_v39 = vpop.permute.xlu0 %103  ;;  %v170_v52 = vmul.f32 %v1606_v28, %v152_v38 }
  0xa2   :  { %v131_v41 = vmul.f32 %v1614_v36, %v104_v39  ;;  %v96_v39 = vmul.f32 %v1609_v32, %v1585_v13  ;;  %v182_v33 = vadd.f32 %v168_v35, %v132_v26 }
  0xa4   :  { %v181_v43 = vadd.f32 %v167_v37, %v131_v41 }
  0xa6   :  { %v188_v44 = vadd.f32 %v181_v43, %v174_v42  ;;  %v175_v42 = vadd.f32 %v96_v39, %v60_v29 }
  0xa7   :  { %v116_v47 = vpop.permute.xlu1 %115 }
  0xa8   :  { %v243_v49 = vmul.f32 0.95, %v188_v44  ;;  %v245_v50 = vrot.slane %v188_v44, 2  ;;  %vm248_vm0 = vcmp.gt.f32.partialorder %v188_v44, 1.0  ;;  %218 = vperm.xlu0 %1410, %v188_v44   ;;  %212 = vperm.xlu2 %1412, %v188_v44   ;;  %v160_v51 = vpop.permute.xlu2 %159  ;;  %v134_v53 = vmul.f32 %v1614_v36, %v116_v47 }
  0xa9   :  { %206 = vperm.xlu1 %1411, %v188_v44   ;;  %v172_v54 = vmul.f32 %v1606_v28, %v160_v51  ;;  %v124_v55 = vpop.permute.xlu0 %123  ;;  %v249_v61 = vsel %vm248_vm0, 1.0, %v1521_v60  ;;  %v293_v5 = vrot.slane %v188_v44, 4  ;;  %v341_v38 = vrot.slane %v188_v44, 6 }
  0xaa   :  { %v247_v57 = vadd.f32 %v245_v50, %v243_v49  ;;  %v136_v58 = vmul.f32 %v1614_v36, %v124_v55  ;;  %v184_v62 = vadd.f32 %v170_v52, %v134_v53  ;;  %v63_v50 = vmul.f32 %v1611_v34, %v1583_v11 }
  0xab   :  { %v135_v51 = vmul.f32 %v1614_v36, %v1599_v24 }
  0xac   :  { %v1628_v1 = vsub.f32 %v247_v57, %v249_v61  ;;  %v186_v2 = vadd.f32 %v172_v54, %v136_v58  ;;  %v1630_v3 = vadd.f32 %v184_v62, %v177_v59  ;;  %v178_v54 = vadd.f32 %v99_v46, %v63_v50 }
  0xae   :  { %v292_v4 = vmul.f32 0.95, %v1628_v1  ;;  %vm296_vm1 = vcmp.gt.f32.partialorder %v1628_v1, 1.0  ;;  %v1634_v6 = vadd.f32 %v186_v2, %v179_v63  ;;  %v61_v63 = vmul.f32 %v1611_v34, %v1587_v15 }
  0xaf   :  { %v128_v12 = vpop.permute.xlu1 %127  ;;  %v297_v20 = vsel %vm296_vm1, 1.0, %v1521_v60  ;;  %v97_v2 = vmul.f32 %v1609_v32, %v1595_v21 }
  0xb0   :  { %v295_v14 = vadd.f32 %v293_v5, %v292_v4  ;;  %1414 = vset.pattern.permute.xlu2 %v1522_v18  ;;  %1425 = vset.pattern.permute.xlu0 %v1519_v8  ;;  %v137_v23 = vmul.f32 %v1614_v36, %v128_v12  ;;  %v133_v4 = vmul.f32 %v1614_v36, %v1597_v22 }
  0xb1   :  { %1413 = vset.pattern.permute.xlu1 %v1519_v8  ;;  %230 = vperm.xlu2 %1414, %v188_v44   ;;  %v176_v22 = vadd.f32 %v97_v2, %v61_v63 }
  0xb2   :  { %v1642_v27 = vsub.f32 %v295_v14, %v297_v20  ;;  %224 = vperm.xlu1 %1413, %v188_v44   ;;  %v1646_v30 = vadd.f32 %v173_v31, %v137_v23  ;;  %v189_v31 = vadd.f32 %v182_v33, %v175_v42 }
  0xb4   :  { %v340_v37 = vmul.f32 0.95, %v1642_v27  ;;  %vm344_vm2 = vcmp.gt.f32.partialorder %v1642_v27, 1.0  ;;  %v436_v47 = vrot.slane %v189_v31, 2  ;;  %v484_v24 = vrot.slane %v189_v31, 4 }
  0xb5   :  { %v345_v41 = vsel %vm344_vm2, 1.0, %v1521_v60  ;;  %v532_v5 = vrot.slane %v189_v31, 6 }
  0xb6   :  { %v343_v40 = vadd.f32 %v341_v38, %v340_v37 }
  0xb8   :  { %v1655_v43 = vsub.f32 %v343_v40, %v345_v41  ;;  %v148_v17 = vpop.permute.xlu1 %147 }
  0xb9   :  { %1416 = vset.pattern.permute.xlu2 %v1518_v7  ;;  %v169_v61 = vmul.f32 %v1606_v28, %v148_v17 }
  0xba   :  { %v388_v25 = vmul.f32 0.95, %v1655_v43  ;;  %vm390_vm3 = vcmp.gt.f32.partialorder %v1655_v43, 1.0  ;;  %1415 = vset.pattern.permute.xlu1 %v1517_v0  ;;  %259 = vperm.xlu2 %1416, %v1628_v1  }
  0xbb   :  { %253 = vperm.xlu1 %1415, %v1628_v1   ;;  %367 = vperm.xlu0 %1425, %v1655_v43   ;;  %v391_v44 = vsel %vm390_vm3, 1.0, %v1521_v60  ;;  %v183_v15 = vadd.f32 %v169_v61, %v133_v4  ;;  %v914_v4 = vrot.slane %v1630_v3, 6 }
  0xbc   :  { %v389_v13 = vadd.f32 %v388_v25, %v189_v31 }
  0xbd   :  { %v190_v14 = vadd.f32 %v183_v15, %v176_v22 }
  0xbe   :  { %v1665_v45 = vsub.f32 %v389_v13, %v391_v44 }
  0xbf   :  { %v627_v37 = vrot.slane %v190_v14, 2  ;;  %v675_v41 = vrot.slane %v190_v14, 4  ;;  %v723_v13 = vrot.slane %v190_v14, 6 }
  0xc0   :  { %v434_v48 = vmul.f32 0.95, %v1665_v45  ;;  %vm439_vm4 = vcmp.gt.f32.partialorder %v1665_v45, 1.0  ;;  %v156_v49 = vpop.permute.xlu1 %155 }
  0xc1   :  { %v171_v52 = vmul.f32 %v1606_v28, %v156_v49  ;;  %v440_v16 = vsel %vm439_vm4, 1.0, %v1521_v60 }
  0xc2   :  { %v438_v53 = vadd.f32 %v436_v47, %v434_v48  ;;  %1418 = vset.pattern.permute.xlu2 %v1522_v18 }
  0xc3   :  { %v185_v55 = vadd.f32 %v171_v52, %v135_v51  ;;  %1417 = vset.pattern.permute.xlu1 %v1519_v8  ;;  %413 = vperm.xlu0 %1425, %v1665_v45   ;;  %v818_v52 = vrot.slane %v1630_v3, 2 }
  0xc4   :  { %v1680_v56 = vsub.f32 %v438_v53, %v440_v16  ;;  %277 = vperm.xlu2 %1418, %v1628_v1   ;;  %271 = vperm.xlu1 %1417, %v1628_v1  }
  0xc5   :  { %v1684_v11 = vadd.f32 %v185_v55, %v178_v54 }
  0xc6   :  { %v483_v57 = vmul.f32 0.95, %v1680_v56  ;;  %vm487_vm5 = vcmp.gt.f32.partialorder %v1680_v56, 1.0 }
  0xc7   :  { %v488_v59 = vsel %vm487_vm5, 1.0, %v1521_v60  ;;  %vm241_vm5 = vcmask 17408  }
  0xc8   :  { %v486_v58 = vadd.f32 %v484_v24, %v483_v57  ;;  %v866_v24 = vrot.slane %v1630_v3, 4 }
  0xca   :  { %v1690_v62 = vsub.f32 %v486_v58, %v488_v59 }
  0xcb   :  { %1432 = vset.pattern.permute.xlu0 %v1518_v7 }
  0xcc   :  { %v531_v12 = vmul.f32 0.95, %v1690_v62  ;;  %vm535_vm6 = vcmp.gt.f32.partialorder %v1690_v62, 1.0  ;;  %1420 = vset.pattern.permute.xlu2 %v1520_v10  ;;  %1419 = vset.pattern.permute.xlu1 %v1518_v7 }
  0xcd   :  { %450 = vperm.xlu0 %1432, %v1680_v56   ;;  %313 = vperm.xlu2 %1420, %v1642_v27   ;;  %v536_v28 = vsel %vm535_vm6, 1.0, %v1521_v60 }
  0xce   :  { %v534_v21 = vadd.f32 %v532_v5, %v531_v12  ;;  %307 = vperm.xlu1 %1419, %v1642_v27  }
  0xd0   :  { %v1707_v36 = vsub.f32 %v534_v21, %v536_v28  ;;  %v22_v28 = vld [vmem:[%s2452_s2] sm:$0x1f] }
  0xd2   :  { %v579_v20 = vmul.f32 0.95, %v1707_v36  ;;  %vm581_vm7 = vcmp.gt.f32.partialorder %v1707_v36, 1.0 }
  0xd3   :  { %v582_v26 = vsel %vm581_vm7, 1.0, %v1521_v60 }
  0xd4   :  { %v580_v23 = vadd.f32 %v579_v20, %v190_v14  ;;  %v1811_v14 = vperm.slane %v22_v28, 2  ;;  %v1813_v20 = vperm.slane %v22_v28, 3 }
  0xd5   :  { %498 = vperm.xlu0 %1432, %v1690_v62   ;;  %1422 = vset.pattern.permute.xlu2 %v1522_v18 }
  0xd6   :  { %v1714_v29 = vsub.f32 %v580_v23, %v582_v26  ;;  %1421 = vset.pattern.permute.xlu1 %v1519_v8  ;;  %325 = vperm.xlu2 %1422, %v1642_v27  }
  0xd7   :  { %319 = vperm.xlu1 %1421, %v1642_v27  }
  0xd8   :  { %v625_v35 = vmul.f32 0.95, %v1714_v29  ;;  %vm630_vm8 = vcmp.gt.f32.partialorder %v1714_v29, 1.0 }
  0xd9   :  { %v631_v39 = vsel %vm630_vm8, 1.0, %v1521_v60 }
  0xda   :  { %v629_v38 = vadd.f32 %v627_v37, %v625_v35 }
  0xdc   :  { %v1722_v33 = vsub.f32 %v629_v38, %v631_v39  ;;  %v1818_v38 = vperm.slane %v22_v28, 4 }
  0xdd   :  { %1439 = vset.pattern.permute.xlu0 %v1522_v18 }
  0xde   :  { %v674_v40 = vmul.f32 0.95, %v1722_v33  ;;  %vm678_vm9 = vcmp.gt.f32.partialorder %v1722_v33, 1.0  ;;  %516 = vperm.xlu0 %1439, %v1690_v62   ;;  %1424 = vset.pattern.permute.xlu2 %v1520_v10 }
  0xdf   :  { %1423 = vset.pattern.permute.xlu1 %v1518_v7  ;;  %361 = vperm.xlu2 %1424, %v1655_v43   ;;  %v679_v17 = vsel %vm678_vm9, 1.0, %v1521_v60 }
  0xe0   :  { %v677_v42 = vadd.f32 %v675_v41, %v674_v40  ;;  %355 = vperm.xlu1 %1423, %v1655_v43  }
  0xe2   :  { %v1733_v31 = vsub.f32 %v677_v42, %v679_v17 }
  0xe4   :  { %v722_v25 = vmul.f32 0.95, %v1733_v31  ;;  %vm726_vm10 = vcmp.gt.f32.partialorder %v1733_v31, 1.0 }
  0xe5   :  { %v727_v46 = vsel %vm726_vm10, 1.0, %v1521_v60 }
  0xe6   :  { %v725_v44 = vadd.f32 %v723_v13, %v722_v25  ;;  %564 = vperm.xlu0 %1439, %v1707_v36  }
  0xe7   :  { %1427 = vset.pattern.permute.xlu2 %v1517_v0 }
  0xe8   :  { %v1740_v47 = vsub.f32 %v725_v44, %v727_v46  ;;  %1426 = vset.pattern.permute.xlu1 %v1522_v18  ;;  %395 = vperm.xlu2 %1427, %v1665_v45  }
  0xe9   :  { %373 = vperm.xlu1 %1426, %v1655_v43  }
  0xea   :  { %v770_v48 = vmul.f32 0.95, %v1740_v47  ;;  %vm772_vm11 = vcmp.gt.f32.partialorder %v1740_v47, 1.0 }
  0xeb   :  { %v773_v50 = vsel %vm772_vm11, 1.0, %v1521_v60 }
  0xec   :  { %v771_v49 = vadd.f32 %v770_v48, %v1630_v3 }
  0xee   :  { %v1749_v51 = vsub.f32 %v771_v49, %v773_v50  ;;  %1464 = vset.pattern.permute.xlu0 %v1518_v7 }
  0xf0   :  { %v816_v53 = vmul.f32 0.95, %v1749_v51  ;;  %vm821_vm12 = vcmp.gt.f32.partialorder %v1749_v51, 1.0  ;;  %1429 = vset.pattern.permute.xlu2 %v1520_v10 }
  0xf1   :  { %1428 = vset.pattern.permute.xlu1 %v1518_v7  ;;  %407 = vperm.xlu2 %1429, %v1665_v45   ;;  %v822_v16 = vsel %vm821_vm12, 1.0, %v1521_v60 }
  0xf2   :  { %v820_v54 = vadd.f32 %v818_v52, %v816_v53  ;;  %401 = vperm.xlu1 %1428, %v1665_v45  }
  0xf4   :  { %v1760_v55 = vsub.f32 %v820_v54, %v822_v16 }
  0xf6   :  { %v865_v57 = vmul.f32 0.95, %v1760_v55  ;;  %832 = vperm.xlu0 %1464, %v1760_v55   ;;  %vm869_vm13 = vcmp.gt.f32.partialorder %v1760_v55, 1.0 }
  0xf7   :  { %v870_v59 = vsel %vm869_vm13, 1.0, %v1521_v60 }
  0xf8   :  { %v868_v58 = vadd.f32 %v866_v24, %v865_v57  ;;  %v1009_v57 = vrot.slane %v1684_v11, 2 }
  0xf9   :  { %1431 = vset.pattern.permute.xlu2 %v1517_v0 }
  0xfa   :  { %1430 = vset.pattern.permute.xlu1 %v1522_v18  ;;  %444 = vperm.xlu2 %1431, %v1680_v56   ;;  %v1771_v61 = vsub.f32 %v868_v58, %v870_v59 }
  0xfb   :  { %419 = vperm.xlu1 %1430, %v1665_v45  }
  0xfc   :  { %v913_v2 = vmul.f32 0.95, %v1771_v61  ;;  %vm917_vm14 = vcmp.gt.f32.partialorder %v1771_v61, 1.0 }
  0xfd   :  { %v918_v12 = vsel %vm917_vm14, 1.0, %v1521_v60 }
  0xfe   :  { %880 = vperm.xlu0 %1464, %v1771_v61   ;;  %v916_v45 = vadd.f32 %v914_v4, %v913_v2 }
 0x100   :  { %v1787_v15 = vsub.f32 %v916_v45, %v918_v12 }
 0x102   :  { %1434 = vset.pattern.permute.xlu2 %v1519_v8  ;;  %v213_v63 = vpop.permute.xlu2 %212  ;;  %v961_v23 = vmul.f32 0.95, %v1787_v15  ;;  %vm963_vm4 = vcmp.gt.f32.partialorder %v1787_v15, 1.0 }
 0x103   :  { %1433 = vset.pattern.permute.xlu1 %v1520_v10  ;;  %462 = vperm.xlu2 %1434, %v1680_v56   ;;  %vm215_vm0 = vcmp.gt.f32.partialorder %v213_v63, 1.0  ;;  %v964_v46 = vsel %vm963_vm4, 1.0, %v1521_v60 }
 0x104   :  { %456 = vperm.xlu1 %1433, %v1680_v56   ;;  %v962_v25 = vadd.f32 %v961_v23, %v1684_v11 }
 0x106   :  { %1471 = vset.pattern.permute.xlu0 %v1522_v18  ;;  %v1833_v49 = vsub.f32 %v962_v25, %v964_v46 }
 0x107   :  { %898 = vperm.xlu0 %1471, %v1771_v61  }
 0x108   :  { %v1007_v54 = vmul.f32 0.95, %v1833_v49  ;;  %vm1012_vm8 = vcmp.gt.f32.partialorder %v1833_v49, 1.0 }
 0x109   :  { %v1013_v63 = vsel %vm1012_vm8, 1.0, %v1521_v60 }
 0x10a   :  { %v1011_v58 = vadd.f32 %v1009_v57, %v1007_v54 }
 0x10b   :  { %1436 = vset.pattern.permute.xlu2 %v1517_v0  ;;  %v231_v5 = vpop.permute.xlu2 %230 }
 0x10c   :  { %1435 = vset.pattern.permute.xlu1 %v1522_v18  ;;  %492 = vperm.xlu2 %1436, %v1690_v62   ;;  %vm233_vm3 = vcmp.gt.f32.partialorder %v231_v5, 1.0  ;;  %v1857_v2 = vsub.f32 %v1011_v58, %v1013_v63 }
 0x10d   :  { %468 = vperm.xlu1 %1435, %v1680_v56   ;;  %v234_v44 = vsel %vm233_vm3, %v1818_v38, 0.0 }
 0x10e   :  { %v1056_v46 = vmul.f32 0.95, %v1857_v2 }
 0x10f   :  { %946 = vperm.xlu0 %1471, %v1787_v15  }
 0x114   :  { %1438 = vset.pattern.permute.xlu2 %v1519_v8  ;;  %v260_v3 = vpop.permute.xlu2 %259 }
 0x115   :  { %1437 = vset.pattern.permute.xlu1 %v1520_v10  ;;  %510 = vperm.xlu2 %1438, %v1690_v62   ;;  %vm262_vm6 = vcmp.gt.f32.partialorder %v260_v3, 1.0 }
 0x116   :  { %504 = vperm.xlu1 %1437, %v1690_v62   ;;  %v1806_v62 = vperm.slane %v22_v28, 0 }
 0x117   :  { %1476 = vset.pattern.permute.xlu0 %v1520_v10 }
 0x118   :  { %265 = vperm.xlu0 %1476, %v1628_v1   ;;  %v1809_v1 = vperm.slane %v22_v28, 1 }
 0x11a   :  { %v219_v22 = vpop.permute.xlu0 %218  ;;  %v216_v37 = vsel %vm215_vm0, %v1809_v1, 0.0  ;;  %v263_v52 = vsel %vm262_vm6, %v1809_v1, 0.0 }
 0x11b   :  { %v207_v21 = vpop.permute.xlu1 %206  ;;  %vm221_vm1 = vcmp.gt.f32.partialorder %v219_v22, 1.0 }
 0x11c   :  { %vm209_vm15 = vcmp.gt.f32.partialorder %v207_v21, 1.0  ;;  %v222_v39 = vsel %vm221_vm1, %v1811_v14, 0.0  ;;  %vm1060_vm1 = vcmp.gt.f32.partialorder %v1857_v2, 1.0 }
 0x11d   :  { %1441 = vset.pattern.permute.xlu2 %v1518_v7  ;;  %v210_v26 = vsel %vm209_vm15, %v1806_v62, 0.0  ;;  %v1061_v54 = vsel %vm1060_vm1, 1.0, %v1521_v60 }
 0x11e   :  { %1440 = vset.pattern.permute.xlu1 %v1517_v0  ;;  %v1799_v56 = vpop.permute.xlu2 %277  ;;  %546 = vperm.xlu2 %1441, %v1707_v36   ;;  %v235_v41 = vadd.f32 %v216_v37, %v210_v26 }
 0x11f   :  { %540 = vperm.xlu1 %1440, %v1707_v36  }
 0x120   :  { %598 = vperm.xlu0 %1476, %v1714_v29  }
 0x124   :  { %v225_v35 = vpop.permute.xlu1 %224 }
 0x125   :  { %vm227_vm2 = vcmp.gt.f32.partialorder %v225_v35, 1.0 }
 0x126   :  { %v228_v40 = vsel %vm227_vm2, %v1813_v20, 0.0  ;;  %1443 = vset.pattern.permute.xlu2 %v1519_v8 }
 0x127   :  { %v236_v42 = vadd.f32 %v228_v40, %v222_v39  ;;  %1442 = vset.pattern.permute.xlu1 %v1520_v10  ;;  %v314_v17 = vpop.permute.xlu2 %313  ;;  %558 = vperm.xlu2 %1443, %v1707_v36  }
 0x128   :  { %552 = vperm.xlu1 %1442, %v1707_v36   ;;  %647 = vperm.xlu0 %1476, %v1722_v33   ;;  %vm316_vm11 = vcmp.gt.f32.partialorder %v314_v17, 1.0 }
 0x129   :  { %v237_v13 = vadd.f32 %v236_v42, %v235_v41  ;;  %v317_v23 = vsel %vm316_vm11, %v1811_v14, 0.0 }
 0x12b   :  { %v1831_v48 = vadd.f32 %v237_v13, %v234_v44 }
 0x12d   :  { %242 = vst.msk [vmem:[%s2453_s3] sm:$0x3] %vm241_vm5, %v1831_v48  ;;  %v254_v36 = vpop.permute.xlu1 %253  ;;  %v368_v50 = vpop.permute.xlu0 %367 }
 0x12e   :  { %vm256_vm7 = vcmp.gt.f32.partialorder %v254_v36, 1.0  ;;  %vm370_vm9 = vcmp.gt.f32.partialorder %v368_v50, 1.0  ;;  %v1057_v36 = vrot.slane %v1684_v11, 4 }
 0x12f   :  { %v257_v53 = vsel %vm256_vm7, %v1806_v62, 0.0  ;;  %1445 = vset.pattern.permute.xlu2 %v1518_v7  ;;  %v371_v5 = vsel %vm370_vm9, %v1813_v20, 0.0 }
 0x130   :  { %v1844_v16 = vadd.f32 %v263_v52, %v257_v53  ;;  %1444 = vset.pattern.permute.xlu1 %v1517_v0  ;;  %v1847_v24 = vpop.permute.xlu2 %325  ;;  %592 = vperm.xlu2 %1445, %v1714_v29   ;;  %v1059_v52 = vadd.f32 %v1057_v36, %v1056_v46 }
 0x131   :  { %586 = vperm.xlu1 %1444, %v1714_v29   ;;  %980 = vperm.xlu0 %1476, %v1833_v49  }
 0x132   :  { %v1914_v57 = vsub.f32 %v1059_v52, %v1061_v54 }
 0x134   :  { %vm1108_vm7 = vcmp.gt.f32.partialorder %v1914_v57, 1.0 }
 0x135   :  { %v414_v4 = vpop.permute.xlu0 %413 }
 0x136   :  { %v1854_v59 = vpop.permute.xlu1 %271  ;;  %vm416_vm12 = vcmp.gt.f32.partialorder %v414_v4, 1.0 }
 0x138   :  { %1447 = vset.pattern.permute.xlu2 %v1522_v18 }
 0x139   :  { %1446 = vset.pattern.permute.xlu1 %v1519_v8  ;;  %v362_v45 = vpop.permute.xlu2 %361  ;;  %610 = vperm.xlu2 %1447, %v1714_v29  }
 0x13a   :  { %vm364_vm10 = vcmp.gt.f32.partialorder %v362_v45, 1.0  ;;  %604 = vperm.xlu1 %1446, %v1714_v29   ;;  %1029 = vperm.xlu0 %1476, %v1857_v2  }
 0x13b   :  { %v365_v12 = vsel %vm364_vm10, %v1811_v14, 0.0 }
 0x13c   :  { %v1866_v3 = vadd.f32 %v371_v5, %v365_v12 }
 0x13f   :  { %v451_v28 = vpop.permute.xlu0 %450 }
 0x140   :  { %v1868_v21 = vpop.permute.xlu1 %307  ;;  %vm453_vm15 = vcmp.gt.f32.partialorder %v451_v28, 1.0 }
 0x141   :  { %1449 = vset.pattern.permute.xlu2 %v1518_v7 }
 0x142   :  { %1448 = vset.pattern.permute.xlu1 %v1517_v0  ;;  %1483 = vset.pattern.permute.xlu0 %v1517_v0  ;;  %v396_v22 = vpop.permute.xlu2 %395 }
 0x143   :  { %641 = vperm.xlu2 %1449, %v1722_v33   ;;  %635 = vperm.xlu1 %1448, %v1722_v33   ;;  %vm398_vm2 = vcmp.gt.f32.partialorder %v396_v22, 1.0 }
 0x144   :  { %55 = vperm.xlu0 %1483, %v1571_v9   ;;  %v417_v9 = vsel %vm416_vm12, %v1813_v20, 0.0  ;;  %v399_v58 = vsel %vm398_vm2, %v1806_v62, 0.0  ;;  %vm280_vm2 = vcmp.gt.f32.partialorder %v1799_v56, 1.0 }
 0x147   :  { %v499_v37 = vpop.permute.xlu0 %498 }
 0x148   :  { %vm501_vm3 = vcmp.gt.f32.partialorder %v499_v37, 1.0 }
 0x149   :  { %v320_v29 = vpop.permute.xlu1 %319  ;;  %v502_v45 = vsel %vm501_vm3, %v1809_v1, 0.0  ;;  %vm288_vm3 = vcmp.gt.f32.partialorder %v1831_v48, 1.0 }
 0x14a   :  { %vm322_vm13 = vcmp.gt.f32.partialorder %v320_v29, 1.0  ;;  %v1104_v29 = vmul.f32 0.95, %v1914_v57 }
 0x14b   :  { %v323_v26 = vsel %vm322_vm13, %v1813_v20, 0.0  ;;  %1451 = vset.pattern.permute.xlu2 %v1522_v18  ;;  %1450 = vset.pattern.permute.xlu1 %v1519_v8  ;;  %v408_v35 = vpop.permute.xlu2 %407  ;;  %vm274_vm13 = vcmp.gt.f32.partialorder %v1854_v59, 1.0 }
 0x14c   :  { %v1880_v39 = vadd.f32 %v323_v26, %v317_v23  ;;  %301 = vperm.xlu0 %1483, %v1642_v27   ;;  %vm410_vm14 = vcmp.gt.f32.partialorder %v408_v35, 1.0  ;;  %659 = vperm.xlu2 %1451, %v1722_v33   ;;  %v454_v27 = vsel %vm453_vm15, %v1809_v1, 0.0  ;;  %v1105_v23 = vrot.slane %v1684_v11, 6 }
 0x14d   :  { %v411_v40 = vsel %vm410_vm14, %v1811_v14, 0.0  ;;  %653 = vperm.xlu1 %1450, %v1722_v33   ;;  %v1109_v11 = vsel %vm1108_vm7, 1.0, %v1521_v60  ;;  %v275_v59 = vsel %vm274_vm13, %v1813_v20, 0.0 }
 0x14e   :  { %v425_v41 = vadd.f32 %v417_v9, %v411_v40  ;;  %v1107_v35 = vadd.f32 %v1105_v23, %v1104_v29 }
 0x150   :  { %v1894_v25 = vpop.permute.xlu0 %516 }
 0x152   :  { %v1887_v42 = vpop.permute.xlu1 %355 }
 0x154   :  { %349 = vperm.xlu0 %1483, %v1655_v43   ;;  %1453 = vset.pattern.permute.xlu2 %v1520_v10  ;;  %v445_v17 = vpop.permute.xlu2 %444 }
 0x155   :  { %1452 = vset.pattern.permute.xlu1 %v1518_v7  ;;  %vm447_vm0 = vcmp.gt.f32.partialorder %v445_v17, 1.0  ;;  %695 = vperm.xlu2 %1453, %v1733_v31   ;;  %v1942_v17 = vsub.f32 %v1107_v35, %v1109_v11 }
 0x156   :  { %v448_v33 = vsel %vm447_vm0, %v1806_v62, 0.0  ;;  %689 = vperm.xlu1 %1452, %v1733_v31   ;;  %vm519_vm0 = vcmp.gt.f32.partialorder %v1894_v25, 1.0 }
 0x157   :  { %v1898_v13 = vadd.f32 %v454_v27, %v448_v33  ;;  %vm1154_vm15 = vcmp.gt.f32.partialorder %v1942_v17, 1.0  ;;  %v520_v11 = vsel %vm519_vm0, %v1818_v38, 0.0 }
 0x158   :  { %v1909_v50 = vpop.permute.xlu0 %564  ;;  %v1155_v35 = vsel %vm1154_vm15, 1.0, %v1521_v60 }
 0x15b   :  { %v1900_v44 = vpop.permute.xlu1 %373 }
 0x15c   :  { %683 = vperm.xlu0 %1483, %v1733_v31   ;;  %vm376_vm15 = vcmp.gt.f32.partialorder %v1900_v44, 1.0 }
 0x15d   :  { %1455 = vset.pattern.permute.xlu2 %v1522_v18  ;;  %v463_v43 = vpop.permute.xlu2 %462 }
 0x15e   :  { %1454 = vset.pattern.permute.xlu1 %v1519_v8  ;;  %707 = vperm.xlu2 %1455, %v1733_v31   ;;  %vm465_vm9 = vcmp.gt.f32.partialorder %v463_v43, 1.0 }
 0x15f   :  { %701 = vperm.xlu1 %1454, %v1733_v31   ;;  %v466_v33 = vsel %vm465_vm9, %v1813_v20, 0.0  ;;  %vm310_vm9 = vcmp.gt.f32.partialorder %v1868_v21, 1.0 }
 0x164   :  { %731 = vperm.xlu0 %1483, %v1740_v47   ;;  %v402_v53 = vpop.permute.xlu1 %401 }
 0x165   :  { %vm404_vm4 = vcmp.gt.f32.partialorder %v402_v53, 1.0 }
 0x166   :  { %v405_v31 = vsel %vm404_vm4, %v1809_v1, 0.0  ;;  %1457 = vset.pattern.permute.xlu2 %v1520_v10  ;;  %v493_v63 = vpop.permute.xlu2 %492 }
 0x167   :  { %v424_v4 = vadd.f32 %v405_v31, %v399_v58  ;;  %1456 = vset.pattern.permute.xlu1 %v1518_v7  ;;  %vm495_vm6 = vcmp.gt.f32.partialorder %v493_v63, 1.0  ;;  %743 = vperm.xlu2 %1457, %v1740_v47  }
 0x168   :  { %v496_v5 = vsel %vm495_vm6, %v1806_v62, 0.0  ;;  %737 = vperm.xlu1 %1456, %v1740_v47   ;;  %v1924_v12 = vpop.permute.xlu0 %832 }
 0x169   :  { %v1926_v28 = vadd.f32 %v502_v45, %v496_v5  ;;  %v426_v22 = vadd.f32 %v425_v41, %v424_v4 }
 0x16c   :  { %1065 = vperm.xlu0 %1483, %v1914_v57  }
 0x16d   :  { %v420_v26 = vpop.permute.xlu1 %419 }
 0x16e   :  { %vm422_vm8 = vcmp.gt.f32.partialorder %v420_v26, 1.0 }
 0x16f   :  { %v423_v37 = vsel %vm422_vm8, %v1818_v38, 0.0  ;;  %1459 = vset.pattern.permute.xlu2 %v1517_v0  ;;  %v511_v9 = vpop.permute.xlu2 %510 }
 0x170   :  { %v1934_v40 = vadd.f32 %v426_v22, %v423_v37  ;;  %1458 = vset.pattern.permute.xlu1 %v1522_v18  ;;  %777 = vperm.xlu2 %1459, %v1749_v51   ;;  %v1938_v41 = vpop.permute.xlu0 %880  ;;  %vm513_vm12 = vcmp.gt.f32.partialorder %v511_v9, 1.0 }
 0x171   :  { %755 = vperm.xlu1 %1458, %v1740_v47   ;;  %v514_v5 = vsel %vm513_vm12, %v1813_v20, 0.0  ;;  %vm358_vm12 = vcmp.gt.f32.partialorder %v1887_v42, 1.0 }
 0x174   :  { %1113 = vperm.xlu0 %1483, %v1942_v17  }
 0x176   :  { %v457_v27 = vpop.permute.xlu1 %456 }
 0x177   :  { %vm459_vm10 = vcmp.gt.f32.partialorder %v457_v27, 1.0 }
 0x178   :  { %v460_v46 = vsel %vm459_vm10, %v1811_v14, 0.0  ;;  %1461 = vset.pattern.permute.xlu2 %v1520_v10  ;;  %v1948_v36 = vpop.permute.xlu2 %546 }
 0x179   :  { %v474_v52 = vadd.f32 %v466_v33, %v460_v46  ;;  %1460 = vset.pattern.permute.xlu1 %v1518_v7  ;;  %789 = vperm.xlu2 %1461, %v1749_v51   ;;  %v1952_v53 = vpop.permute.xlu0 %898  ;;  %v281_v46 = vsel %vm280_vm2, %v1818_v38, 0.0 }
 0x17a   :  { %783 = vperm.xlu1 %1460, %v1749_v51  }
 0x17b   :  { %v475_v43 = vadd.f32 %v474_v52, %v1898_v13  ;;  %v286_v52 = vmul.f32 0.95, %v1831_v48 }
 0x17c   :  { %1490 = vset.pattern.permute.xlu0 %v1519_v8 }
 0x17d   :  { %749 = vperm.xlu0 %1490, %v1740_v47   ;;  %v1152_v47 = vmul.f32 0.95, %v1942_v17 }
 0x17f   :  { %v469_v54 = vpop.permute.xlu1 %468  ;;  %v1153_v45 = vadd.f32 %v1152_v47, %v1634_v6 }
 0x180   :  { %vm471_vm11 = vcmp.gt.f32.partialorder %v469_v54, 1.0 }
 0x181   :  { %v472_v58 = vsel %vm471_vm11, %v1818_v38, 0.0  ;;  %1463 = vset.pattern.permute.xlu2 %v1517_v0  ;;  %v1960_v31 = vpop.permute.xlu2 %558  ;;  %v1962_v63 = vpop.permute.xlu0 %946  ;;  %v1989_v9 = vsub.f32 %v1153_v45, %v1155_v35  ;;  %vm328_vm11 = vcmp.gt.f32.partialorder %v1847_v24, 1.0 }
 0x182   :  { %v1964_v4 = vadd.f32 %v475_v43, %v472_v58  ;;  %1462 = vset.pattern.permute.xlu1 %v1522_v18  ;;  %826 = vperm.xlu2 %1463, %v1760_v55   ;;  %v1200_v58 = vrot.slane %v1634_v6, 2 }
 0x183   :  { %801 = vperm.xlu1 %1462, %v1749_v51   ;;  %vm1203_vm4 = vcmp.gt.f32.partialorder %v1989_v9, 1.0 }
 0x185   :  { %795 = vperm.xlu0 %1490, %v1749_v51  }
 0x188   :  { %v505_v13 = vpop.permute.xlu1 %504 }
 0x189   :  { %vm507_vm14 = vcmp.gt.f32.partialorder %v505_v13, 1.0 }
 0x18a   :  { %v508_v22 = vsel %vm507_vm14, %v1811_v14, 0.0  ;;  %1466 = vset.pattern.permute.xlu2 %v1519_v8  ;;  %v1977_v29 = vpop.permute.xlu2 %592  ;;  %v266_v51 = vpop.permute.xlu0 %265 }
 0x18b   :  { %v522_v23 = vadd.f32 %v514_v5, %v508_v22  ;;  %1465 = vset.pattern.permute.xlu1 %v1520_v10  ;;  %844 = vperm.xlu2 %1466, %v1760_v55   ;;  %vm268_vm1 = vcmp.gt.f32.partialorder %v266_v51, 1.0  ;;  %v1204_v5 = vsel %vm1203_vm4, 1.0, %v1521_v60 }
 0x18c   :  { %838 = vperm.xlu1 %1465, %v1760_v55   ;;  %v269_v26 = vsel %vm268_vm1, %v1811_v14, 0.0 }
 0x18d   :  { %v523_v37 = vadd.f32 %v522_v23, %v1926_v28  ;;  %1131 = vperm.xlu0 %1490, %v1942_v17   ;;  %v283_v25 = vadd.f32 %v275_v59, %v269_v26  ;;  %v1198_v28 = vmul.f32 0.95, %v1989_v9  ;;  %v1248_v26 = vrot.slane %v1634_v6, 4 }
 0x18f   :  { %v1992_v27 = vadd.f32 %v523_v37, %v520_v11  ;;  %v284_v33 = vadd.f32 %v283_v25, %v1844_v16  ;;  %v289_v16 = vsel %vm288_vm3, 1.0, %v1521_v60  ;;  %v1202_v45 = vadd.f32 %v1200_v58, %v1198_v28 }
 0x190   :  { %v1296_v58 = vrot.slane %v1634_v6, 6  ;;  %v101_v6 = vmul.f32 %v1609_v32, %v1593_v19  ;;  %vm561_vm3 = vcmp.gt.f32.partialorder %v1960_v31, 1.0 }
 0x191   :  { %v285_v56 = vadd.f32 %v284_v33, %v281_v46  ;;  %v1998_v43 = vpop.permute.xlu1 %540  ;;  %v2021_v22 = vsub.f32 %v1202_v45, %v1204_v5 }
 0x192   :  { %v2001_v54 = vpop.permute.xlu0 %598  ;;  %vm543_vm4 = vcmp.gt.f32.partialorder %v1998_v43, 1.0 }
 0x193   :  { %v287_v47 = vadd.f32 %v286_v52, %v285_v56  ;;  %1468 = vset.pattern.permute.xlu2 %v1517_v0  ;;  %v2005_v13 = vpop.permute.xlu2 %610  ;;  %v1247_v59 = vmul.f32 0.95, %v2021_v22  ;;  %vm1251_vm6 = vcmp.gt.f32.partialorder %v2021_v22, 1.0  ;;  %v544_v31 = vsel %vm543_vm4, %v1806_v62, 0.0 }
 0x194   :  { %1467 = vset.pattern.permute.xlu1 %v1522_v18  ;;  %874 = vperm.xlu2 %1468, %v1771_v61   ;;  %v1252_v11 = vsel %vm1251_vm6, 1.0, %v1521_v60 }
 0x195   :  { %v2010_v48 = vsub.f32 %v287_v47, %v289_v16  ;;  %850 = vperm.xlu1 %1467, %v1760_v55   ;;  %1177 = vperm.xlu0 %1490, %v1989_v9   ;;  %v1250_v35 = vadd.f32 %v1248_v26, %v1247_v59 }
 0x197   :  { %291 = vst.msk [vmem:[%s2453_s3 + $0x2] sm:$0x3] %vm241_vm5, %v2010_v48  ;;  %v2043_v33 = vsub.f32 %v1250_v35, %v1252_v11  ;;  %v334_v24 = vmul.f32 0.95, %v2010_v48  ;;  %vm336_vm13 = vcmp.gt.f32.partialorder %v2010_v48, 1.0 }
 0x199   :  { %v1295_v56 = vmul.f32 0.95, %v2043_v33  ;;  %vm1299_vm7 = vcmp.gt.f32.partialorder %v2043_v33, 1.0 }
 0x19a   :  { %v2023_v51 = vpop.permute.xlu1 %552  ;;  %v2025_v23 = vpop.permute.xlu0 %647  ;;  %v1300_v45 = vsel %vm1299_vm7, 1.0, %v1521_v60  ;;  %vm549_vm7 = vcmp.gt.f32.partialorder %v1948_v36, 1.0 }
 0x19b   :  { %v1298_v47 = vadd.f32 %v1296_v58, %v1295_v56  ;;  %vm555_vm2 = vcmp.gt.f32.partialorder %v2023_v51, 1.0 }
 0x19c   :  { %1470 = vset.pattern.permute.xlu2 %v1519_v8 }
 0x19d   :  { %1469 = vset.pattern.permute.xlu1 %v1520_v10  ;;  %1499 = vset.pattern.permute.xlu0 %v1518_v7  ;;  %v2030_v55 = vpop.permute.xlu2 %641  ;;  %v2070_v5 = vsub.f32 %v1298_v47, %v1300_v45  ;;  %v311_v45 = vsel %vm310_vm9, %v1809_v1, 0.0  ;;  %vm601_vm9 = vcmp.gt.f32.partialorder %v2001_v54, 1.0 }
 0x19e   :  { %886 = vperm.xlu1 %1469, %v1771_v61   ;;  %892 = vperm.xlu2 %1470, %v1771_v61   ;;  %v602_v54 = vsel %vm601_vm9, %v1811_v14, 0.0 }
 0x19f   :  { %1214 = vperm.xlu0 %1499, %v2021_v22   ;;  %v1343_v11 = vmul.f32 0.95, %v2070_v5  ;;  %vm1345_vm8 = vcmp.gt.f32.partialorder %v2070_v5, 1.0 }
 0x1a3   :  { %v2038_v37 = vpop.permute.xlu1 %586  ;;  %v2040_v25 = vpop.permute.xlu0 %980 }
 0x1a6   :  { %1472 = vset.pattern.permute.xlu1 %v1517_v0  ;;  %1473 = vset.pattern.permute.xlu2 %v1518_v7  ;;  %v2047_v61 = vpop.permute.xlu2 %659 }
 0x1a7   :  { %1262 = vperm.xlu0 %1499, %v2043_v33   ;;  %928 = vperm.xlu2 %1473, %v1787_v15   ;;  %vm662_vm9 = vcmp.gt.f32.partialorder %v2047_v61, 1.0 }
 0x1a8   :  { %922 = vperm.xlu1 %1472, %v1787_v15  }
 0x1ac   :  { %v2052_v46 = vpop.permute.xlu1 %604  ;;  %v2054_v52 = vpop.permute.xlu0 %1029 }
 0x1af   :  { %1506 = vset.pattern.permute.xlu0 %v1522_v18  ;;  %1475 = vset.pattern.permute.xlu2 %v1519_v8  ;;  %v2059_v28 = vpop.permute.xlu2 %695 }
 0x1b0   :  { %1474 = vset.pattern.permute.xlu1 %v1520_v10  ;;  %1280 = vperm.xlu0 %1506, %v2043_v33  }
 0x1b1   :  { %940 = vperm.xlu2 %1475, %v1787_v15   ;;  %934 = vperm.xlu1 %1474, %v1787_v15  }
 0x1b5   :  { %v2067_v16 = vpop.permute.xlu1 %635 }
 0x1b6   :  { %v56_v59 = vpop.permute.xlu0 %55 }
 0x1b7   :  { %v65_v26 = vmul.f32 %v1611_v34, %v56_v59  ;;  %v1346_v34 = vsel %vm1345_vm8, 1.0, %v1521_v60  ;;  %vm607_vm8 = vcmp.gt.f32.partialorder %v2052_v46, 1.0 }
 0x1b8   :  { %1328 = vperm.xlu0 %1506, %v2070_v5   ;;  %v2076_v35 = vpop.permute.xlu2 %707 }
 0x1b9   :  { %v180_v15 = vadd.f32 %v101_v6, %v65_v26  ;;  %1478 = vset.pattern.permute.xlu2 %v1518_v7  ;;  %1477 = vset.pattern.permute.xlu1 %v1517_v0  ;;  %v329_v26 = vsel %vm328_vm11, %v1818_v38, 0.0 }
 0x1ba   :  { %974 = vperm.xlu2 %1478, %v1833_v49   ;;  %968 = vperm.xlu1 %1477, %v1833_v49  }
 0x1bb   :  { %v194_v19 = vadd.f32 %v1646_v30, %v180_v15 }
 0x1bd   :  { %v1344_v32 = vadd.f32 %v1343_v11, %v194_v19 }
 0x1be   :  { %v302_v56 = vpop.permute.xlu0 %301 }
 0x1bf   :  { %v2087_v58 = vsub.f32 %v1344_v32, %v1346_v34  ;;  %vm304_vm10 = vcmp.gt.f32.partialorder %v302_v56, 1.0  ;;  %v2089_v47 = vpop.permute.xlu1 %653  ;;  %v359_v32 = vsel %vm358_vm12, %v1809_v1, 0.0  ;;  %vm567_vm12 = vcmp.gt.f32.partialorder %v1909_v50, 1.0 }
 0x1c0   :  { %v305_v59 = vsel %vm304_vm10, %v1806_v62, 0.0  ;;  %1513 = vset.pattern.permute.xlu0 %v1520_v10  ;;  %vm589_vm10 = vcmp.gt.f32.partialorder %v2038_v37, 1.0  ;;  %v568_v50 = vsel %vm567_vm12, %v1818_v38, 0.0 }
 0x1c1   :  { %v330_v30 = vadd.f32 %v311_v45, %v305_v59  ;;  %1362 = vperm.xlu0 %1513, %v2087_v58   ;;  %v2096_v21 = vpop.permute.xlu2 %743  ;;  %v377_v59 = vsel %vm376_vm15, %v1818_v38, 0.0  ;;  %vm650_vm15 = vcmp.gt.f32.partialorder %v2025_v23, 1.0 }
 0x1c2   :  { %1480 = vset.pattern.permute.xlu2 %v1522_v18  ;;  %1479 = vset.pattern.permute.xlu1 %v1519_v8 }
 0x1c3   :  { %v332_v6 = vadd.f32 %v1880_v39, %v330_v30  ;;  %992 = vperm.xlu2 %1480, %v1833_v49   ;;  %986 = vperm.xlu1 %1479, %v1833_v49   ;;  %v337_v39 = vsel %vm336_vm13, 1.0, %v1521_v60  ;;  %vm595_vm13 = vcmp.gt.f32.partialorder %v1977_v29, 1.0 }
 0x1c5   :  { %v333_v15 = vadd.f32 %v332_v6, %v329_v26 }
 0x1c6   :  { %v350_v11 = vpop.permute.xlu0 %349 }
 0x1c7   :  { %v335_v19 = vadd.f32 %v334_v24, %v333_v15  ;;  %vm352_vm14 = vcmp.gt.f32.partialorder %v350_v11, 1.0 }
 0x1c8   :  { %v353_v34 = vsel %vm352_vm14, %v1806_v62, 0.0  ;;  %v2110_v56 = vpop.permute.xlu1 %689  ;;  %vm656_vm14 = vcmp.gt.f32.partialorder %v2089_v47, 1.0 }
 0x1c9   :  { %v338_v49 = vsub.f32 %v335_v19, %v337_v39  ;;  %v378_v42 = vadd.f32 %v359_v32, %v353_v34  ;;  %1516 = vset.pattern.permute.xlu0 %v1522_v18 }
 0x1ca   :  { %v2114_v45 = vpop.permute.xlu2 %777 }
 0x1cb   :  { %339 = vst.msk [vmem:[%s2453_s3 + $0x4] sm:$0x3] %vm241_vm5, %v338_v49  ;;  %v380_v48 = vadd.f32 %v1866_v3, %v378_v42  ;;  %1482 = vset.pattern.permute.xlu2 %v1518_v7  ;;  %1481 = vset.pattern.permute.xlu1 %v1517_v0  ;;  %v382_v44 = vmul.f32 0.95, %v338_v49  ;;  %vm384_vm0 = vcmp.gt.f32.partialorder %v338_v49, 1.0 }
 0x1cc   :  { %1023 = vperm.xlu2 %1482, %v1857_v2   ;;  %1017 = vperm.xlu1 %1481, %v1857_v2   ;;  %v385_v24 = vsel %vm384_vm0, 1.0, %v1521_v60  ;;  %vm638_vm0 = vcmp.gt.f32.partialorder %v2067_v16, 1.0 }
 0x1cd   :  { %v381_v30 = vadd.f32 %v380_v48, %v377_v59  ;;  %v562_v48 = vsel %vm561_vm3, %v1813_v20, 0.0  ;;  %vm644_vm3 = vcmp.gt.f32.partialorder %v2030_v55, 1.0 }
 0x1ce   :  { %v2126_v6 = vpop.permute.xlu0 %683 }
 0x1cf   :  { %v383_v26 = vadd.f32 %v382_v44, %v381_v30  ;;  %v550_v30 = vsel %vm549_vm7, %v1809_v1, 0.0  ;;  %vm686_vm7 = vcmp.gt.f32.partialorder %v2126_v6, 1.0 }
 0x1d0   :  { %v569_v46 = vadd.f32 %v550_v30, %v544_v31  ;;  %v687_v6 = vsel %vm686_vm7, %v1806_v62, 0.0 }
 0x1d1   :  { %v386_v15 = vsub.f32 %v383_v26, %v385_v24  ;;  %v2129_v3 = vpop.permute.xlu1 %701  ;;  %v608_v26 = vsel %vm607_vm8, %v1813_v20, 0.0 }
 0x1d2   :  { %vm704_vm4 = vcmp.gt.f32.partialorder %v2129_v3, 1.0 }
 0x1d3   :  { %387 = vst.msk [vmem:[%s2453_s3 + $0x6] sm:$0x3] %vm241_vm5, %v386_v15  ;;  %v428_v11 = vmul.f32 0.95, %v386_v15  ;;  %vm430_vm1 = vcmp.gt.f32.partialorder %v386_v15, 1.0  ;;  %v2137_v19 = vpop.permute.xlu2 %789  ;;  %v590_v15 = vsel %vm589_vm10, %v1806_v62, 0.0 }
 0x1d4   :  { %1485 = vset.pattern.permute.xlu2 %v1522_v18  ;;  %1484 = vset.pattern.permute.xlu1 %v1519_v8  ;;  %v431_v39 = vsel %vm430_vm1, 1.0, %v1521_v60  ;;  %v705_v3 = vsel %vm704_vm4, %v1813_v20, 0.0  ;;  %vm692_vm10 = vcmp.gt.f32.partialorder %v2110_v56, 1.0  ;;  %v663_v56 = vsel %vm662_vm9, %v1818_v38, 0.0 }
 0x1d5   :  { %v429_v32 = vadd.f32 %v428_v11, %v1934_v40  ;;  %1041 = vperm.xlu2 %1485, %v1857_v2   ;;  %1035 = vperm.xlu1 %1484, %v1857_v2   ;;  %v556_v2 = vsel %vm555_vm2, %v1811_v14, 0.0  ;;  %vm613_vm2 = vcmp.gt.f32.partialorder %v2005_v13, 1.0  ;;  %v651_v13 = vsel %vm650_vm15, %v1811_v14, 0.0 }
 0x1d6   :  { %v2143_v34 = vpop.permute.xlu0 %731  ;;  %v570_v59 = vadd.f32 %v562_v48, %v556_v2  ;;  %v657_v48 = vsel %vm656_vm14, %v1813_v20, 0.0  ;;  %v614_v30 = vsel %vm613_vm2, %v1818_v38, 0.0  ;;  %vm710_vm15 = vcmp.gt.f32.partialorder %v2076_v35, 1.0 }
 0x1d7   :  { %v432_v49 = vsub.f32 %v429_v32, %v431_v39  ;;  %v616_v32 = vadd.f32 %v608_v26, %v602_v54  ;;  %v665_v55 = vadd.f32 %v657_v48, %v651_v13  ;;  %v645_v26 = vsel %vm644_vm3, %v1809_v1, 0.0 }
 0x1d8   :  { %v571_v37 = vadd.f32 %v570_v59, %v569_v46  ;;  %vm780_vm4 = vcmp.gt.f32.partialorder %v2114_v45, 1.0 }
 0x1d9   :  { %433 = vst.msk [vmem:[%s2453_s3 + $0x8] sm:$0x3] %vm241_vm5, %v432_v49  ;;  %v477_v40 = vmul.f32 0.95, %v432_v49  ;;  %vm479_vm6 = vcmp.gt.f32.partialorder %v432_v49, 1.0  ;;  %v596_v49 = vsel %vm595_vm13, %v1809_v1, 0.0 }
 0x1da   :  { %v2153_v42 = vpop.permute.xlu1 %737  ;;  %v480_v43 = vsel %vm479_vm6, 1.0, %v1521_v60  ;;  %v615_v29 = vadd.f32 %v596_v49, %v590_v15  ;;  %vm698_vm6 = vcmp.gt.f32.partialorder %v2059_v28, 1.0 }
 0x1db   :  { %v478_v51 = vadd.f32 %v477_v40, %v1964_v4  ;;  %vm740_vm14 = vcmp.gt.f32.partialorder %v2153_v42, 1.0  ;;  %v711_v42 = vsel %vm710_vm15, %v1818_v38, 0.0 }
 0x1dc   :  { %v2166_v36 = vpop.permute.xlu2 %826  ;;  %v617_v47 = vadd.f32 %v616_v32, %v615_v29 }
 0x1dd   :  { %v481_v44 = vsub.f32 %v478_v51, %v480_v43  ;;  %1487 = vset.pattern.permute.xlu2 %v1520_v10  ;;  %1486 = vset.pattern.permute.xlu1 %v1518_v7  ;;  %v572_v51 = vadd.f32 %v571_v37, %v568_v50  ;;  %v639_v43 = vsel %vm638_vm0, %v1806_v62, 0.0  ;;  %v699_v37 = vsel %vm698_vm6, %v1811_v14, 0.0 }
 0x1de   :  { %1077 = vperm.xlu2 %1487, %v1914_v57   ;;  %1071 = vperm.xlu1 %1486, %v1914_v57   ;;  %v2170_v4 = vpop.permute.xlu0 %1065  ;;  %v713_v32 = vadd.f32 %v705_v3, %v699_v37  ;;  %vm734_vm0 = vcmp.gt.f32.partialorder %v2143_v34, 1.0  ;;  %vm829_vm9 = vcmp.gt.f32.partialorder %v2166_v36, 1.0 }
 0x1df   :  { %482 = vst.msk [vmem:[%s2453_s3 + $0xa] sm:$0x3] %vm241_vm5, %v481_v44  ;;  %v525_v24 = vmul.f32 0.95, %v481_v44  ;;  %vm527_vm11 = vcmp.gt.f32.partialorder %v481_v44, 1.0  ;;  %v830_v36 = vsel %vm829_vm9, %v1806_v62, 0.0 }
 0x1e0   :  { %v528_v39 = vsel %vm527_vm11, 1.0, %v1521_v60  ;;  %vm746_vm11 = vcmp.gt.f32.partialorder %v2096_v21, 1.0 }
 0x1e1   :  { %v526_v11 = vadd.f32 %v525_v24, %v1992_v27  ;;  %v618_v24 = vadd.f32 %v617_v47, %v614_v30 }
 0x1e3   :  { %v529_v40 = vsub.f32 %v526_v11, %v528_v39  ;;  %v2185_v2 = vpop.permute.xlu1 %755  ;;  %v693_v39 = vsel %vm692_vm10, %v1809_v1, 0.0 }
 0x1e4   :  { %vm758_vm7 = vcmp.gt.f32.partialorder %v2185_v2, 1.0 }
 0x1e5   :  { %530 = vst.msk [vmem:[%s2453_s3 + $0xc] sm:$0x3] %vm241_vm5, %v529_v40  ;;  %v573_v27 = vmul.f32 0.95, %v529_v40  ;;  %vm575_vm1 = vcmp.gt.f32.partialorder %v529_v40, 1.0  ;;  %v2209_v44 = vpop.permute.xlu2 %844  ;;  %v712_v40 = vadd.f32 %v693_v39, %v687_v6  ;;  %v781_v6 = vsel %vm780_vm4, %v1806_v62, 0.0 }
 0x1e6   :  { %1489 = vset.pattern.permute.xlu2 %v1522_v18  ;;  %1488 = vset.pattern.permute.xlu1 %v1519_v8  ;;  %v2198_v31 = vpop.permute.xlu0 %1113  ;;  %v576_v59 = vsel %vm575_vm1, 1.0, %v1521_v60  ;;  %vm792_vm1 = vcmp.gt.f32.partialorder %v2137_v19, 1.0  ;;  %v759_v2 = vsel %vm758_vm7, %v1818_v38, 0.0 }
 0x1e7   :  { %v574_v16 = vadd.f32 %v573_v27, %v572_v51  ;;  %1089 = vperm.xlu2 %1489, %v1914_v57   ;;  %1083 = vperm.xlu1 %1488, %v1914_v57   ;;  %v664_v57 = vadd.f32 %v645_v26, %v639_v43  ;;  %v714_v51 = vadd.f32 %v713_v32, %v712_v40  ;;  %v741_v43 = vsel %vm740_vm14, %v1809_v1, 0.0 }
 0x1e8   :  { %v793_v45 = vsel %vm792_vm1, %v1811_v14, 0.0 }
 0x1e9   :  { %v577_v46 = vsub.f32 %v574_v16, %v576_v59  ;;  %v666_v28 = vadd.f32 %v665_v55, %v664_v57  ;;  %v747_v16 = vsel %vm746_vm11, %v1811_v14, 0.0  ;;  %v715_v55 = vadd.f32 %v714_v51, %v711_v42 }
 0x1eb   :  { %578 = vst.msk [vmem:[%s2453_s3 + $0xe] sm:$0x3] %vm241_vm5, %v577_v46  ;;  %v619_v23 = vmul.f32 0.95, %v577_v46  ;;  %vm621_vm8 = vcmp.gt.f32.partialorder %v577_v46, 1.0  ;;  %v667_v50 = vadd.f32 %v666_v28, %v663_v56  ;;  %v735_v46 = vsel %vm734_vm0, %v1806_v62, 0.0 }
 0x1ec   :  { %v784_v54 = vpop.permute.xlu1 %783  ;;  %v622_v11 = vsel %vm621_vm8, 1.0, %v1521_v60  ;;  %v760_v34 = vadd.f32 %v741_v43, %v735_v46 }
 0x1ed   :  { %v620_v15 = vadd.f32 %v619_v23, %v618_v24  ;;  %vm786_vm3 = vcmp.gt.f32.partialorder %v784_v54, 1.0 }
 0x1ee   :  { %v2238_v27 = vpop.permute.xlu2 %874  ;;  %v787_v54 = vsel %vm786_vm3, %v1809_v1, 0.0 }
 0x1ef   :  { %v623_v49 = vsub.f32 %v620_v15, %v622_v11  ;;  %1492 = vset.pattern.permute.xlu2 %v1520_v10  ;;  %1491 = vset.pattern.permute.xlu1 %v1518_v7  ;;  %v750_v61 = vpop.permute.xlu0 %749  ;;  %vm877_vm1 = vcmp.gt.f32.partialorder %v2238_v27, 1.0 }
 0x1f0   :  { %1125 = vperm.xlu2 %1492, %v1942_v17   ;;  %1119 = vperm.xlu1 %1491, %v1942_v17   ;;  %vm752_vm12 = vcmp.gt.f32.partialorder %v750_v61, 1.0 }
 0x1f1   :  { %624 = vst.msk [vmem:[%s2453_s3 + $0x10] sm:$0x3] %vm241_vm5, %v623_v49  ;;  %v668_v29 = vmul.f32 0.95, %v623_v49  ;;  %vm670_vm13 = vcmp.gt.f32.partialorder %v623_v49, 1.0  ;;  %v753_v47 = vsel %vm752_vm12, %v1813_v20, 0.0 }
 0x1f2   :  { %v671_v13 = vsel %vm670_vm13, 1.0, %v1521_v60  ;;  %v761_v35 = vadd.f32 %v753_v47, %v747_v16  ;;  %vm847_vm12 = vcmp.gt.f32.partialorder %v2209_v44, 1.0  ;;  %vm835_vm13 = vcmp.gt.f32.partialorder %v1924_v12, 1.0 }
 0x1f3   :  { %v669_v48 = vadd.f32 %v668_v29, %v667_v50  ;;  %v848_v44 = vsel %vm847_vm12, %v1813_v20, 0.0  ;;  %v836_v12 = vsel %vm835_vm13, %v1809_v1, 0.0  ;;  %vm949_vm12 = vcmp.gt.f32.partialorder %v1962_v63, 1.0 }
 0x1f4   :  { %v762_v57 = vadd.f32 %v761_v35, %v760_v34  ;;  %v855_v16 = vadd.f32 %v836_v12, %v830_v36 }
 0x1f5   :  { %v672_v59 = vsub.f32 %v669_v48, %v671_v13  ;;  %v802_v30 = vpop.permute.xlu1 %801 }
 0x1f6   :  { %v763_v32 = vadd.f32 %v762_v57, %v759_v2  ;;  %vm804_vm10 = vcmp.gt.f32.partialorder %v802_v30, 1.0 }
 0x1f7   :  { %673 = vst.msk [vmem:[%s2453_s3 + $0x12] sm:$0x3] %vm241_vm5, %v672_v59  ;;  %v716_v21 = vmul.f32 0.95, %v672_v59  ;;  %vm718_vm2 = vcmp.gt.f32.partialorder %v672_v59, 1.0  ;;  %v796_v26 = vpop.permute.xlu0 %795  ;;  %v805_v50 = vsel %vm804_vm10, %v1818_v38, 0.0 }
 0x1f8   :  { %1494 = vset.pattern.permute.xlu2 %v1517_v0  ;;  %1493 = vset.pattern.permute.xlu1 %v1522_v18  ;;  %vm798_vm6 = vcmp.gt.f32.partialorder %v796_v26, 1.0  ;;  %v719_v3 = vsel %vm718_vm2, 1.0, %v1521_v60  ;;  %v893_v15 = vpop.permute.xlu2 %892  ;;  %vm883_vm2 = vcmp.gt.f32.partialorder %v1938_v41, 1.0 }
 0x1f9   :  { %v717_v24 = vadd.f32 %v716_v21, %v715_v55  ;;  %v799_v23 = vsel %vm798_vm6, %v1813_v20, 0.0  ;;  %1137 = vperm.xlu1 %1493, %v1942_v17   ;;  %1159 = vperm.xlu2 %1494, %v1989_v9   ;;  %v806_v17 = vadd.f32 %v787_v54, %v781_v6  ;;  %vm895_vm3 = vcmp.gt.f32.partialorder %v893_v15, 1.0 }
 0x1fa   :  { %v807_v28 = vadd.f32 %v799_v23, %v793_v45  ;;  %v884_v23 = vsel %vm883_vm2, %v1809_v1, 0.0  ;;  %v896_v27 = vsel %vm895_vm3, %v1813_v20, 0.0  ;;  %vm901_vm6 = vcmp.gt.f32.partialorder %v1952_v53, 1.0 }
 0x1fb   :  { %v720_v37 = vsub.f32 %v717_v24, %v719_v3  ;;  %v878_v24 = vsel %vm877_vm1, %v1806_v62, 0.0 }
 0x1fc   :  { %v808_v49 = vadd.f32 %v807_v28, %v806_v17  ;;  %v903_v41 = vadd.f32 %v884_v23, %v878_v24 }
 0x1fd   :  { %721 = vst.msk [vmem:[%s2453_s3 + $0x14] sm:$0x3] %vm241_vm5, %v720_v37  ;;  %v764_v11 = vmul.f32 0.95, %v720_v37  ;;  %vm766_vm8 = vcmp.gt.f32.partialorder %v720_v37, 1.0  ;;  %v902_v37 = vsel %vm901_vm6, %v1818_v38, 0.0 }
 0x1fe   :  { %v839_v19 = vpop.permute.xlu1 %838  ;;  %v767_v61 = vsel %vm766_vm8, 1.0, %v1521_v60  ;;  %v809_v51 = vadd.f32 %v808_v49, %v805_v50  ;;  %v950_v50 = vsel %vm949_vm12, %v1818_v38, 0.0  ;;  %vm1032_vm6 = vcmp.gt.f32.partialorder %v2054_v52, 1.0 }
 0x1ff   :  { %v765_v39 = vadd.f32 %v764_v11, %v763_v32  ;;  %vm841_vm11 = vcmp.gt.f32.partialorder %v839_v19, 1.0  ;;  %vm1068_vm12 = vcmp.gt.f32.partialorder %v2170_v4, 1.0 }
 0x200   :  { %v842_v40 = vsel %vm841_vm11, %v1811_v14, 0.0 }
 0x201   :  { %v768_v56 = vsub.f32 %v765_v39, %v767_v61  ;;  %1495 = vset.pattern.permute.xlu1 %v1518_v7  ;;  %1496 = vset.pattern.permute.xlu2 %v1520_v10  ;;  %v856_v47 = vadd.f32 %v848_v44, %v842_v40  ;;  %v929_v43 = vpop.permute.xlu2 %928 }
 0x202   :  { %1165 = vperm.xlu1 %1495, %v1989_v9   ;;  %1171 = vperm.xlu2 %1496, %v1989_v9   ;;  %vm931_vm9 = vcmp.gt.f32.partialorder %v929_v43, 1.0 }
 0x203   :  { %769 = vst.msk [vmem:[%s2453_s3 + $0x16] sm:$0x3] %vm241_vm5, %v768_v56  ;;  %v810_v29 = vmul.f32 0.95, %v768_v56  ;;  %vm812_vm14 = vcmp.gt.f32.partialorder %v768_v56, 1.0  ;;  %v857_v35 = vadd.f32 %v856_v47, %v855_v16  ;;  %v932_v49 = vsel %vm931_vm9, %v1809_v1, 0.0 }
 0x204   :  { %v813_v13 = vsel %vm812_vm14, 1.0, %v1521_v60 }
 0x205   :  { %v811_v48 = vadd.f32 %v810_v29, %v809_v51 }
 0x207   :  { %v814_v42 = vsub.f32 %v811_v48, %v813_v13  ;;  %v851_v59 = vpop.permute.xlu1 %850 }
 0x208   :  { %vm853_vm15 = vcmp.gt.f32.partialorder %v851_v59, 1.0 }
 0x209   :  { %815 = vst.msk [vmem:[%s2453_s3 + $0x18] sm:$0x3] %vm241_vm5, %v814_v42  ;;  %v854_v30 = vsel %vm853_vm15, %v1818_v38, 0.0  ;;  %v859_v55 = vmul.f32 0.95, %v814_v42  ;;  %vm861_vm0 = vcmp.gt.f32.partialorder %v814_v42, 1.0 }
 0x20a   :  { %v858_v46 = vadd.f32 %v857_v35, %v854_v30  ;;  %1497 = vset.pattern.permute.xlu1 %v1522_v18  ;;  %1498 = vset.pattern.permute.xlu2 %v1517_v0  ;;  %v862_v34 = vsel %vm861_vm0, 1.0, %v1521_v60  ;;  %vm983_vm15 = vcmp.gt.f32.partialorder %v2040_v25, 1.0 }
 0x20b   :  { %1183 = vperm.xlu1 %1497, %v1989_v9   ;;  %1208 = vperm.xlu2 %1498, %v2021_v22   ;;  %v941_v57 = vpop.permute.xlu2 %940  ;;  %v984_v13 = vsel %vm983_vm15, %v1811_v14, 0.0 }
 0x20c   :  { %v860_v21 = vadd.f32 %v859_v55, %v858_v46  ;;  %vm943_vm10 = vcmp.gt.f32.partialorder %v941_v57, 1.0 }
 0x20d   :  { %v944_v61 = vsel %vm943_vm10, %v1813_v20, 0.0 }
 0x20e   :  { %v863_v26 = vsub.f32 %v860_v21, %v862_v34 }
 0x210   :  { %864 = vst.msk [vmem:[%s2453_s3 + $0x1a] sm:$0x3] %vm241_vm5, %v863_v26  ;;  %v887_v9 = vpop.permute.xlu1 %886  ;;  %vm909_vm7 = vcmp.gt.f32.partialorder %v863_v26, 1.0  ;;  %v907_v6 = vmul.f32 0.95, %v863_v26 }
 0x211   :  { %vm889_vm4 = vcmp.gt.f32.partialorder %v887_v9, 1.0  ;;  %v910_v15 = vsel %vm909_vm7, 1.0, %v1521_v60 }
 0x212   :  { %v890_v3 = vsel %vm889_vm4, %v1811_v14, 0.0 }
 0x213   :  { %v904_v45 = vadd.f32 %v896_v27, %v890_v3  ;;  %1500 = vset.pattern.permute.xlu1 %v1520_v10  ;;  %1501 = vset.pattern.permute.xlu2 %v1519_v8 }
 0x214   :  { %1220 = vperm.xlu1 %1500, %v2021_v22   ;;  %1226 = vperm.xlu2 %1501, %v2021_v22   ;;  %v975_v53 = vpop.permute.xlu2 %974 }
 0x215   :  { %v905_v54 = vadd.f32 %v904_v45, %v903_v41  ;;  %vm977_vm0 = vcmp.gt.f32.partialorder %v975_v53, 1.0  ;;  %v1069_v53 = vsel %vm1068_vm12, %v1806_v62, 0.0 }
 0x216   :  { %v978_v43 = vsel %vm977_vm0, %v1809_v1, 0.0 }
 0x217   :  { %v906_v28 = vadd.f32 %v905_v54, %v902_v37 }
 0x219   :  { %v908_v2 = vadd.f32 %v907_v6, %v906_v28 }
 0x21a   :  { %v923_v17 = vpop.permute.xlu1 %922 }
 0x21b   :  { %v911_v11 = vsub.f32 %v908_v2, %v910_v15  ;;  %vm925_vm8 = vcmp.gt.f32.partialorder %v923_v17, 1.0 }
 0x21c   :  { %1502 = vset.pattern.permute.xlu1 %v1522_v18  ;;  %1503 = vset.pattern.permute.xlu2 %v1517_v0  ;;  %v926_v32 = vsel %vm925_vm8, %v1806_v62, 0.0 }
 0x21d   :  { %912 = vst.msk [vmem:[%s2453_s3 + $0x1c] sm:$0x3] %vm241_vm5, %v911_v11  ;;  %1232 = vperm.xlu1 %1502, %v2021_v22   ;;  %1256 = vperm.xlu2 %1503, %v2043_v33   ;;  %v993_v39 = vpop.permute.xlu2 %992  ;;  %v951_v22 = vadd.f32 %v932_v49, %v926_v32  ;;  %v955_v29 = vmul.f32 0.95, %v911_v11  ;;  %vm957_vm13 = vcmp.gt.f32.partialorder %v911_v11, 1.0 }
 0x21e   :  { %v958_v12 = vsel %vm957_vm13, 1.0, %v1521_v60  ;;  %vm995_vm2 = vcmp.gt.f32.partialorder %v993_v39, 1.0 }
 0x21f   :  { %v996_v55 = vsel %vm995_vm2, %v1818_v38, 0.0  ;;  %vm1116_vm2 = vcmp.gt.f32.partialorder %v2198_v31, 1.0 }
 0x223   :  { %v935_v19 = vpop.permute.xlu1 %934 }
 0x224   :  { %vm937_vm11 = vcmp.gt.f32.partialorder %v935_v19, 1.0 }
 0x225   :  { %v938_v56 = vsel %vm937_vm11, %v1811_v14, 0.0  ;;  %1504 = vset.pattern.permute.xlu1 %v1520_v10  ;;  %1505 = vset.pattern.permute.xlu2 %v1519_v8 }
 0x226   :  { %v952_v40 = vadd.f32 %v944_v61, %v938_v56  ;;  %1268 = vperm.xlu1 %1504, %v2043_v33   ;;  %1274 = vperm.xlu2 %1505, %v2043_v33   ;;  %v1024_v16 = vpop.permute.xlu2 %1023 }
 0x227   :  { %vm1026_vm7 = vcmp.gt.f32.partialorder %v1024_v16, 1.0 }
 0x228   :  { %v953_v36 = vadd.f32 %v952_v40, %v951_v22 }
 0x22a   :  { %v954_v44 = vadd.f32 %v953_v36, %v950_v50  ;;  %v1132_v36 = vpop.permute.xlu0 %1131 }
 0x22c   :  { %v956_v51 = vadd.f32 %v955_v29, %v954_v44  ;;  %v969_v47 = vpop.permute.xlu1 %968 }
 0x22d   :  { %vm971_vm14 = vcmp.gt.f32.partialorder %v969_v47, 1.0 }
 0x22e   :  { %v959_v48 = vsub.f32 %v956_v51, %v958_v12  ;;  %1507 = vset.pattern.permute.xlu1 %v1517_v0  ;;  %1508 = vset.pattern.permute.xlu2 %v1518_v7  ;;  %v972_v63 = vsel %vm971_vm14, %v1806_v62, 0.0  ;;  %v1117_v51 = vsel %vm1116_vm2, %v1806_v62, 0.0 }
 0x22f   :  { %1310 = vperm.xlu2 %1508, %v2070_v5   ;;  %1304 = vperm.xlu1 %1507, %v2070_v5   ;;  %v997_v59 = vadd.f32 %v978_v43, %v972_v63  ;;  %v1042_v35 = vpop.permute.xlu2 %1041 }
 0x230   :  { %960 = vst.msk [vmem:[%s2453_s3 + $0x1e] sm:$0x3] %vm241_vm5, %v959_v48  ;;  %v1001_v21 = vmul.f32 0.95, %v959_v48  ;;  %vm1003_vm3 = vcmp.gt.f32.partialorder %v959_v48, 1.0  ;;  %vm1044_vm9 = vcmp.gt.f32.partialorder %v1042_v35, 1.0 }
 0x231   :  { %v1004_v24 = vsel %vm1003_vm3, 1.0, %v1521_v60  ;;  %v1045_v45 = vsel %vm1044_vm9, %v1818_v38, 0.0 }
 0x235   :  { %v987_v33 = vpop.permute.xlu1 %986 }
 0x236   :  { %vm989_vm1 = vcmp.gt.f32.partialorder %v987_v33, 1.0 }
 0x237   :  { %v990_v42 = vsel %vm989_vm1, %v1813_v20, 0.0  ;;  %1510 = vset.pattern.permute.xlu2 %v1519_v8  ;;  %1509 = vset.pattern.permute.xlu1 %v1520_v10 }
 0x238   :  { %v998_v30 = vadd.f32 %v990_v42, %v984_v13  ;;  %1322 = vperm.xlu2 %1510, %v2070_v5   ;;  %1316 = vperm.xlu1 %1509, %v2070_v5   ;;  %v1078_v10 = vpop.permute.xlu2 %1077 }
 0x239   :  { %vm1080_vm13 = vcmp.gt.f32.partialorder %v1078_v10, 1.0 }
 0x23a   :  { %v999_v25 = vadd.f32 %v998_v30, %v997_v59  ;;  %v1081_v17 = vsel %vm1080_vm13, %v1811_v14, 0.0 }
 0x23c   :  { %v1000_v46 = vadd.f32 %v999_v25, %v996_v55 }
 0x23e   :  { %v1002_v34 = vadd.f32 %v1001_v21, %v1000_v46  ;;  %v1018_v26 = vpop.permute.xlu1 %1017  ;;  %v1178_v46 = vpop.permute.xlu0 %1177 }
 0x23f   :  { %vm1020_vm4 = vcmp.gt.f32.partialorder %v1018_v26, 1.0 }
 0x240   :  { %v1005_v57 = vsub.f32 %v1002_v34, %v1004_v24  ;;  %1512 = vset.pattern.permute.xlu2 %v1518_v7  ;;  %1511 = vset.pattern.permute.xlu1 %v1517_v0  ;;  %v1021_v5 = vsel %vm1020_vm4, %v1806_v62, 0.0  ;;  %v1033_v0 = vsel %vm1032_vm6, %v1811_v14, 0.0  ;;  %v1027_v7 = vsel %vm1026_vm7, %v1809_v1, 0.0 }
 0x241   :  { %1356 = vperm.xlu2 %1512, %v2087_v58   ;;  %1350 = vperm.xlu1 %1511, %v2087_v58   ;;  %v1046_v27 = vadd.f32 %v1027_v7, %v1021_v5  ;;  %v1090_v52 = vpop.permute.xlu2 %1089  ;;  %vm1134_vm4 = vcmp.gt.f32.partialorder %v1132_v36, 1.0 }
 0x242   :  { %1006 = vst.msk [vmem:[%s2453_s3 + $0x20] sm:$0x3] %vm241_vm5, %v1005_v57  ;;  %v1050_v37 = vmul.f32 0.95, %v1005_v57  ;;  %vm1052_vm10 = vcmp.gt.f32.partialorder %v1005_v57, 1.0  ;;  %vm1092_vm15 = vcmp.gt.f32.partialorder %v1090_v52, 1.0 }
 0x243   :  { %v1093_v49 = vsel %vm1092_vm15, %v1818_v38, 0.0  ;;  %v1135_v48 = vsel %vm1134_vm4, %v1813_v20, 0.0 }
 0x247   :  { %v1036_v9 = vpop.permute.xlu1 %1035 }
 0x248   :  { %vm1038_vm8 = vcmp.gt.f32.partialorder %v1036_v9, 1.0 }
 0x249   :  { %v1039_v23 = vsel %vm1038_vm8, %v1813_v20, 0.0  ;;  %1515 = vset.pattern.permute.xlu2 %v1522_v18  ;;  %1514 = vset.pattern.permute.xlu1 %v1519_v8  ;;  %v1053_v18 = vsel %vm1052_vm10, 1.0, %v1521_v60 }
 0x24a   :  { %v1047_v3 = vadd.f32 %v1039_v23, %v1033_v0  ;;  %1374 = vperm.xlu2 %1515, %v2087_v58   ;;  %1368 = vperm.xlu1 %1514, %v2087_v58   ;;  %v1126_v8 = vpop.permute.xlu2 %1125 }
 0x24b   :  { %vm1128_vm3 = vcmp.gt.f32.partialorder %v1126_v8, 1.0 }
 0x24c   :  { %v1048_v41 = vadd.f32 %v1047_v3, %v1046_v27  ;;  %v1129_v47 = vsel %vm1128_vm3, %v1811_v14, 0.0 }
 0x24d   :  { %v1143_v16 = vadd.f32 %v1135_v48, %v1129_v47 }
 0x24e   :  { %v1049_v54 = vadd.f32 %v1048_v41, %v1045_v45  ;;  %v1215_v41 = vpop.permute.xlu0 %1214 }
 0x250   :  { %v1051_v28 = vadd.f32 %v1050_v37, %v1049_v54  ;;  %v1072_v6 = vpop.permute.xlu1 %1071 }
 0x251   :  { %vm1074_vm11 = vcmp.gt.f32.partialorder %v1072_v6, 1.0 }
 0x252   :  { %v1054_v2 = vsub.f32 %v1051_v28, %v1053_v18  ;;  %v1075_v58 = vsel %vm1074_vm11, %v1809_v1, 0.0  ;;  %vm1180_vm11 = vcmp.gt.f32.partialorder %v1178_v46, 1.0 }
 0x253   :  { %v1094_v32 = vadd.f32 %v1075_v58, %v1069_v53  ;;  %v1160_v61 = vpop.permute.xlu2 %1159  ;;  %v1181_v57 = vsel %vm1180_vm11, %v1813_v20, 0.0 }
 0x254   :  { %1055 = vst.msk [vmem:[%s2453_s3 + $0x22] sm:$0x3] %vm241_vm5, %v1054_v2  ;;  %v1098_v4 = vmul.f32 0.95, %v1054_v2  ;;  %vm1100_vm0 = vcmp.gt.f32.partialorder %v1054_v2, 1.0  ;;  %vm1162_vm9 = vcmp.gt.f32.partialorder %v1160_v61, 1.0 }
 0x255   :  { %v1101_v50 = vsel %vm1100_vm0, 1.0, %v1521_v60  ;;  %v1163_v34 = vsel %vm1162_vm9, %v1806_v62, 0.0 }
 0x256   :  { %v1263_v58 = vpop.permute.xlu0 %1262 }
 0x259   :  { %v1084_v15 = vpop.permute.xlu1 %1083 }
 0x25a   :  { %vm1086_vm14 = vcmp.gt.f32.partialorder %v1084_v15, 1.0 }
 0x25b   :  { %v1087_v11 = vsel %vm1086_vm14, %v1813_v20, 0.0 }
 0x25c   :  { %v1095_v19 = vadd.f32 %v1087_v11, %v1081_v17  ;;  %v1172_v63 = vpop.permute.xlu2 %1171 }
 0x25d   :  { %vm1174_vm10 = vcmp.gt.f32.partialorder %v1172_v63, 1.0 }
 0x25e   :  { %v1096_v39 = vadd.f32 %v1095_v19, %v1094_v32  ;;  %v1175_v26 = vsel %vm1174_vm10, %v1811_v14, 0.0 }
 0x25f   :  { %v1189_v10 = vadd.f32 %v1181_v57, %v1175_v26 }
 0x260   :  { %v1097_v56 = vadd.f32 %v1096_v39, %v1093_v49 }
 0x262   :  { %v1099_v22 = vadd.f32 %v1098_v4, %v1097_v56  ;;  %v1120_v40 = vpop.permute.xlu1 %1119  ;;  %v1281_v4 = vpop.permute.xlu0 %1280 }
 0x263   :  { %vm1122_vm1 = vcmp.gt.f32.partialorder %v1120_v40, 1.0  ;;  %vm1283_vm9 = vcmp.gt.f32.partialorder %v1281_v4, 1.0 }
 0x264   :  { %v1102_v44 = vsub.f32 %v1099_v22, %v1101_v50  ;;  %v1123_v29 = vsel %vm1122_vm1, %v1809_v1, 0.0  ;;  %vm1217_vm1 = vcmp.gt.f32.partialorder %v1215_v41, 1.0  ;;  %v1284_v48 = vsel %vm1283_vm9, %v1818_v38, 0.0 }
 0x265   :  { %v1142_v12 = vadd.f32 %v1123_v29, %v1117_v51  ;;  %v1209_v25 = vpop.permute.xlu2 %1208  ;;  %v1218_v8 = vsel %vm1217_vm1, %v1809_v1, 0.0 }
 0x266   :  { %1103 = vst.msk [vmem:[%s2453_s3 + $0x24] sm:$0x3] %vm241_vm5, %v1102_v44  ;;  %v1146_v42 = vmul.f32 0.95, %v1102_v44  ;;  %vm1148_vm7 = vcmp.gt.f32.partialorder %v1102_v44, 1.0  ;;  %vm1211_vm15 = vcmp.gt.f32.partialorder %v1209_v25, 1.0 }
 0x267   :  { %v1144_v33 = vadd.f32 %v1143_v16, %v1142_v12  ;;  %v1149_v35 = vsel %vm1148_vm7, 1.0, %v1521_v60  ;;  %v1212_v6 = vsel %vm1211_vm15, %v1806_v62, 0.0 }
 0x268   :  { %v1237_v15 = vadd.f32 %v1218_v8, %v1212_v6 }
 0x26b   :  { %v1138_v31 = vpop.permute.xlu1 %1137 }
 0x26c   :  { %vm1140_vm6 = vcmp.gt.f32.partialorder %v1138_v31, 1.0 }
 0x26d   :  { %v1141_v13 = vsel %vm1140_vm6, %v1818_v38, 0.0  ;;  %vm1265_vm6 = vcmp.gt.f32.partialorder %v1263_v58, 1.0 }
 0x26e   :  { %v1145_v43 = vadd.f32 %v1144_v33, %v1141_v13  ;;  %v1227_v9 = vpop.permute.xlu2 %1226  ;;  %v1266_v36 = vsel %vm1265_vm6, %v1809_v1, 0.0 }
 0x26f   :  { %vm1229_vm0 = vcmp.gt.f32.partialorder %v1227_v9, 1.0 }
 0x270   :  { %v1147_v59 = vadd.f32 %v1146_v42, %v1145_v43  ;;  %v1230_v18 = vsel %vm1229_vm0, %v1813_v20, 0.0 }
 0x272   :  { %v1150_v30 = vsub.f32 %v1147_v59, %v1149_v35  ;;  %v1329_v59 = vpop.permute.xlu0 %1328 }
 0x273   :  { %vm1331_vm15 = vcmp.gt.f32.partialorder %v1329_v59, 1.0 }
 0x274   :  { %1151 = vst.msk [vmem:[%s2453_s3 + $0x26] sm:$0x3] %vm241_vm5, %v1150_v30  ;;  %v1166_v55 = vpop.permute.xlu1 %1165  ;;  %v1192_v27 = vmul.f32 0.95, %v1150_v30  ;;  %vm1194_vm13 = vcmp.gt.f32.partialorder %v1150_v30, 1.0 }
 0x275   :  { %vm1168_vm8 = vcmp.gt.f32.partialorder %v1166_v55, 1.0  ;;  %v1195_v52 = vsel %vm1194_vm13, 1.0, %v1521_v60 }
 0x276   :  { %v1169_v21 = vsel %vm1168_vm8, %v1809_v1, 0.0 }
 0x277   :  { %v1188_v24 = vadd.f32 %v1169_v21, %v1163_v34  ;;  %v1257_v37 = vpop.permute.xlu2 %1256 }
 0x278   :  { %vm1259_vm4 = vcmp.gt.f32.partialorder %v1257_v37, 1.0 }
 0x279   :  { %v1190_v0 = vadd.f32 %v1189_v10, %v1188_v24  ;;  %v1260_v22 = vsel %vm1259_vm4, %v1806_v62, 0.0  ;;  %v1332_v24 = vsel %vm1331_vm15, %v1818_v38, 0.0 }
 0x27a   :  { %v1285_v29 = vadd.f32 %v1266_v36, %v1260_v22 }
 0x27d   :  { %v1184_v5 = vpop.permute.xlu1 %1183 }
 0x27e   :  { %vm1186_vm12 = vcmp.gt.f32.partialorder %v1184_v5, 1.0 }
 0x27f   :  { %v1187_v7 = vsel %vm1186_vm12, %v1818_v38, 0.0 }
 0x280   :  { %v1191_v23 = vadd.f32 %v1190_v0, %v1187_v7  ;;  %v1275_v32 = vpop.permute.xlu2 %1274 }
 0x281   :  { %vm1277_vm7 = vcmp.gt.f32.partialorder %v1275_v32, 1.0 }
 0x282   :  { %v1193_v3 = vadd.f32 %v1192_v27, %v1191_v23  ;;  %v1278_v50 = vsel %vm1277_vm7, %v1813_v20, 0.0  ;;  %v1363_v27 = vpop.permute.xlu0 %1362 }
 0x284   :  { %v1196_v45 = vsub.f32 %v1193_v3, %v1195_v52 }
 0x286   :  { %1197 = vst.msk [vmem:[%s2453_s3 + $0x28] sm:$0x3] %vm241_vm5, %v1196_v45  ;;  %v1221_v54 = vpop.permute.xlu1 %1220  ;;  %v1241_v39 = vmul.f32 0.95, %v1196_v45  ;;  %vm1243_vm3 = vcmp.gt.f32.partialorder %v1196_v45, 1.0 }
 0x287   :  { %vm1223_vm14 = vcmp.gt.f32.partialorder %v1221_v54, 1.0  ;;  %v1244_v61 = vsel %vm1243_vm3, 1.0, %v1521_v60 }
 0x288   :  { %v1224_v28 = vsel %vm1223_vm14, %v1811_v14, 0.0 }
 0x289   :  { %v1238_v2 = vadd.f32 %v1230_v18, %v1224_v28  ;;  %v1311_v47 = vpop.permute.xlu2 %1310 }
 0x28a   :  { %vm1313_vm12 = vcmp.gt.f32.partialorder %v1311_v47, 1.0 }
 0x28b   :  { %v1239_v17 = vadd.f32 %v1238_v2, %v1237_v15  ;;  %v1314_v25 = vsel %vm1313_vm12, %v1809_v1, 0.0 }
 0x28f   :  { %v1233_v53 = vpop.permute.xlu1 %1232 }
 0x290   :  { %vm1235_vm2 = vcmp.gt.f32.partialorder %v1233_v53, 1.0 }
 0x291   :  { %v1236_v11 = vsel %vm1235_vm2, %v1818_v38, 0.0  ;;  %vm1365_vm2 = vcmp.gt.f32.partialorder %v1363_v27, 1.0 }
 0x292   :  { %v1240_v19 = vadd.f32 %v1239_v17, %v1236_v11  ;;  %v1323_v42 = vpop.permute.xlu2 %1322  ;;  %v1366_v45 = vsel %vm1365_vm2, %v1811_v14, 0.0 }
 0x293   :  { %vm1325_vm13 = vcmp.gt.f32.partialorder %v1323_v42, 1.0 }
 0x294   :  { %v1242_v49 = vadd.f32 %v1241_v39, %v1240_v19  ;;  %v1326_v55 = vsel %vm1325_vm13, %v1813_v20, 0.0 }
 0x296   :  { %v1245_v56 = vsub.f32 %v1242_v49, %v1244_v61 }
 0x298   :  { %1246 = vst.msk [vmem:[%s2453_s3 + $0x2a] sm:$0x3] %vm241_vm5, %v1245_v56  ;;  %v1269_v40 = vpop.permute.xlu1 %1268  ;;  %vm1291_vm10 = vcmp.gt.f32.partialorder %v1245_v56, 1.0  ;;  %v1289_v63 = vmul.f32 0.95, %v1245_v56 }
 0x299   :  { %vm1271_vm8 = vcmp.gt.f32.partialorder %v1269_v40, 1.0  ;;  %v1292_v13 = vsel %vm1291_vm10, 1.0, %v1521_v60 }
 0x29a   :  { %v1272_v44 = vsel %vm1271_vm8, %v1811_v14, 0.0 }
 0x29b   :  { %v1286_v51 = vadd.f32 %v1278_v50, %v1272_v44  ;;  %v1357_v5 = vpop.permute.xlu2 %1356 }
 0x29c   :  { %vm1359_vm3 = vcmp.gt.f32.partialorder %v1357_v5, 1.0 }
 0x29d   :  { %v1287_v12 = vadd.f32 %v1286_v51, %v1285_v29  ;;  %v1360_v54 = vsel %vm1359_vm3, %v1809_v1, 0.0 }
 0x29f   :  { %v1288_v16 = vadd.f32 %v1287_v12, %v1284_v48 }
 0x2a1   :  { %v1290_v31 = vadd.f32 %v1289_v63, %v1288_v16  ;;  %v1305_v33 = vpop.permute.xlu1 %1304 }
 0x2a2   :  { %vm1307_vm11 = vcmp.gt.f32.partialorder %v1305_v33, 1.0 }
 0x2a3   :  { %v1293_v43 = vsub.f32 %v1290_v31, %v1292_v13  ;;  %v1308_v35 = vsel %vm1307_vm11, %v1806_v62, 0.0 }
 0x2a4   :  { %v1333_v21 = vadd.f32 %v1314_v25, %v1308_v35  ;;  %v1375_v3 = vpop.permute.xlu2 %1374 }
 0x2a5   :  { %1294 = vst.msk [vmem:[%s2453_s3 + $0x2c] sm:$0x3] %vm241_vm5, %v1293_v43  ;;  %v1337_v10 = vmul.f32 0.95, %v1293_v43  ;;  %vm1339_vm0 = vcmp.gt.f32.partialorder %v1293_v43, 1.0  ;;  %vm1377_vm6 = vcmp.gt.f32.partialorder %v1375_v3, 1.0 }
 0x2a6   :  { %v1340_v7 = vsel %vm1339_vm0, 1.0, %v1521_v60  ;;  %v1378_v2 = vsel %vm1377_vm6, %v1818_v38, 0.0 }
 0x2aa   :  { %v1317_v30 = vpop.permute.xlu1 %1316 }
 0x2ab   :  { %vm1319_vm14 = vcmp.gt.f32.partialorder %v1317_v30, 1.0 }
 0x2ac   :  { %v1320_v46 = vsel %vm1319_vm14, %v1811_v14, 0.0 }
 0x2ad   :  { %v1334_v34 = vadd.f32 %v1326_v55, %v1320_v46 }
 0x2af   :  { %v1335_v26 = vadd.f32 %v1334_v34, %v1333_v21 }
 0x2b1   :  { %v1336_v57 = vadd.f32 %v1335_v26, %v1332_v24 }
 0x2b3   :  { %v1338_v9 = vadd.f32 %v1337_v10, %v1336_v57  ;;  %v1351_v0 = vpop.permute.xlu1 %1350 }
 0x2b4   :  { %vm1353_vm1 = vcmp.gt.f32.partialorder %v1351_v0, 1.0 }
 0x2b5   :  { %v1341_v23 = vsub.f32 %v1338_v9, %v1340_v7  ;;  %v1354_v52 = vsel %vm1353_vm1, %v1806_v62, 0.0 }
 0x2b6   :  { %v1379_v28 = vadd.f32 %v1360_v54, %v1354_v52 }
 0x2b7   :  { %1342 = vst.msk [vmem:[%s2453_s3 + $0x2e] sm:$0x3] %vm241_vm5, %v1341_v23  ;;  %v1383_v58 = vmul.f32 0.95, %v1341_v23  ;;  %vm1385_vm7 = vcmp.gt.f32.partialorder %v1341_v23, 1.0 }
 0x2b8   :  { %v1386_v62 = vsel %vm1385_vm7, 1.0, %v1521_v60 }
 0x2bc   :  { %v1369_v41 = vpop.permute.xlu1 %1368 }
 0x2bd   :  { %vm1371_vm4 = vcmp.gt.f32.partialorder %v1369_v41, 1.0 }
 0x2be   :  { %v1372_v37 = vsel %vm1371_vm4, %v1813_v20, 0.0 }
 0x2bf   :  { %v1380_v6 = vadd.f32 %v1372_v37, %v1366_v45 }
 0x2c1   :  { %v1381_v18 = vadd.f32 %v1380_v6, %v1379_v28 }
 0x2c3   :  { %v1382_v8 = vadd.f32 %v1381_v18, %v1378_v2 }
 0x2c5   :  { %v1384_v15 = vadd.f32 %v1383_v58, %v1382_v8 }
 0x2c7   :  { %v1387_v53 = vsub.f32 %v1384_v15, %v1386_v62 }
 0x2c9   :  { %1388 = vst.msk [vmem:[%s2453_s3 + $0x30] sm:$0x3] %vm241_vm5, %v1387_v53 }

</bundles_post_ra>
